<compile_context>
chip_gen: v6e
topology: v6e:2x2x1
jax: 0.10.0
libtpu: 0.0.40
codegen_flags: <defaults>
</compile_context>

<pallas_src>
import math

import jax
import jax.numpy as jnp
from jax.experimental import pallas as pl
from jax.experimental.pallas import tpu as pltpu

_BN_EPS = 1e-5
_VMEM_LIMIT = 32 * 1024 * 1024


def _pick_sample_tile(n, cap=8):
    """Largest divisor of n (<= cap) that still leaves a grid of >= 2 steps."""
    best = 1
    for c in range(2, min(cap, n) + 1):
        if n % c == 0 and n // c >= 2:
            best = c
    return best


def _pick_row_tile(n, cap=256):
    if n % 8 != 0:
        return n                    # block == full dim is always legal
    t = 8
    while t * 2 <= cap and n % (t * 2) == 0 and n // (t * 2) >= 2:
        t *= 2
    return t


# -----------------------------------------------------------------------------
# Kernel 1/2: conv (as im2col matmul) + folded-BN shift + ReLU + 2x2 max-pool
# -----------------------------------------------------------------------------
def _conv_bn_relu_pool_kernel(cols_ref, w_ref, shift_ref, o_ref):
    """cols_ref: (ns, 4, P, K)  4 = pooling phases, P = pooled pixels per sample
       w_ref:    (K, C)         conv weight with BN scale folded in
       shift_ref:(1, C)         BN shift (+ folded conv bias), f32
       o_ref:    (ns, P, C)     pooled activations"""
    ns = cols_ref.shape[0]
    w = w_ref[...]
    shift = shift_ref[...]
    for s in range(ns):
        pooled = None
        for p in range(4):
            acc = jnp.dot(cols_ref[s, p, :, :], w,
                          preferred_element_type=jnp.float32)
            act = jnp.maximum(acc + shift, 0.0)        # BN shift + ReLU (f32)
            pooled = act if pooled is None else jnp.maximum(pooled, act)
        o_ref[s, :, :] = pooled.astype(o_ref.dtype)


def conv_bn_relu_pool(cols, w, shift, *, out_dtype=jnp.bfloat16):
    n, nph, p_pix, k = cols.shape
    kc, c = w.shape
    assert nph == 4 and kc == k
    ns = _pick_sample_tile(n)
    return pl.pallas_call(
        _conv_bn_relu_pool_kernel,
        out_shape=jax.ShapeDtypeStruct((n, p_pix, c), out_dtype),
        grid=(n // ns,),
        in_specs=[
            pl.BlockSpec((ns, 4, p_pix, k), lambda i: (i, 0, 0, 0)),
            pl.BlockSpec((k, c), lambda i: (0, 0)),
            pl.BlockSpec((1, c), lambda i: (0, 0)),
        ],
        out_specs=pl.BlockSpec((ns, p_pix, c), lambda i: (i, 0, 0)),
        compiler_params=pltpu.CompilerParams(
            dimension_semantics=("parallel",),
            vmem_limit_bytes=_VMEM_LIMIT),
    )(cols, w, shift)


# -----------------------------------------------------------------------------
# Kernel 3: fc1 -> dropout(identity) -> fc2 -> fc3, all in one call
# -----------------------------------------------------------------------------
def _fc_stack_kernel(x_ref, w1_ref, b1_ref, w2_ref, b2_ref, w3_ref, b3_ref,
                     o_ref):
    h = jnp.dot(x_ref[...], w1_ref[...],
                preferred_element_type=jnp.float32) + b1_ref[...]
    # TODO(synk): nn.Dropout2d(0.25) uses inference semantics (identity) here.
    h = jnp.dot(h.astype(w2_ref.dtype), w2_ref[...],
                preferred_element_type=jnp.float32) + b2_ref[...]
    h = jnp.dot(h.astype(w3_ref.dtype), w3_ref[...],
                preferred_element_type=jnp.float32) + b3_ref[...]
    o_ref[...] = h.astype(o_ref.dtype)


def fc_stack(x, w1, b1, w2, b2, w3, b3):
    n, k = x.shape
    d1, d2, d3 = w1.shape[1], w2.shape[1], w3.shape[1]
    tb = _pick_row_tile(n)
    return pl.pallas_call(
        _fc_stack_kernel,
        out_shape=jax.ShapeDtypeStruct((n, d3), jnp.float32),
        grid=(n // tb,),
        in_specs=[
            pl.BlockSpec((tb, k), lambda i: (i, 0)),
            pl.BlockSpec((k, d1), lambda i: (0, 0)),
            pl.BlockSpec((1, d1), lambda i: (0, 0)),
            pl.BlockSpec((d1, d2), lambda i: (0, 0)),
            pl.BlockSpec((1, d2), lambda i: (0, 0)),
            pl.BlockSpec((d2, d3), lambda i: (0, 0)),
            pl.BlockSpec((1, d3), lambda i: (0, 0)),
        ],
        out_specs=pl.BlockSpec((tb, d3), lambda i: (i, 0)),
        compiler_params=pltpu.CompilerParams(
            dimension_semantics=("parallel",),
            vmem_limit_bytes=_VMEM_LIMIT),
    )(x, w1, b1, w2, b2, w3, b3)


# -----------------------------------------------------------------------------
# Parameters (deterministic, mirrors FashionCNN.initialize_weights) + folding
# -----------------------------------------------------------------------------
def _kaiming_uniform(key, shape, fan_in):
    bound = math.sqrt(6.0 / fan_in)          # nn.init.kaiming_uniform_ default
    return jax.random.uniform(key, shape, jnp.float32, -bound, bound)


def init_params(key):
    k1, k2, k3, k4, k5 = jax.random.split(key, 5)
    w1 = _kaiming_uniform(k1, (32, 1, 3, 3), fan_in=9)
    w2 = _kaiming_uniform(k2, (64, 32, 3, 3), fan_in=288)
    fc1 = _kaiming_uniform(k3, (600, 2304), fan_in=2304)
    fc2 = _kaiming_uniform(k4, (120, 600), fan_in=600)
    fc3 = _kaiming_uniform(k5, (10, 120), fan_in=120)

    def bn_fold(w_oihw, bias, gamma, beta, mean, var):
        # Eval-mode BN folded into the conv matmul weight (review item).
        # TODO(synk): train-mode BatchNorm (batch statistics) not implemented.
        scale = gamma / jnp.sqrt(var + _BN_EPS)                   # (Cout,)
        shift = beta + (bias - mean) * scale                      # (Cout,)
        cout, cin, kh, kw = w_oihw.shape
        w_mat = jnp.transpose(w_oihw, (2, 3, 1, 0)).reshape(kh * kw * cin, cout)
        return w_mat * scale[None, :], shift[None, :]

    z32, o32 = jnp.zeros((32,), jnp.float32), jnp.ones((32,), jnp.float32)
    z64, o64 = jnp.zeros((64,), jnp.float32), jnp.ones((64,), jnp.float32)
    w1_mat, t1 = bn_fold(w1, z32, o32, z32, z32, o32)             # (9,32),(1,32)
    w2_mat, t2 = bn_fold(w2, z64, o64, z64, z64, o64)             # (288,64),(1,64)

    # fc1: PyTorch flattens (C,H,W); our conv output is (H,W,C) -> permute rows.
    fc1_hwc = fc1.reshape(600, 64, 6, 6).transpose(0, 2, 3, 1).reshape(600, 2304)
    fc1_w = jnp.pad(fc1_hwc.T, ((0, 0), (0, 40)))                 # (2304, 640)
    fc2_w = jnp.pad(fc2.T, ((0, 40), (0, 8)))                     # (640, 128)
    fc3_w = jnp.pad(fc3.T, ((0, 8), (0, 0)))                      # (128, 10)

    bf = jnp.bfloat16
    return {
        "w1": w1_mat.astype(jnp.float32), "t1": t1.astype(jnp.float32),
        "w2": w2_mat.astype(bf), "t2": t2.astype(jnp.float32),
        "fc1_w": fc1_w.astype(bf), "fc1_b": jnp.zeros((1, 640), jnp.float32),
        "fc2_w": fc2_w.astype(bf), "fc2_b": jnp.zeros((1, 128), jnp.float32),
        "fc3_w": fc3_w.astype(bf), "fc3_b": jnp.zeros((1, 10), jnp.float32),
    }


# -----------------------------------------------------------------------------
# Forward pass
# -----------------------------------------------------------------------------
def _phase_im2col(x_nhwc, ksize, pad, pool_out):
    """4 pooling-phase im2col matrices: (N, 4, pool_out^2, K*K*C).
    Rows are pooled output pixels (i,j); phase (p,q) is pool-window member
    (2i+p, 2j+q). Columns are taps in (kh, kw, cin) order."""
    n, h, w, c = x_nhwc.shape
    if pad:
        x_nhwc = jnp.pad(x_nhwc, ((0, 0), (pad, pad), (pad, pad), (0, 0)))
    ho = h + 2 * pad - ksize + 1
    wo = w + 2 * pad - ksize + 1
    taps = [x_nhwc[:, kh:kh + ho, kw:kw + wo, :]
            for kh in range(ksize) for kw in range(ksize)]
    cols = jnp.concatenate(taps, axis=-1)              # (N, Ho, Wo, K*K*C)
    phases = [cols[:, p::2, q::2, :] for p in (0, 1) for q in (0, 1)]
    cols4 = jnp.stack(phases, axis=1)                  # (N, 4, Ho/2, Wo/2, KKC)
    return cols4.reshape(n, 4, pool_out * pool_out, ksize * ksize * c)


def fashion_cnn_forward(x_nchw, p):
    n = x_nchw.shape[0]
    x = jnp.transpose(x_nchw, (0, 2, 3, 1))            # NCHW -> NHWC (glue)

    # layer1: Conv(1->32, k3, pad1) + BN + ReLU + MaxPool  (one fused call)
    cols1 = _phase_im2col(x, 3, pad=1, pool_out=14)    # (N, 4, 196, 9) f32
    y1 = conv_bn_relu_pool(cols1, p["w1"], p["t1"])    # (N, 196, 32) bf16
    y1 = y1.reshape(n, 14, 14, 32)

    # layer2: Conv(32->64, k3, pad0) + BN + ReLU + MaxPool (one fused call)
    cols2 = _phase_im2col(y1, 3, pad=0, pool_out=6)    # (N, 4, 36, 288) bf16
    y2 = conv_bn_relu_pool(cols2, p["w2"], p["t2"])    # (N, 36, 64) bf16

    # flatten in (H,W,C) order (fc1 rows were permuted to match PyTorch view)
    flat = y2.reshape(n, 36 * 64)
    return fc_stack(flat, p["fc1_w"], p["fc1_b"], p["fc2_w"], p["fc2_b"],
                    p["fc3_w"], p["fc3_b"])            # (N, 10) f32 logits


if __name__ == "__main__":
    key = jax.random.PRNGKey(0)
    params = init_params(key)
    x = jax.random.normal(jax.random.fold_in(key, 99), (2, 1, 28, 28),
                          jnp.float32)

    fwd = jax.jit(fashion_cnn_forward)
    out = jax.block_until_ready(fwd(x, params))
    assert out.shape == (2, 10) and out.dtype == jnp.float32
    assert bool(jnp.all(jnp.isfinite(out)))
    print("KERNEL_OK")
</pallas_src>

<mosaic_0001>
module attributes {stable_mosaic.version = 11 : i64} {
  func.func @_conv_bn_relu_pool_kernel(%arg0: i32, %arg1: memref<1x4x196x9xf32, #tpu.memory_space<vmem>>, %arg2: memref<9x32xf32, #tpu.memory_space<vmem>>, %arg3: memref<1x32xf32, #tpu.memory_space<vmem>>, %arg4: memref<1x196x32xbf16, #tpu.memory_space<vmem>>) attributes {dimension_semantics = [#tpu.dimension_semantics<parallel>], iteration_bounds = array<i64: 2>, scalar_prefetch = 0 : i64, scratch_operands = 0 : i64, tpu.core_type = #tpu.core_type<tc>, window_params = [{transform_indices = @transform_0, window_bounds = array<i64: 1, 4, 196, 9>}, {pipeline_mode = #tpu.pipeline_mode<synchronous>, transform_indices = @transform_1, window_bounds = array<i64: 9, 32>}, {pipeline_mode = #tpu.pipeline_mode<synchronous>, transform_indices = @transform_2, window_bounds = array<i64: 1, 32>}, {transform_indices = @transform_3, window_bounds = array<i64: 1, 196, 32>}]} {
    %c0 = arith.constant 0 : index
    %c0_0 = arith.constant 0 : index
    %0 = vector.load %arg2[%c0, %c0_0] : memref<9x32xf32, #tpu.memory_space<vmem>>, vector<9x32xf32>
    %c0_1 = arith.constant 0 : index
    %c0_2 = arith.constant 0 : index
    %1 = vector.load %arg3[%c0_1, %c0_2] : memref<1x32xf32, #tpu.memory_space<vmem>>, vector<1x32xf32>
    %c0_3 = arith.constant 0 : index
    %c0_4 = arith.constant 0 : index
    %c0_5 = arith.constant 0 : index
    %c0_6 = arith.constant 0 : index
    %2 = vector.load %arg1[%c0_3, %c0_4, %c0_5, %c0_6] : memref<1x4x196x9xf32, #tpu.memory_space<vmem>>, vector<1x1x196x9xf32>
    %3 = vector.shape_cast %2 : vector<1x1x196x9xf32> to vector<196x9xf32>
    %cst = arith.constant dense<0.000000e+00> : vector<196x32xf32>
    %4 = tpu.matmul %3, %0, %cst {dimension_numbers = #tpu.dot_dimension_numbers<[1], [0], [0], [1], [0, 0, 1, 1], [], []>} : vector<196x9xf32>, vector<9x32xf32>, vector<196x32xf32> -> vector<196x32xf32>
    %5 = vector.broadcast %1 : vector<1x32xf32> to vector<196x32xf32>
    %6 = arith.addf %4, %5 : vector<196x32xf32>
    %cst_7 = arith.constant 0.000000e+00 : f32
    %7 = vector.broadcast %cst_7 : f32 to vector<196x32xf32>
    %8 = arith.maximumf %6, %7 : vector<196x32xf32>
    %c0_8 = arith.constant 0 : index
    %c1 = arith.constant 1 : index
    %c0_9 = arith.constant 0 : index
    %c0_10 = arith.constant 0 : index
    %9 = vector.load %arg1[%c0_8, %c1, %c0_9, %c0_10] : memref<1x4x196x9xf32, #tpu.memory_space<vmem>>, vector<1x1x196x9xf32>
    %10 = vector.shape_cast %9 : vector<1x1x196x9xf32> to vector<196x9xf32>
    %cst_11 = arith.constant dense<0.000000e+00> : vector<196x32xf32>
    %11 = tpu.matmul %10, %0, %cst_11 {dimension_numbers = #tpu.dot_dimension_numbers<[1], [0], [0], [1], [0, 0, 1, 1], [], []>} : vector<196x9xf32>, vector<9x32xf32>, vector<196x32xf32> -> vector<196x32xf32>
    %12 = vector.broadcast %1 : vector<1x32xf32> to vector<196x32xf32>
    %13 = arith.addf %11, %12 : vector<196x32xf32>
    %cst_12 = arith.constant 0.000000e+00 : f32
    %14 = vector.broadcast %cst_12 : f32 to vector<196x32xf32>
    %15 = arith.maximumf %13, %14 : vector<196x32xf32>
    %16 = arith.maximumf %8, %15 : vector<196x32xf32>
    %c0_13 = arith.constant 0 : index
    %c2 = arith.constant 2 : index
    %c0_14 = arith.constant 0 : index
    %c0_15 = arith.constant 0 : index
    %17 = vector.load %arg1[%c0_13, %c2, %c0_14, %c0_15] : memref<1x4x196x9xf32, #tpu.memory_space<vmem>>, vector<1x1x196x9xf32>
    %18 = vector.shape_cast %17 : vector<1x1x196x9xf32> to vector<196x9xf32>
    %cst_16 = arith.constant dense<0.000000e+00> : vector<196x32xf32>
    %19 = tpu.matmul %18, %0, %cst_16 {dimension_numbers = #tpu.dot_dimension_numbers<[1], [0], [0], [1], [0, 0, 1, 1], [], []>} : vector<196x9xf32>, vector<9x32xf32>, vector<196x32xf32> -> vector<196x32xf32>
    %20 = vector.broadcast %1 : vector<1x32xf32> to vector<196x32xf32>
    %21 = arith.addf %19, %20 : vector<196x32xf32>
    %cst_17 = arith.constant 0.000000e+00 : f32
    %22 = vector.broadcast %cst_17 : f32 to vector<196x32xf32>
    %23 = arith.maximumf %21, %22 : vector<196x32xf32>
    %24 = arith.maximumf %16, %23 : vector<196x32xf32>
    %c0_18 = arith.constant 0 : index
    %c3 = arith.constant 3 : index
    %c0_19 = arith.constant 0 : index
    %c0_20 = arith.constant 0 : index
    %25 = vector.load %arg1[%c0_18, %c3, %c0_19, %c0_20] : memref<1x4x196x9xf32, #tpu.memory_space<vmem>>, vector<1x1x196x9xf32>
    %26 = vector.shape_cast %25 : vector<1x1x196x9xf32> to vector<196x9xf32>
    %cst_21 = arith.constant dense<0.000000e+00> : vector<196x32xf32>
    %27 = tpu.matmul %26, %0, %cst_21 {dimension_numbers = #tpu.dot_dimension_numbers<[1], [0], [0], [1], [0, 0, 1, 1], [], []>} : vector<196x9xf32>, vector<9x32xf32>, vector<196x32xf32> -> vector<196x32xf32>
    %28 = vector.broadcast %1 : vector<1x32xf32> to vector<196x32xf32>
    %29 = arith.addf %27, %28 : vector<196x32xf32>
    %cst_22 = arith.constant 0.000000e+00 : f32
    %30 = vector.broadcast %cst_22 : f32 to vector<196x32xf32>
    %31 = arith.maximumf %29, %30 : vector<196x32xf32>
    %32 = arith.maximumf %24, %31 : vector<196x32xf32>
    %33 = arith.truncf %32 : vector<196x32xf32> to vector<196x32xbf16>
    %c0_23 = arith.constant 0 : index
    %c0_24 = arith.constant 0 : index
    %c0_25 = arith.constant 0 : index
    %34 = vector.load %arg4[%c0_23, %c0_24, %c0_25] : memref<1x196x32xbf16, #tpu.memory_space<vmem>>, vector<1x196x32xbf16>
    %35 = vector.shape_cast %34 : vector<1x196x32xbf16> to vector<196x32xbf16>
    %36 = vector.shape_cast %33 : vector<196x32xbf16> to vector<1x196x32xbf16>
    tpu.vector_store %arg4[%c0_23, %c0_24, %c0_25], %36 {strides = array<i32>} : memref<1x196x32xbf16, #tpu.memory_space<vmem>>, vector<1x196x32xbf16>,
    return
  }
  func.func @transform_0(%arg0: i32) -> (i32, i32, i32, i32) {
    %c0_i32 = arith.constant 0 : i32
    %c0_i32_0 = arith.constant 0 : i32
    %c0_i32_1 = arith.constant 0 : i32
    %c0_i32_2 = arith.constant 0 : i32
    return %arg0, %c0_i32, %c0_i32_0, %c0_i32_1 : i32, i32, i32, i32
  }
  func.func @transform_1(%arg0: i32) -> (i32, i32) {
    %c0_i32 = arith.constant 0 : i32
    %c0_i32_0 = arith.constant 0 : i32
    %c0_i32_1 = arith.constant 0 : i32
    return %c0_i32, %c0_i32_0 : i32, i32
  }
  func.func @transform_2(%arg0: i32) -> (i32, i32) {
    %c0_i32 = arith.constant 0 : i32
    %c0_i32_0 = arith.constant 0 : i32
    %c0_i32_1 = arith.constant 0 : i32
    return %c0_i32, %c0_i32_0 : i32, i32
  }
  func.func @transform_3(%arg0: i32) -> (i32, i32, i32) {
    %c0_i32 = arith.constant 0 : i32
    %c0_i32_0 = arith.constant 0 : i32
    %c0_i32_1 = arith.constant 0 : i32
    return %arg0, %c0_i32, %c0_i32_0 : i32, i32, i32
  }
}

module attributes {stable_mosaic.version = 11 : i64} {
  func.func @_conv_bn_relu_pool_kernel(%arg0: i32, %arg1: memref<1x4x36x288xbf16, #tpu.memory_space<vmem>>, %arg2: memref<288x64xbf16, #tpu.memory_space<vmem>>, %arg3: memref<1x64xf32, #tpu.memory_space<vmem>>, %arg4: memref<1x36x64xbf16, #tpu.memory_space<vmem>>) attributes {dimension_semantics = [#tpu.dimension_semantics<parallel>], iteration_bounds = array<i64: 2>, scalar_prefetch = 0 : i64, scratch_operands = 0 : i64, tpu.core_type = #tpu.core_type<tc>, window_params = [{transform_indices = @transform_0, window_bounds = array<i64: 1, 4, 36, 288>}, {pipeline_mode = #tpu.pipeline_mode<synchronous>, transform_indices = @transform_1, window_bounds = array<i64: 288, 64>}, {pipeline_mode = #tpu.pipeline_mode<synchronous>, transform_indices = @transform_2, window_bounds = array<i64: 1, 64>}, {transform_indices = @transform_3, window_bounds = array<i64: 1, 36, 64>}]} {
    %c0 = arith.constant 0 : index
    %c0_0 = arith.constant 0 : index
    %0 = vector.load %arg2[%c0, %c0_0] : memref<288x64xbf16, #tpu.memory_space<vmem>>, vector<288x64xbf16>
    %c0_1 = arith.constant 0 : index
    %c0_2 = arith.constant 0 : index
    %1 = vector.load %arg3[%c0_1, %c0_2] : memref<1x64xf32, #tpu.memory_space<vmem>>, vector<1x64xf32>
    %c0_3 = arith.constant 0 : index
    %c0_4 = arith.constant 0 : index
    %c0_5 = arith.constant 0 : index
    %c0_6 = arith.constant 0 : index
    %2 = vector.load %arg1[%c0_3, %c0_4, %c0_5, %c0_6] : memref<1x4x36x288xbf16, #tpu.memory_space<vmem>>, vector<1x1x36x288xbf16>
    %3 = vector.shape_cast %2 : vector<1x1x36x288xbf16> to vector<36x288xbf16>
    %cst = arith.constant dense<0.000000e+00> : vector<36x64xf32>
    %4 = tpu.matmul %3, %0, %cst {dimension_numbers = #tpu.dot_dimension_numbers<[1], [0], [0], [1], [0, 0, 1, 1], [], []>} : vector<36x288xbf16>, vector<288x64xbf16>, vector<36x64xf32> -> vector<36x64xf32>
    %5 = vector.broadcast %1 : vector<1x64xf32> to vector<36x64xf32>
    %6 = arith.addf %4, %5 : vector<36x64xf32>
    %cst_7 = arith.constant 0.000000e+00 : f32
    %7 = vector.broadcast %cst_7 : f32 to vector<36x64xf32>
    %8 = arith.maximumf %6, %7 : vector<36x64xf32>
    %c0_8 = arith.constant 0 : index
    %c1 = arith.constant 1 : index
    %c0_9 = arith.constant 0 : index
    %c0_10 = arith.constant 0 : index
    %9 = vector.load %arg1[%c0_8, %c1, %c0_9, %c0_10] : memref<1x4x36x288xbf16, #tpu.memory_space<vmem>>, vector<1x1x36x288xbf16>
    %10 = vector.shape_cast %9 : vector<1x1x36x288xbf16> to vector<36x288xbf16>
    %cst_11 = arith.constant dense<0.000000e+00> : vector<36x64xf32>
    %11 = tpu.matmul %10, %0, %cst_11 {dimension_numbers = #tpu.dot_dimension_numbers<[1], [0], [0], [1], [0, 0, 1, 1], [], []>} : vector<36x288xbf16>, vector<288x64xbf16>, vector<36x64xf32> -> vector<36x64xf32>
    %12 = vector.broadcast %1 : vector<1x64xf32> to vector<36x64xf32>
    %13 = arith.addf %11, %12 : vector<36x64xf32>
    %cst_12 = arith.constant 0.000000e+00 : f32
    %14 = vector.broadcast %cst_12 : f32 to vector<36x64xf32>
    %15 = arith.maximumf %13, %14 : vector<36x64xf32>
    %16 = arith.maximumf %8, %15 : vector<36x64xf32>
    %c0_13 = arith.constant 0 : index
    %c2 = arith.constant 2 : index
    %c0_14 = arith.constant 0 : index
    %c0_15 = arith.constant 0 : index
    %17 = vector.load %arg1[%c0_13, %c2, %c0_14, %c0_15] : memref<1x4x36x288xbf16, #tpu.memory_space<vmem>>, vector<1x1x36x288xbf16>
    %18 = vector.shape_cast %17 : vector<1x1x36x288xbf16> to vector<36x288xbf16>
    %cst_16 = arith.constant dense<0.000000e+00> : vector<36x64xf32>
    %19 = tpu.matmul %18, %0, %cst_16 {dimension_numbers = #tpu.dot_dimension_numbers<[1], [0], [0], [1], [0, 0, 1, 1], [], []>} : vector<36x288xbf16>, vector<288x64xbf16>, vector<36x64xf32> -> vector<36x64xf32>
    %20 = vector.broadcast %1 : vector<1x64xf32> to vector<36x64xf32>
    %21 = arith.addf %19, %20 : vector<36x64xf32>
    %cst_17 = arith.constant 0.000000e+00 : f32
    %22 = vector.broadcast %cst_17 : f32 to vector<36x64xf32>
    %23 = arith.maximumf %21, %22 : vector<36x64xf32>
    %24 = arith.maximumf %16, %23 : vector<36x64xf32>
    %c0_18 = arith.constant 0 : index
    %c3 = arith.constant 3 : index
    %c0_19 = arith.constant 0 : index
    %c0_20 = arith.constant 0 : index
    %25 = vector.load %arg1[%c0_18, %c3, %c0_19, %c0_20] : memref<1x4x36x288xbf16, #tpu.memory_space<vmem>>, vector<1x1x36x288xbf16>
    %26 = vector.shape_cast %25 : vector<1x1x36x288xbf16> to vector<36x288xbf16>
    %cst_21 = arith.constant dense<0.000000e+00> : vector<36x64xf32>
    %27 = tpu.matmul %26, %0, %cst_21 {dimension_numbers = #tpu.dot_dimension_numbers<[1], [0], [0], [1], [0, 0, 1, 1], [], []>} : vector<36x288xbf16>, vector<288x64xbf16>, vector<36x64xf32> -> vector<36x64xf32>
    %28 = vector.broadcast %1 : vector<1x64xf32> to vector<36x64xf32>
    %29 = arith.addf %27, %28 : vector<36x64xf32>
    %cst_22 = arith.constant 0.000000e+00 : f32
    %30 = vector.broadcast %cst_22 : f32 to vector<36x64xf32>
    %31 = arith.maximumf %29, %30 : vector<36x64xf32>
    %32 = arith.maximumf %24, %31 : vector<36x64xf32>
    %33 = arith.truncf %32 : vector<36x64xf32> to vector<36x64xbf16>
    %c0_23 = arith.constant 0 : index
    %c0_24 = arith.constant 0 : index
    %c0_25 = arith.constant 0 : index
    %34 = vector.load %arg4[%c0_23, %c0_24, %c0_25] : memref<1x36x64xbf16, #tpu.memory_space<vmem>>, vector<1x36x64xbf16>
    %35 = vector.shape_cast %34 : vector<1x36x64xbf16> to vector<36x64xbf16>
    %36 = vector.shape_cast %33 : vector<36x64xbf16> to vector<1x36x64xbf16>
    tpu.vector_store %arg4[%c0_23, %c0_24, %c0_25], %36 {strides = array<i32>} : memref<1x36x64xbf16, #tpu.memory_space<vmem>>, vector<1x36x64xbf16>,
    return
  }
  func.func @transform_0(%arg0: i32) -> (i32, i32, i32, i32) {
    %c0_i32 = arith.constant 0 : i32
    %c0_i32_0 = arith.constant 0 : i32
    %c0_i32_1 = arith.constant 0 : i32
    %c0_i32_2 = arith.constant 0 : i32
    return %arg0, %c0_i32, %c0_i32_0, %c0_i32_1 : i32, i32, i32, i32
  }
  func.func @transform_1(%arg0: i32) -> (i32, i32) {
    %c0_i32 = arith.constant 0 : i32
    %c0_i32_0 = arith.constant 0 : i32
    %c0_i32_1 = arith.constant 0 : i32
    return %c0_i32, %c0_i32_0 : i32, i32
  }
  func.func @transform_2(%arg0: i32) -> (i32, i32) {
    %c0_i32 = arith.constant 0 : i32
    %c0_i32_0 = arith.constant 0 : i32
    %c0_i32_1 = arith.constant 0 : i32
    return %c0_i32, %c0_i32_0 : i32, i32
  }
  func.func @transform_3(%arg0: i32) -> (i32, i32, i32) {
    %c0_i32 = arith.constant 0 : i32
    %c0_i32_0 = arith.constant 0 : i32
    %c0_i32_1 = arith.constant 0 : i32
    return %arg0, %c0_i32, %c0_i32_0 : i32, i32, i32
  }
}

module attributes {stable_mosaic.version = 11 : i64} {
  func.func @_fc_stack_kernel(%arg0: i32, %arg1: memref<2x2304xbf16, #tpu.memory_space<vmem>>, %arg2: memref<2304x640xbf16, #tpu.memory_space<vmem>>, %arg3: memref<1x640xf32, #tpu.memory_space<vmem>>, %arg4: memref<640x128xbf16, #tpu.memory_space<vmem>>, %arg5: memref<1x128xf32, #tpu.memory_space<vmem>>, %arg6: memref<128x10xbf16, #tpu.memory_space<vmem>>, %arg7: memref<1x10xf32, #tpu.memory_space<vmem>>, %arg8: memref<2x10xf32, #tpu.memory_space<vmem>>) attributes {dimension_semantics = [#tpu.dimension_semantics<parallel>], iteration_bounds = array<i64: 1>, scalar_prefetch = 0 : i64, scratch_operands = 0 : i64, tpu.core_type = #tpu.core_type<tc>, window_params = [{transform_indices = @transform_0, window_bounds = array<i64: 2, 2304>}, {pipeline_mode = #tpu.pipeline_mode<synchronous>, transform_indices = @transform_1, window_bounds = array<i64: 2304, 640>}, {pipeline_mode = #tpu.pipeline_mode<synchronous>, transform_indices = @transform_2, window_bounds = array<i64: 1, 640>}, {pipeline_mode = #tpu.pipeline_mode<synchronous>, transform_indices = @transform_3, window_bounds = array<i64: 640, 128>}, {pipeline_mode = #tpu.pipeline_mode<synchronous>, transform_indices = @transform_4, window_bounds = array<i64: 1, 128>}, {pipeline_mode = #tpu.pipeline_mode<synchronous>, transform_indices = @transform_5, window_bounds = array<i64: 128, 10>}, {pipeline_mode = #tpu.pipeline_mode<synchronous>, transform_indices = @transform_6, window_bounds = array<i64: 1, 10>}, {transform_indices = @transform_7, window_bounds = array<i64: 2, 10>}]} {
    %c0 = arith.constant 0 : index
    %c0_0 = arith.constant 0 : index
    %0 = vector.load %arg1[%c0, %c0_0] : memref<2x2304xbf16, #tpu.memory_space<vmem>>, vector<2x2304xbf16>
    %c0_1 = arith.constant 0 : index
    %c0_2 = arith.constant 0 : index
    %1 = vector.load %arg2[%c0_1, %c0_2] : memref<2304x640xbf16, #tpu.memory_space<vmem>>, vector<2304x640xbf16>
    %cst = arith.constant dense<0.000000e+00> : vector<2x640xf32>
    %2 = tpu.matmul %0, %1, %cst {dimension_numbers = #tpu.dot_dimension_numbers<[1], [0], [0], [1], [0, 0, 1, 1], [], []>} : vector<2x2304xbf16>, vector<2304x640xbf16>, vector<2x640xf32> -> vector<2x640xf32>
    %c0_3 = arith.constant 0 : index
    %c0_4 = arith.constant 0 : index
    %3 = vector.load %arg3[%c0_3, %c0_4] : memref<1x640xf32, #tpu.memory_space<vmem>>, vector<1x640xf32>
    %4 = vector.broadcast %3 : vector<1x640xf32> to vector<2x640xf32>
    %5 = arith.addf %2, %4 : vector<2x640xf32>
    %6 = arith.truncf %5 : vector<2x640xf32> to vector<2x640xbf16>
    %c0_5 = arith.constant 0 : index
    %c0_6 = arith.constant 0 : index
    %7 = vector.load %arg4[%c0_5, %c0_6] : memref<640x128xbf16, #tpu.memory_space<vmem>>, vector<640x128xbf16>
    %cst_7 = arith.constant dense<0.000000e+00> : vector<2x128xf32>
    %8 = tpu.matmul %6, %7, %cst_7 {dimension_numbers = #tpu.dot_dimension_numbers<[1], [0], [0], [1], [0, 0, 1, 1], [], []>} : vector<2x640xbf16>, vector<640x128xbf16>, vector<2x128xf32> -> vector<2x128xf32>
    %c0_8 = arith.constant 0 : index
    %c0_9 = arith.constant 0 : index
    %9 = vector.load %arg5[%c0_8, %c0_9] : memref<1x128xf32, #tpu.memory_space<vmem>>, vector<1x128xf32>
    %10 = vector.broadcast %9 : vector<1x128xf32> to vector<2x128xf32>
    %11 = arith.addf %8, %10 : vector<2x128xf32>
    %12 = arith.truncf %11 : vector<2x128xf32> to vector<2x128xbf16>
    %c0_10 = arith.constant 0 : index
    %c0_11 = arith.constant 0 : index
    %13 = vector.load %arg6[%c0_10, %c0_11] : memref<128x10xbf16, #tpu.memory_space<vmem>>, vector<128x10xbf16>
    %cst_12 = arith.constant dense<0.000000e+00> : vector<2x10xf32>
    %14 = tpu.matmul %12, %13, %cst_12 {dimension_numbers = #tpu.dot_dimension_numbers<[1], [0], [0], [1], [0, 0, 1, 1], [], []>} : vector<2x128xbf16>, vector<128x10xbf16>, vector<2x10xf32> -> vector<2x10xf32>
    %c0_13 = arith.constant 0 : index
    %c0_14 = arith.constant 0 : index
    %15 = vector.load %arg7[%c0_13, %c0_14] : memref<1x10xf32, #tpu.memory_space<vmem>>, vector<1x10xf32>
    %16 = vector.broadcast %15 : vector<1x10xf32> to vector<2x10xf32>
    %17 = arith.addf %14, %16 : vector<2x10xf32>
    %c0_15 = arith.constant 0 : index
    %c0_16 = arith.constant 0 : index
    %18 = vector.load %arg8[%c0_15, %c0_16] : memref<2x10xf32, #tpu.memory_space<vmem>>, vector<2x10xf32>
    tpu.vector_store %arg8[%c0_15, %c0_16], %17 {strides = array<i32>} : memref<2x10xf32, #tpu.memory_space<vmem>>, vector<2x10xf32>,
    return
  }
  func.func @transform_0(%arg0: i32) -> (i32, i32) {
    %c0_i32 = arith.constant 0 : i32
    %c0_i32_0 = arith.constant 0 : i32
    return %arg0, %c0_i32 : i32, i32
  }
  func.func @transform_1(%arg0: i32) -> (i32, i32) {
    %c0_i32 = arith.constant 0 : i32
    %c0_i32_0 = arith.constant 0 : i32
    %c0_i32_1 = arith.constant 0 : i32
    return %c0_i32, %c0_i32_0 : i32, i32
  }
  func.func @transform_2(%arg0: i32) -> (i32, i32) {
    %c0_i32 = arith.constant 0 : i32
    %c0_i32_0 = arith.constant 0 : i32
    %c0_i32_1 = arith.constant 0 : i32
    return %c0_i32, %c0_i32_0 : i32, i32
  }
  func.func @transform_3(%arg0: i32) -> (i32, i32) {
    %c0_i32 = arith.constant 0 : i32
    %c0_i32_0 = arith.constant 0 : i32
    %c0_i32_1 = arith.constant 0 : i32
    return %c0_i32, %c0_i32_0 : i32, i32
  }
  func.func @transform_4(%arg0: i32) -> (i32, i32) {
    %c0_i32 = arith.constant 0 : i32
    %c0_i32_0 = arith.constant 0 : i32
    %c0_i32_1 = arith.constant 0 : i32
    return %c0_i32, %c0_i32_0 : i32, i32
  }
  func.func @transform_5(%arg0: i32) -> (i32, i32) {
    %c0_i32 = arith.constant 0 : i32
    %c0_i32_0 = arith.constant 0 : i32
    %c0_i32_1 = arith.constant 0 : i32
    return %c0_i32, %c0_i32_0 : i32, i32
  }
  func.func @transform_6(%arg0: i32) -> (i32, i32) {
    %c0_i32 = arith.constant 0 : i32
    %c0_i32_0 = arith.constant 0 : i32
    %c0_i32_1 = arith.constant 0 : i32
    return %c0_i32, %c0_i32_0 : i32, i32
  }
  func.func @transform_7(%arg0: i32) -> (i32, i32) {
    %c0_i32 = arith.constant 0 : i32
    %c0_i32_0 = arith.constant 0 : i32
    return %arg0, %c0_i32 : i32, i32
  }
}

</mosaic_0001>

<bundles_post_ra>
// kernel: fashion_cnn_forward.3
= control target key start
LH: loop header
LB: loop body
LE: loop exit
PB: predicated region body
PF: predicated region fallthrough
CT: control target
= control target key end

     0   :  { %s2412_s12 = smov 0   ;;  %s3084_s0 = inlined_call_operand.vmem [shape: f32[2,4,196,9], index: 0, kind: input, shape index: {}]   ;;  %s3085_s1 = inlined_call_operand.vmem [shape: f32[9,32], index: 1, kind: input, shape index: {}]   ;;  %s3086_s2 = inlined_call_operand.vmem [shape: f32[1,32], index: 2, kind: input, shape index: {}]   ;;  %s3087_s3 = inlined_call_operand.vmem [shape: bf16[2,196,32], index: 3, kind: output, shape index: {}]  }
   0x1 LB: > { %s1706_s13 = sadd.s32 4294967295, %s2388_s12   ;;  %p1710_p0 = scmp.ge.s32.totalorder %s2388_s12, 1  ;;  %s2388_s12 = sphi %s2412_s12, %s13_s12  }
   0x2   : > { %p137_p1 = scmp.lt.s32.totalorder %s2388_s12, 3 }
   0x4   : > { %p138_p2 = pnand %p1710_p0, %p137_p1 }
   0x5   : > { %p161_p3 = scmp.lt.s32.totalorder (!%p138_p2), %s1706_s13, 1 }
   0x6   : > { %141 = sbr.rel (%p138_p2) target bundleno = 418 (0x1a2), region = 32 }
   0xb   : > { %v172_v0 = vld [vmem:[%s3085_s1 + $0x8] sm:$0x1]  ;;  %vm281_vm0 = vcmask 1040384   ;;  %v2390_v1 = vmov 0.0   ;;  %v171_v2 = vld [vmem:[%s3085_s1] sm:$0xff]  ;;  %s3089_s13 = smov (!%p161_p3, %s1706_s13), 1 }
   0xc   : > { %2053 = vmatprep.subr.mxu0 %v2390_v1  ;;  %2132 = vmatprep.subr.mxu1 %v2390_v1  ;;  %vm2391_vm1 = vmmov 0   ;;  %s2369_s18 = smul.u32 800, %s3089_s13  ;;  %vm205_vm2 = vcmask 72704   ;;  %vm1624_vm3 = vcmask 257024   ;;  %vm1649_vm4 = vcmask 254976  }
   0xd   : > { %2054 = vmatpush3.msk.msra.mxu0 %vm281_vm0, %v172_v0  ;;  %2133 = vmatpush3.msk.msra.mxu1 %vm281_vm0, %v172_v0  ;;  %s2370_s24 = smul.u32 100, %s3089_s13 }
   0xe   : > { %2055 = vmatprep.subr.mxu0 %v2390_v1  ;;  %2134 = vmatprep.subr.mxu1 %v2390_v1  ;;  %s2444_s21 = scalar_lea.vmem %s3084_s0, %s2369_s18 }
   0xf   : > { %2056 = vmatpush3.msra.mxu0 %v171_v2  ;;  %2057 = vmatprep.mubr.msk.f32.mxu0 %vm2391_vm1, %v2390_v1  ;;  %v174_v3 = vld [vmem:[%s2444_s21] sm:$0xff]  ;;  %v1740_v4 = vld [vmem:[%s2444_s21 + $0xc8] sm:$0xff]  ;;  %v1741_v6 = vld [vmem:[%s2444_s21 + $0xd0] sm:$0xff]  ;;  %s2960_s27 = scalar_lea.vmem %s3087_s3, %s2370_s24 }
  0x10   : > { %2135 = vmatpush3.msra.mxu1 %v171_v2  ;;  %2136 = vmatprep.mubr.msk.f32.mxu1 %vm2391_vm1, %v2390_v1  ;;  %v175_v5 = vld [vmem:[%s2444_s21 + $0x8] sm:$0xff]  ;;  %v176_v7 = vld [vmem:[%s2444_s21 + $0x10] sm:$0xff]  ;;  %v1742_v8 = vld [vmem:[%s2444_s21 + $0xd8] sm:$0xff] }
  0x11   : > { %2211 = vmatprep.subr.mxu0 %v2390_v1  ;;  %2290 = vmatprep.subr.mxu1 %v2390_v1  ;;  %v177_v9 = vld [vmem:[%s2444_s21 + $0x18] sm:$0xff]  ;;  %v1743_v10 = vld [vmem:[%s2444_s21 + $0xe0] sm:$0xff]  ;;  %v1744_v12 = vld [vmem:[%s2444_s21 + $0xe8] sm:$0xff] }
  0x12   : > { %2058 = vmatmul.mubr.msk.f32.vlgmr.msra.gmra.mxu0 %vm205_vm2, %v174_v3  ;;  %2137 = vmatmul.mubr.msk.f32.vlgmr.msra.gmra.mxu1 %vm205_vm2, %v1740_v4  ;;  %v178_v11 = vld [vmem:[%s2444_s21 + $0x20] sm:$0xff]  ;;  %v179_v13 = vld [vmem:[%s2444_s21 + $0x28] sm:$0xff]  ;;  %v1745_v14 = vld [vmem:[%s2444_s21 + $0xf0] sm:$0xff] }
  0x13   : > { %2212 = vmatpush3.msk.msra.mxu0 %vm281_vm0, %v172_v0  ;;  %2291 = vmatpush3.msk.msra.mxu1 %vm281_vm0, %v172_v0  ;;  %v180_v15 = vld [vmem:[%s2444_s21 + $0x30] sm:$0xff]  ;;  %v1746_v16 = vld [vmem:[%s2444_s21 + $0xf8] sm:$0xff]  ;;  %v1747_v18 = vld [vmem:[%s2444_s21 + $0x100] sm:$0xff] }
  0x14   : > { %2060 = vmatprep.mubr.msk.f32.mxu0 %vm2391_vm1, %v2390_v1  ;;  %2139 = vmatprep.mubr.msk.f32.mxu1 %vm2391_vm1, %v2390_v1  ;;  %v181_v17 = vld [vmem:[%s2444_s21 + $0x38] sm:$0xff]  ;;  %v182_v19 = vld [vmem:[%s2444_s21 + $0x40] sm:$0xff]  ;;  %v1748_v20 = vld [vmem:[%s2444_s21 + $0x108] sm:$0xff] }
  0x15   : > { %2213 = vmatprep.subr.mxu0 %v2390_v1  ;;  %2292 = vmatprep.subr.mxu1 %v2390_v1  ;;  %v183_v21 = vld [vmem:[%s2444_s21 + $0x48] sm:$0xff]  ;;  %v1749_v22 = vld [vmem:[%s2444_s21 + $0x110] sm:$0xff]  ;;  %v1750_v24 = vld [vmem:[%s2444_s21 + $0x118] sm:$0xff] }
  0x16   : > { %2061 = vmatmul.mubr.msk.f32.gmra.mxu0 %vm205_vm2, %v175_v5  ;;  %2140 = vmatmul.mubr.msk.f32.gmra.mxu1 %vm205_vm2, %v1741_v6  ;;  %v184_v23 = vld [vmem:[%s2444_s21 + $0x50] sm:$0xff]  ;;  %v185_v25 = vld [vmem:[%s2444_s21 + $0x58] sm:$0xff]  ;;  %v1751_v26 = vld [vmem:[%s2444_s21 + $0x120] sm:$0xff] }
  0x17   : > { %2063 = vmatprep.mubr.msk.f32.mxu0 %vm2391_vm1, %v2390_v1  ;;  %2142 = vmatprep.mubr.msk.f32.mxu1 %vm2391_vm1, %v2390_v1  ;;  %v186_v27 = vld [vmem:[%s2444_s21 + $0x60] sm:$0xff]  ;;  %v1752_v28 = vld [vmem:[%s2444_s21 + $0x128] sm:$0xff]  ;;  %v1753_v30 = vld [vmem:[%s2444_s21 + $0x130] sm:$0xff] }
  0x18   : > { %2214 = vmatpush3.msra.mxu0 %v171_v2  ;;  %2293 = vmatpush3.msra.mxu1 %v171_v2  ;;  %v187_v29 = vld [vmem:[%s2444_s21 + $0x68] sm:$0xff]  ;;  %v188_v31 = vld [vmem:[%s2444_s21 + $0x70] sm:$0xff]  ;;  %v1754_v32 = vld [vmem:[%s2444_s21 + $0x138] sm:$0xff] }
  0x19   : > { %v189_v33 = vld [vmem:[%s2444_s21 + $0x78] sm:$0xff]  ;;  %v1755_v34 = vld [vmem:[%s2444_s21 + $0x140] sm:$0xff]  ;;  %v1756_v36 = vld [vmem:[%s2444_s21 + $0x148] sm:$0xff] }
  0x1a   : > { %2064 = vmatmul.mubr.msk.f32.gmra.mxu0 %vm205_vm2, %v176_v7  ;;  %2143 = vmatmul.mubr.msk.f32.gmra.mxu1 %vm205_vm2, %v1742_v8  ;;  %v190_v35 = vld [vmem:[%s2444_s21 + $0x80] sm:$0xff]  ;;  %v191_v37 = vld [vmem:[%s2444_s21 + $0x88] sm:$0xff]  ;;  %v1757_v38 = vld [vmem:[%s2444_s21 + $0x150] sm:$0xff] }
  0x1b   : > { %2066 = vmatprep.mubr.msk.f32.mxu0 %vm2391_vm1, %v2390_v1  ;;  %2145 = vmatprep.mubr.msk.f32.mxu1 %vm2391_vm1, %v2390_v1  ;;  %v192_v39 = vld [vmem:[%s2444_s21 + $0x90] sm:$0xff]  ;;  %v1758_v40 = vld [vmem:[%s2444_s21 + $0x158] sm:$0xff]  ;;  %v1759_v42 = vld [vmem:[%s2444_s21 + $0x160] sm:$0xff] }
  0x1c   : > { %v193_v41 = vld [vmem:[%s2444_s21 + $0x98] sm:$0xff]  ;;  %v194_v43 = vld [vmem:[%s2444_s21 + $0xa0] sm:$0xff]  ;;  %v1760_v44 = vld [vmem:[%s2444_s21 + $0x168] sm:$0xff] }
  0x1d   : > { %v195_v45 = vld [vmem:[%s2444_s21 + $0xa8] sm:$0xff]  ;;  %v1761_v46 = vld [vmem:[%s2444_s21 + $0x170] sm:$0xff]  ;;  %v1762_v48 = vld [vmem:[%s2444_s21 + $0x178] sm:$0xff] }
  0x1e   : > { %2067 = vmatmul.mubr.msk.f32.gmra.mxu0 %vm205_vm2, %v177_v9  ;;  %2146 = vmatmul.mubr.msk.f32.gmra.mxu1 %vm205_vm2, %v1743_v10  ;;  %v196_v47 = vld [vmem:[%s2444_s21 + $0xb0] sm:$0xff]  ;;  %v197_v49 = vld [vmem:[%s2444_s21 + $0xb8] sm:$0xff]  ;;  %v1763_v50 = vld [vmem:[%s2444_s21 + $0x180] sm:$0xff] }
  0x1f   : > { %2069 = vmatprep.mubr.msk.f32.mxu0 %vm2391_vm1, %v2390_v1  ;;  %2148 = vmatprep.mubr.msk.f32.mxu1 %vm2391_vm1, %v2390_v1  ;;  %v198_v51 = vld [vmem:[%s2444_s21 + $0xc0] sm:$0xf]  ;;  %v1764_v52 = vld [vmem:[%s2444_s21 + $0x188] sm:$0xf]  ;;  %v1791_v53 = vld [vmem:[%s2444_s21 + $0x190] sm:$0xff] }
  0x20   : > { %v1842_v54 = vld [vmem:[%s2444_s21 + $0x258] sm:$0xff]  ;;  %v1843_v56 = vld [vmem:[%s2444_s21 + $0x260] sm:$0xff]  ;;  %v1844_v58 = vld [vmem:[%s2444_s21 + $0x268] sm:$0xff] }
  0x21   : > { %v1792_v55 = vld [vmem:[%s2444_s21 + $0x198] sm:$0xff]  ;;  %v1793_v57 = vld [vmem:[%s2444_s21 + $0x1a0] sm:$0xff]  ;;  %v1794_v59 = vld [vmem:[%s2444_s21 + $0x1a8] sm:$0xff] }
  0x22   : > { %2070 = vmatmul.mubr.msk.f32.gmra.mxu0 %vm205_vm2, %v178_v11  ;;  %2149 = vmatmul.mubr.msk.f32.gmra.mxu1 %vm205_vm2, %v1744_v12  ;;  %v1845_v60 = vld [vmem:[%s2444_s21 + $0x270] sm:$0xff]  ;;  %v1846_v62 = vld [vmem:[%s2444_s21 + $0x278] sm:$0xff]  ;;  %v1847_v0 = vld [vmem:[%s2444_s21 + $0x280] sm:$0xff] }
  0x23   : > { %2072 = vmatprep.mubr.msk.f32.mxu0 %vm2391_vm1, %v2390_v1  ;;  %2151 = vmatprep.mubr.msk.f32.mxu1 %vm2391_vm1, %v2390_v1  ;;  %v1795_v61 = vld [vmem:[%s2444_s21 + $0x1b0] sm:$0xff]  ;;  %v1796_v63 = vld [vmem:[%s2444_s21 + $0x1b8] sm:$0xff]  ;;  %v1797_v2 = vld [vmem:[%s2444_s21 + $0x1c0] sm:$0xff] }
  0x24   : > { %v1848_v3 = vld [vmem:[%s2444_s21 + $0x288] sm:$0xff]  ;;  %v1849_v5 = vld [vmem:[%s2444_s21 + $0x290] sm:$0xff]  ;;  %v1850_v7 = vld [vmem:[%s2444_s21 + $0x298] sm:$0xff] }
  0x25   : > { %v1798_v4 = vld [vmem:[%s2444_s21 + $0x1c8] sm:$0xff]  ;;  %v1799_v6 = vld [vmem:[%s2444_s21 + $0x1d0] sm:$0xff]  ;;  %v1800_v8 = vld [vmem:[%s2444_s21 + $0x1d8] sm:$0xff] }
  0x26   : > { %2073 = vmatmul.mubr.msk.f32.gmra.mxu0 %vm205_vm2, %v179_v13  ;;  %2152 = vmatmul.mubr.msk.f32.gmra.mxu1 %vm205_vm2, %v1745_v14  ;;  %v1851_v9 = vld [vmem:[%s2444_s21 + $0x2a0] sm:$0xff]  ;;  %v1852_v11 = vld [vmem:[%s2444_s21 + $0x2a8] sm:$0xff]  ;;  %v1853_v13 = vld [vmem:[%s2444_s21 + $0x2b0] sm:$0xff] }
  0x27   : > { %2075 = vmatprep.mubr.msk.f32.mxu0 %vm2391_vm1, %v2390_v1  ;;  %2154 = vmatprep.mubr.msk.f32.mxu1 %vm2391_vm1, %v2390_v1  ;;  %v1801_v10 = vld [vmem:[%s2444_s21 + $0x1e0] sm:$0xff]  ;;  %v1802_v12 = vld [vmem:[%s2444_s21 + $0x1e8] sm:$0xff]  ;;  %v1803_v14 = vld [vmem:[%s2444_s21 + $0x1f0] sm:$0xff] }
  0x2a   : > { %2076 = vmatmul.mubr.msk.f32.gmra.mxu0 %vm205_vm2, %v180_v15  ;;  %2155 = vmatmul.mubr.msk.f32.gmra.mxu1 %vm205_vm2, %v1746_v16  ;;  %v1854_v15 = vld [vmem:[%s2444_s21 + $0x2b8] sm:$0xff] }
  0x2b   : > { %2078 = vmatprep.mubr.msk.f32.mxu0 %vm2391_vm1, %v2390_v1  ;;  %2157 = vmatprep.mubr.msk.f32.mxu1 %vm2391_vm1, %v2390_v1  ;;  %v1804_v16 = vld [vmem:[%s2444_s21 + $0x1f8] sm:$0xff] }
  0x2e   : > { %2079 = vmatmul.mubr.msk.f32.gmra.mxu0 %vm205_vm2, %v181_v17  ;;  %2158 = vmatmul.mubr.msk.f32.gmra.mxu1 %vm205_vm2, %v1747_v18  ;;  %v1855_v17 = vld [vmem:[%s2444_s21 + $0x2c0] sm:$0xff] }
  0x2f   : > { %2081 = vmatprep.mubr.msk.f32.mxu0 %vm2391_vm1, %v2390_v1  ;;  %2160 = vmatprep.mubr.msk.f32.mxu1 %vm2391_vm1, %v2390_v1  ;;  %v1805_v18 = vld [vmem:[%s2444_s21 + $0x200] sm:$0xff] }
  0x32   : > { %2082 = vmatmul.mubr.msk.f32.gmra.mxu0 %vm205_vm2, %v182_v19  ;;  %2161 = vmatmul.mubr.msk.f32.gmra.mxu1 %vm205_vm2, %v1748_v20  ;;  %v1856_v19 = vld [vmem:[%s2444_s21 + $0x2c8] sm:$0xff] }
  0x33   : > { %2084 = vmatprep.mubr.msk.f32.mxu0 %vm2391_vm1, %v2390_v1  ;;  %2163 = vmatprep.mubr.msk.f32.mxu1 %vm2391_vm1, %v2390_v1  ;;  %v1806_v20 = vld [vmem:[%s2444_s21 + $0x208] sm:$0xff] }
  0x36   : > { %2085 = vmatmul.mubr.msk.f32.gmra.mxu0 %vm205_vm2, %v183_v21  ;;  %2164 = vmatmul.mubr.msk.f32.gmra.mxu1 %vm205_vm2, %v1749_v22  ;;  %v1857_v21 = vld [vmem:[%s2444_s21 + $0x2d0] sm:$0xff] }
  0x37   : > { %2087 = vmatprep.mubr.msk.f32.mxu0 %vm2391_vm1, %v2390_v1  ;;  %2166 = vmatprep.mubr.msk.f32.mxu1 %vm2391_vm1, %v2390_v1  ;;  %v1807_v22 = vld [vmem:[%s2444_s21 + $0x210] sm:$0xff] }
  0x3a   : > { %2088 = vmatmul.mubr.msk.f32.gmra.mxu0 %vm205_vm2, %v184_v23  ;;  %2167 = vmatmul.mubr.msk.f32.gmra.mxu1 %vm205_vm2, %v1750_v24  ;;  %v1858_v23 = vld [vmem:[%s2444_s21 + $0x2d8] sm:$0xff] }
  0x3b   : > { %2090 = vmatprep.mubr.msk.f32.mxu0 %vm2391_vm1, %v2390_v1  ;;  %2169 = vmatprep.mubr.msk.f32.mxu1 %vm2391_vm1, %v2390_v1  ;;  %v1808_v24 = vld [vmem:[%s2444_s21 + $0x218] sm:$0xff] }
  0x3e   : > { %2091 = vmatmul.mubr.msk.f32.gmra.mxu0 %vm205_vm2, %v185_v25  ;;  %2170 = vmatmul.mubr.msk.f32.gmra.mxu1 %vm205_vm2, %v1751_v26  ;;  %v1859_v25 = vld [vmem:[%s2444_s21 + $0x2e0] sm:$0xff] }
  0x3f   : > { %2093 = vmatprep.mubr.msk.f32.mxu0 %vm2391_vm1, %v2390_v1  ;;  %2172 = vmatprep.mubr.msk.f32.mxu1 %vm2391_vm1, %v2390_v1  ;;  %v1809_v26 = vld [vmem:[%s2444_s21 + $0x220] sm:$0xff] }
  0x42   : > { %2094 = vmatmul.mubr.msk.f32.gmra.mxu0 %vm205_vm2, %v186_v27  ;;  %2173 = vmatmul.mubr.msk.f32.gmra.mxu1 %vm205_vm2, %v1752_v28  ;;  %v1860_v27 = vld [vmem:[%s2444_s21 + $0x2e8] sm:$0xff] }
  0x43   : > { %2096 = vmatprep.mubr.msk.f32.mxu0 %vm2391_vm1, %v2390_v1  ;;  %2175 = vmatprep.mubr.msk.f32.mxu1 %vm2391_vm1, %v2390_v1  ;;  %v1810_v28 = vld [vmem:[%s2444_s21 + $0x228] sm:$0xff] }
  0x46   : > { %2097 = vmatmul.mubr.msk.f32.gmra.mxu0 %vm205_vm2, %v187_v29  ;;  %2176 = vmatmul.mubr.msk.f32.gmra.mxu1 %vm205_vm2, %v1753_v30  ;;  %v1861_v29 = vld [vmem:[%s2444_s21 + $0x2f0] sm:$0xff] }
  0x47   : > { %2099 = vmatprep.mubr.msk.f32.mxu0 %vm2391_vm1, %v2390_v1  ;;  %2178 = vmatprep.mubr.msk.f32.mxu1 %vm2391_vm1, %v2390_v1  ;;  %v1811_v30 = vld [vmem:[%s2444_s21 + $0x230] sm:$0xff] }
  0x4a   : > { %2100 = vmatmul.mubr.msk.f32.gmra.mxu0 %vm205_vm2, %v188_v31  ;;  %2179 = vmatmul.mubr.msk.f32.gmra.mxu1 %vm205_vm2, %v1754_v32  ;;  %v1862_v31 = vld [vmem:[%s2444_s21 + $0x2f8] sm:$0xff] }
  0x4b   : > { %2102 = vmatprep.mubr.msk.f32.mxu0 %vm2391_vm1, %v2390_v1  ;;  %2181 = vmatprep.mubr.msk.f32.mxu1 %vm2391_vm1, %v2390_v1  ;;  %v1812_v32 = vld [vmem:[%s2444_s21 + $0x238] sm:$0xff] }
  0x4e   : > { %2103 = vmatmul.mubr.msk.f32.gmra.mxu0 %vm205_vm2, %v189_v33  ;;  %2182 = vmatmul.mubr.msk.f32.gmra.mxu1 %vm205_vm2, %v1755_v34  ;;  %v1863_v33 = vld [vmem:[%s2444_s21 + $0x300] sm:$0xff] }
  0x4f   : > { %2105 = vmatprep.mubr.msk.f32.mxu0 %vm2391_vm1, %v2390_v1  ;;  %2184 = vmatprep.mubr.msk.f32.mxu1 %vm2391_vm1, %v2390_v1  ;;  %v1813_v34 = vld [vmem:[%s2444_s21 + $0x240] sm:$0xff] }
  0x52   : > { %2106 = vmatmul.mubr.msk.f32.gmra.mxu0 %vm205_vm2, %v190_v35  ;;  %2185 = vmatmul.mubr.msk.f32.gmra.mxu1 %vm205_vm2, %v1756_v36  ;;  %v1864_v35 = vld [vmem:[%s2444_s21 + $0x308] sm:$0xff] }
  0x53   : > { %2108 = vmatprep.mubr.msk.f32.mxu0 %vm2391_vm1, %v2390_v1  ;;  %2187 = vmatprep.mubr.msk.f32.mxu1 %vm2391_vm1, %v2390_v1  ;;  %v1814_v36 = vld [vmem:[%s2444_s21 + $0x248] sm:$0xff] }
  0x56   : > { %2109 = vmatmul.mubr.msk.f32.gmra.mxu0 %vm205_vm2, %v191_v37  ;;  %2188 = vmatmul.mubr.msk.f32.gmra.mxu1 %vm205_vm2, %v1757_v38  ;;  %v1865_v37 = vld [vmem:[%s2444_s21 + $0x310] sm:$0xff]  ;;  %v2839_v38 = vld [vmem:[%s3086_s2] ss:$0 sm:$0xff] }
  0x57   : > { %2111 = vmatprep.mubr.msk.f32.mxu0 %vm2391_vm1, %v2390_v1  ;;  %2190 = vmatprep.mubr.msk.f32.mxu1 %vm2391_vm1, %v2390_v1 }
  0x5a   : > { %2112 = vmatmul.mubr.msk.f32.gmra.mxu0 %vm205_vm2, %v192_v39  ;;  %2191 = vmatmul.mubr.msk.f32.gmra.mxu1 %vm205_vm2, %v1758_v40 }
  0x5b   : > { %2114 = vmatprep.mubr.msk.f32.mxu0 %vm2391_vm1, %v2390_v1  ;;  %2193 = vmatprep.mubr.msk.f32.mxu1 %vm2391_vm1, %v2390_v1 }
  0x5e   : > { %2115 = vmatmul.mubr.msk.f32.gmra.mxu0 %vm205_vm2, %v193_v41  ;;  %2194 = vmatmul.mubr.msk.f32.gmra.mxu1 %vm205_vm2, %v1759_v42 }
  0x5f   : > { %2117 = vmatprep.mubr.msk.f32.mxu0 %vm2391_vm1, %v2390_v1  ;;  %2196 = vmatprep.mubr.msk.f32.mxu1 %vm2391_vm1, %v2390_v1 }
  0x62   : > { %2118 = vmatmul.mubr.msk.f32.gmra.mxu0 %vm205_vm2, %v194_v43  ;;  %2197 = vmatmul.mubr.msk.f32.gmra.mxu1 %vm205_vm2, %v1760_v44  ;;  %v1815_v43 = vld [vmem:[%s2444_s21 + $0x250] sm:$0xf]  ;;  %v1866_v44 = vld [vmem:[%s2444_s21 + $0x318] sm:$0xf] }
  0x63   : > { %2120 = vmatprep.mubr.msk.f32.mxu0 %vm2391_vm1, %v2390_v1  ;;  %2199 = vmatprep.mubr.msk.f32.mxu1 %vm2391_vm1, %v2390_v1 }
  0x66   : > { %2121 = vmatmul.mubr.msk.f32.gmra.mxu0 %vm205_vm2, %v195_v45  ;;  %2200 = vmatmul.mubr.msk.f32.gmra.mxu1 %vm205_vm2, %v1761_v46 }
  0x67   : > { %2123 = vmatprep.mubr.msk.f32.mxu0 %vm2391_vm1, %v2390_v1  ;;  %2202 = vmatprep.mubr.msk.f32.mxu1 %vm2391_vm1, %v2390_v1 }
  0x6a   : > { %2124 = vmatmul.mubr.msk.f32.gmra.mxu0 %vm205_vm2, %v196_v47  ;;  %2203 = vmatmul.mubr.msk.f32.gmra.mxu1 %vm205_vm2, %v1762_v48 }
  0x6b   : > { %2126 = vmatprep.mubr.msk.f32.mxu0 %vm2391_vm1, %v2390_v1  ;;  %2205 = vmatprep.mubr.msk.f32.mxu1 %vm2391_vm1, %v2390_v1 }
  0x6e   : > { %2127 = vmatmul.mubr.msk.f32.gmra.mxu0 %vm205_vm2, %v197_v49  ;;  %2206 = vmatmul.mubr.msk.f32.gmra.mxu1 %vm205_vm2, %v1763_v50 }
  0x6f   : > { %2129 = vmatprep.mubr.msk.f32.mxu0 %vm2391_vm1, %v2390_v1  ;;  %2208 = vmatprep.mubr.msk.f32.mxu1 %vm2391_vm1, %v2390_v1 }
  0x72   : > { %2130 = vmatmul.mubr.msk.f32.gmra.mxu0 %vm205_vm2, %v198_v51  ;;  %2209 = vmatmul.mubr.msk.f32.gmra.mxu1 %vm205_vm2, %v1764_v52 }
  0x73   : > { %2215 = vmatprep.mubr.msk.f32.mxu0 %vm2391_vm1, %v2390_v1  ;;  %2294 = vmatprep.mubr.msk.f32.mxu1 %vm2391_vm1, %v2390_v1 }
  0x76   : > { %2216 = vmatmul.mubr.msk.f32.vlgmr.msra.gmra.mxu0 %vm205_vm2, %v1791_v53  ;;  %2295 = vmatmul.mubr.msk.f32.vlgmr.msra.gmra.mxu1 %vm205_vm2, %v1842_v54 }
  0x77   : > { %2218 = vmatprep.mubr.msk.f32.mxu0 %vm2391_vm1, %v2390_v1  ;;  %2297 = vmatprep.mubr.msk.f32.mxu1 %vm2391_vm1, %v2390_v1 }
  0x7a   : > { %2219 = vmatmul.mubr.msk.f32.gmra.mxu0 %vm205_vm2, %v1792_v55  ;;  %2298 = vmatmul.mubr.msk.f32.gmra.mxu1 %vm205_vm2, %v1843_v56 }
  0x7b   : > { %2221 = vmatprep.mubr.msk.f32.mxu0 %vm2391_vm1, %v2390_v1  ;;  %2300 = vmatprep.mubr.msk.f32.mxu1 %vm2391_vm1, %v2390_v1 }
  0x7e   : > { %2222 = vmatmul.mubr.msk.f32.gmra.mxu0 %vm205_vm2, %v1793_v57  ;;  %2301 = vmatmul.mubr.msk.f32.gmra.mxu1 %vm205_vm2, %v1844_v58 }
  0x7f   : > { %2224 = vmatprep.mubr.msk.f32.mxu0 %vm2391_vm1, %v2390_v1  ;;  %2303 = vmatprep.mubr.msk.f32.mxu1 %vm2391_vm1, %v2390_v1 }
  0x82   : > { %2225 = vmatmul.mubr.msk.f32.gmra.mxu0 %vm205_vm2, %v1794_v59  ;;  %2304 = vmatmul.mubr.msk.f32.gmra.mxu1 %vm205_vm2, %v1845_v60 }
  0x83   : > { %2227 = vmatprep.mubr.msk.f32.mxu0 %vm2391_vm1, %v2390_v1  ;;  %2306 = vmatprep.mubr.msk.f32.mxu1 %vm2391_vm1, %v2390_v1 }
  0x86   : > { %2228 = vmatmul.mubr.msk.f32.gmra.mxu0 %vm205_vm2, %v1795_v61  ;;  %2307 = vmatmul.mubr.msk.f32.gmra.mxu1 %vm205_vm2, %v1846_v62 }
  0x87   : > { %2230 = vmatprep.mubr.msk.f32.mxu0 %vm2391_vm1, %v2390_v1  ;;  %2309 = vmatprep.mubr.msk.f32.mxu1 %vm2391_vm1, %v2390_v1 }
  0x8a   : > { %2231 = vmatmul.mubr.msk.f32.gmra.mxu0 %vm205_vm2, %v1796_v63  ;;  %2310 = vmatmul.mubr.msk.f32.gmra.mxu1 %vm205_vm2, %v1847_v0 }
  0x8b   : > { %2233 = vmatprep.mubr.msk.f32.mxu0 %vm2391_vm1, %v2390_v1  ;;  %2312 = vmatprep.mubr.msk.f32.mxu1 %vm2391_vm1, %v2390_v1 }
  0x8e   : > { %2234 = vmatmul.mubr.msk.f32.gmra.mxu0 %vm205_vm2, %v1797_v2  ;;  %2313 = vmatmul.mubr.msk.f32.gmra.mxu1 %vm205_vm2, %v1848_v3 }
  0x8f   : > { %2236 = vmatprep.mubr.msk.f32.mxu0 %vm2391_vm1, %v2390_v1  ;;  %2315 = vmatprep.mubr.msk.f32.mxu1 %vm2391_vm1, %v2390_v1 }
  0x92   : > { %2237 = vmatmul.mubr.msk.f32.gmra.mxu0 %vm205_vm2, %v1798_v4  ;;  %2316 = vmatmul.mubr.msk.f32.gmra.mxu1 %vm205_vm2, %v1849_v5 }
  0x93   : > { %2239 = vmatprep.mubr.msk.f32.mxu0 %vm2391_vm1, %v2390_v1  ;;  %2318 = vmatprep.mubr.msk.f32.mxu1 %vm2391_vm1, %v2390_v1 }
  0x96   : > { %2240 = vmatmul.mubr.msk.f32.gmra.mxu0 %vm205_vm2, %v1799_v6  ;;  %2319 = vmatmul.mubr.msk.f32.gmra.mxu1 %vm205_vm2, %v1850_v7 }
  0x97   : > { %2242 = vmatprep.mubr.msk.f32.mxu0 %vm2391_vm1, %v2390_v1  ;;  %2321 = vmatprep.mubr.msk.f32.mxu1 %vm2391_vm1, %v2390_v1 }
  0x9a   : > { %2243 = vmatmul.mubr.msk.f32.gmra.mxu0 %vm205_vm2, %v1800_v8  ;;  %2322 = vmatmul.mubr.msk.f32.gmra.mxu1 %vm205_vm2, %v1851_v9 }
  0x9b   : > { %2245 = vmatprep.mubr.msk.f32.mxu0 %vm2391_vm1, %v2390_v1  ;;  %2324 = vmatprep.mubr.msk.f32.mxu1 %vm2391_vm1, %v2390_v1 }
  0x9e   : > { %2246 = vmatmul.mubr.msk.f32.gmra.mxu0 %vm205_vm2, %v1801_v10  ;;  %2325 = vmatmul.mubr.msk.f32.gmra.mxu1 %vm205_vm2, %v1852_v11 }
  0x9f   : > { %2248 = vmatprep.mubr.msk.f32.mxu0 %vm2391_vm1, %v2390_v1  ;;  %2327 = vmatprep.mubr.msk.f32.mxu1 %vm2391_vm1, %v2390_v1 }
  0xa2   : > { %2249 = vmatmul.mubr.msk.f32.gmra.mxu0 %vm205_vm2, %v1802_v12  ;;  %2328 = vmatmul.mubr.msk.f32.gmra.mxu1 %vm205_vm2, %v1853_v13 }
  0xa3   : > { %2251 = vmatprep.mubr.msk.f32.mxu0 %vm2391_vm1, %v2390_v1  ;;  %2330 = vmatprep.mubr.msk.f32.mxu1 %vm2391_vm1, %v2390_v1 }
  0xa6   : > { %2252 = vmatmul.mubr.msk.f32.gmra.mxu0 %vm205_vm2, %v1803_v14  ;;  %2331 = vmatmul.mubr.msk.f32.gmra.mxu1 %vm205_vm2, %v1854_v15 }
  0xa7   : > { %2254 = vmatprep.mubr.msk.f32.mxu0 %vm2391_vm1, %v2390_v1  ;;  %2333 = vmatprep.mubr.msk.f32.mxu1 %vm2391_vm1, %v2390_v1 }
  0xaa   : > { %2255 = vmatmul.mubr.msk.f32.gmra.mxu0 %vm205_vm2, %v1804_v16  ;;  %2334 = vmatmul.mubr.msk.f32.gmra.mxu1 %vm205_vm2, %v1855_v17 }
  0xab   : > { %2257 = vmatprep.mubr.msk.f32.mxu0 %vm2391_vm1, %v2390_v1  ;;  %2336 = vmatprep.mubr.msk.f32.mxu1 %vm2391_vm1, %v2390_v1 }
  0xae   : > { %2258 = vmatmul.mubr.msk.f32.gmra.mxu0 %vm205_vm2, %v1805_v18  ;;  %2337 = vmatmul.mubr.msk.f32.gmra.mxu1 %vm205_vm2, %v1856_v19 }
  0xaf   : > { %2260 = vmatprep.mubr.msk.f32.mxu0 %vm2391_vm1, %v2390_v1  ;;  %2339 = vmatprep.mubr.msk.f32.mxu1 %vm2391_vm1, %v2390_v1 }
  0xb2   : > { %2261 = vmatmul.mubr.msk.f32.gmra.mxu0 %vm205_vm2, %v1806_v20  ;;  %2340 = vmatmul.mubr.msk.f32.gmra.mxu1 %vm205_vm2, %v1857_v21 }
  0xb3   : > { %2263 = vmatprep.mubr.msk.f32.mxu0 %vm2391_vm1, %v2390_v1  ;;  %2342 = vmatprep.mubr.msk.f32.mxu1 %vm2391_vm1, %v2390_v1 }
  0xb6   : > { %2264 = vmatmul.mubr.msk.f32.gmra.mxu0 %vm205_vm2, %v1807_v22  ;;  %2343 = vmatmul.mubr.msk.f32.gmra.mxu1 %vm205_vm2, %v1858_v23 }
  0xb7   : > { %2266 = vmatprep.mubr.msk.f32.mxu0 %vm2391_vm1, %v2390_v1  ;;  %2345 = vmatprep.mubr.msk.f32.mxu1 %vm2391_vm1, %v2390_v1 }
  0xba   : > { %2267 = vmatmul.mubr.msk.f32.gmra.mxu0 %vm205_vm2, %v1808_v24  ;;  %2346 = vmatmul.mubr.msk.f32.gmra.mxu1 %vm205_vm2, %v1859_v25 }
  0xbb   : > { %2269 = vmatprep.mubr.msk.f32.mxu0 %vm2391_vm1, %v2390_v1  ;;  %2348 = vmatprep.mubr.msk.f32.mxu1 %vm2391_vm1, %v2390_v1 }
  0xbe   : > { %2270 = vmatmul.mubr.msk.f32.gmra.mxu0 %vm205_vm2, %v1809_v26  ;;  %2349 = vmatmul.mubr.msk.f32.gmra.mxu1 %vm205_vm2, %v1860_v27 }
  0xbf   : > { %2272 = vmatprep.mubr.msk.f32.mxu0 %vm2391_vm1, %v2390_v1  ;;  %2351 = vmatprep.mubr.msk.f32.mxu1 %vm2391_vm1, %v2390_v1 }
  0xc2   : > { %2273 = vmatmul.mubr.msk.f32.gmra.mxu0 %vm205_vm2, %v1810_v28  ;;  %2352 = vmatmul.mubr.msk.f32.gmra.mxu1 %vm205_vm2, %v1861_v29 }
  0xc3   : > { %2275 = vmatprep.mubr.msk.f32.mxu0 %vm2391_vm1, %v2390_v1  ;;  %2354 = vmatprep.mubr.msk.f32.mxu1 %vm2391_vm1, %v2390_v1 }
  0xc6   : > { %2276 = vmatmul.mubr.msk.f32.gmra.mxu0 %vm205_vm2, %v1811_v30  ;;  %2355 = vmatmul.mubr.msk.f32.gmra.mxu1 %vm205_vm2, %v1862_v31 }
  0xc7   : > { %2278 = vmatprep.mubr.msk.f32.mxu0 %vm2391_vm1, %v2390_v1  ;;  %2357 = vmatprep.mubr.msk.f32.mxu1 %vm2391_vm1, %v2390_v1 }
  0xca   : > { %2279 = vmatmul.mubr.msk.f32.gmra.mxu0 %vm205_vm2, %v1812_v32  ;;  %2358 = vmatmul.mubr.msk.f32.gmra.mxu1 %vm205_vm2, %v1863_v33 }
  0xcb   : > { %2281 = vmatprep.mubr.msk.f32.mxu0 %vm2391_vm1, %v2390_v1  ;;  %2360 = vmatprep.mubr.msk.f32.mxu1 %vm2391_vm1, %v2390_v1 }
  0xce   : > { %2282 = vmatmul.mubr.msk.f32.gmra.mxu0 %vm205_vm2, %v1813_v34  ;;  %2361 = vmatmul.mubr.msk.f32.gmra.mxu1 %vm205_vm2, %v1864_v35 }
  0xcf   : > { %2284 = vmatprep.mubr.msk.f32.mxu0 %vm2391_vm1, %v2390_v1  ;;  %2363 = vmatprep.mubr.msk.f32.mxu1 %vm2391_vm1, %v2390_v1 }
  0xd2   : > { %v351_v39 = vpop.f32.mrf.mxu0  ;;  %v667_v40 = vpop.f32.mrf.mxu1  ;;  %2285 = vmatmul.mubr.msk.f32.gmra.mxu0 %vm205_vm2, %v1814_v36  ;;  %2364 = vmatmul.mubr.msk.f32.gmra.mxu1 %vm205_vm2, %v1865_v37 }
  0xd3   : > { %v352_v41 = vadd.f32 %v2839_v38, %v351_v39  ;;  %v668_v42 = vadd.f32 %v2839_v38, %v667_v40  ;;  %2287 = vmatprep.mubr.msk.f32.mxu0 %vm2391_vm1, %v2390_v1  ;;  %2366 = vmatprep.mubr.msk.f32.mxu1 %vm2391_vm1, %v2390_v1 }
  0xd4   : > { %v2059_v45 = vpop.f32.mrf.mxu0  ;;  %v2138_v46 = vpop.f32.mrf.mxu1 }
  0xd5   : > { %v475_v47 = vmax.f32 %v352_v41, 0.0  ;;  %v791_v48 = vmax.f32 %v668_v42, 0.0 }
  0xd6   : > { %v356_v49 = vpop.f32.mrf.mxu0  ;;  %v672_v50 = vpop.f32.mrf.mxu1  ;;  %2288 = vmatmul.mubr.msk.f32.gmra.mxu0 %vm205_vm2, %v1815_v43  ;;  %2367 = vmatmul.mubr.msk.f32.gmra.mxu1 %vm205_vm2, %v1866_v44 }
  0xd7   : > { %v2853_v51 = vmax.f32 %v475_v47, %v791_v48  ;;  %v357_v52 = vadd.f32 %v2839_v38, %v356_v49  ;;  %v673_v53 = vadd.f32 %v2839_v38, %v672_v50 }
  0xd8   : > { %v2062_v54 = vpop.f32.mrf.mxu0  ;;  %v2141_v1 = vpop.f32.mrf.mxu1 }
  0xd9   : > { %v476_v55 = vmax.f32 %v357_v52, 0.0  ;;  %v792_v56 = vmax.f32 %v673_v53, 0.0 }
  0xda   : > { %v361_v57 = vpop.f32.mrf.mxu0  ;;  %v677_v58 = vpop.f32.mrf.mxu1 }
  0xdb   : > { %v2857_v59 = vmax.f32 %v476_v55, %v792_v56  ;;  %v362_v60 = vadd.f32 %v2839_v38, %v361_v57  ;;  %v678_v61 = vadd.f32 %v2839_v38, %v677_v58 }
  0xdc   : > { %v2065_v62 = vpop.f32.mrf.mxu0  ;;  %v2144_v63 = vpop.f32.mrf.mxu1 }
  0xdd   : > { %v477_v0 = vmax.f32 %v362_v60, 0.0  ;;  %v793_v2 = vmax.f32 %v678_v61, 0.0 }
  0xde   : > { %v366_v3 = vpop.f32.mrf.mxu0  ;;  %v682_v4 = vpop.f32.mrf.mxu1 }
  0xdf   : > { %v2861_v5 = vmax.f32 %v477_v0, %v793_v2  ;;  %v367_v6 = vadd.f32 %v2839_v38, %v366_v3  ;;  %v683_v7 = vadd.f32 %v2839_v38, %v682_v4 }
  0xe0   : > { %v2068_v8 = vpop.f32.mrf.mxu0  ;;  %v2147_v9 = vpop.f32.mrf.mxu1 }
  0xe1   : > { %v478_v10 = vmax.f32 %v367_v6, 0.0  ;;  %v794_v11 = vmax.f32 %v683_v7, 0.0 }
  0xe2   : > { %v371_v12 = vpop.f32.mrf.mxu0  ;;  %v687_v13 = vpop.f32.mrf.mxu1 }
  0xe3   : > { %v2865_v14 = vmax.f32 %v478_v10, %v794_v11  ;;  %v372_v15 = vadd.f32 %v2839_v38, %v371_v12  ;;  %v688_v16 = vadd.f32 %v2839_v38, %v687_v13 }
  0xe4   : > { %v2071_v17 = vpop.f32.mrf.mxu0  ;;  %v2150_v18 = vpop.f32.mrf.mxu1 }
  0xe5   : > { %v479_v19 = vmax.f32 %v372_v15, 0.0  ;;  %v795_v20 = vmax.f32 %v688_v16, 0.0 }
  0xe6   : > { %v376_v21 = vpop.f32.mrf.mxu0  ;;  %v692_v22 = vpop.f32.mrf.mxu1 }
  0xe7   : > { %v2869_v23 = vmax.f32 %v479_v19, %v795_v20  ;;  %v377_v24 = vadd.f32 %v2839_v38, %v376_v21  ;;  %v693_v25 = vadd.f32 %v2839_v38, %v692_v22 }
  0xe8   : > { %v2074_v26 = vpop.f32.mrf.mxu0  ;;  %v2153_v27 = vpop.f32.mrf.mxu1 }
  0xe9   : > { %v480_v28 = vmax.f32 %v377_v24, 0.0  ;;  %v796_v29 = vmax.f32 %v693_v25, 0.0 }
  0xea   : > { %v381_v30 = vpop.f32.mrf.mxu0  ;;  %v697_v31 = vpop.f32.mrf.mxu1 }
  0xeb   : > { %v2873_v32 = vmax.f32 %v480_v28, %v796_v29  ;;  %v382_v33 = vadd.f32 %v2839_v38, %v381_v30  ;;  %v698_v34 = vadd.f32 %v2839_v38, %v697_v31 }
  0xec   : > { %v2077_v35 = vpop.f32.mrf.mxu0  ;;  %v2156_v36 = vpop.f32.mrf.mxu1 }
  0xed   : > { %v481_v37 = vmax.f32 %v382_v33, 0.0  ;;  %v797_v39 = vmax.f32 %v698_v34, 0.0 }
  0xee   : > { %v386_v40 = vpop.f32.mrf.mxu0  ;;  %v702_v41 = vpop.f32.mrf.mxu1 }
  0xef   : > { %v2877_v42 = vmax.f32 %v481_v37, %v797_v39  ;;  %v387_v43 = vadd.f32 %v2839_v38, %v386_v40  ;;  %v703_v44 = vadd.f32 %v2839_v38, %v702_v41 }
  0xf0   : > { %v2080_v45 = vpop.f32.mrf.mxu0  ;;  %v2159_v46 = vpop.f32.mrf.mxu1 }
  0xf1   : > { %v482_v47 = vmax.f32 %v387_v43, 0.0  ;;  %v798_v48 = vmax.f32 %v703_v44, 0.0 }
  0xf2   : > { %v391_v49 = vpop.f32.mrf.mxu0  ;;  %v707_v50 = vpop.f32.mrf.mxu1 }
  0xf3   : > { %v2881_v52 = vmax.f32 %v482_v47, %v798_v48  ;;  %v392_v53 = vadd.f32 %v2839_v38, %v391_v49  ;;  %v708_v54 = vadd.f32 %v2839_v38, %v707_v50 }
  0xf4   : > { %v2083_v1 = vpop.f32.mrf.mxu0  ;;  %v2162_v55 = vpop.f32.mrf.mxu1 }
  0xf5   : > { %v483_v56 = vmax.f32 %v392_v53, 0.0  ;;  %v799_v57 = vmax.f32 %v708_v54, 0.0 }
  0xf6   : > { %v396_v58 = vpop.f32.mrf.mxu0  ;;  %v712_v60 = vpop.f32.mrf.mxu1 }
  0xf7   : > { %v2885_v61 = vmax.f32 %v483_v56, %v799_v57  ;;  %v397_v62 = vadd.f32 %v2839_v38, %v396_v58  ;;  %v713_v63 = vadd.f32 %v2839_v38, %v712_v60 }
  0xf8   : > { %v2086_v0 = vpop.f32.mrf.mxu0  ;;  %v2165_v2 = vpop.f32.mrf.mxu1 }
  0xf9   : > { %v484_v3 = vmax.f32 %v397_v62, 0.0  ;;  %v800_v4 = vmax.f32 %v713_v63, 0.0 }
  0xfa   : > { %v401_v6 = vpop.f32.mrf.mxu0  ;;  %v717_v7 = vpop.f32.mrf.mxu1 }
  0xfb   : > { %v2889_v8 = vmax.f32 %v484_v3, %v800_v4  ;;  %v402_v9 = vadd.f32 %v2839_v38, %v401_v6  ;;  %v718_v10 = vadd.f32 %v2839_v38, %v717_v7 }
  0xfc   : > { %v2089_v11 = vpop.f32.mrf.mxu0  ;;  %v2168_v12 = vpop.f32.mrf.mxu1 }
  0xfd   : > { %v485_v13 = vmax.f32 %v402_v9, 0.0  ;;  %v801_v15 = vmax.f32 %v718_v10, 0.0 }
  0xfe   : > { %v406_v16 = vpop.f32.mrf.mxu0  ;;  %v722_v17 = vpop.f32.mrf.mxu1 }
  0xff   : > { %v2893_v18 = vmax.f32 %v485_v13, %v801_v15  ;;  %v407_v19 = vadd.f32 %v2839_v38, %v406_v16  ;;  %v723_v20 = vadd.f32 %v2839_v38, %v722_v17 }
 0x100   : > { %v2092_v21 = vpop.f32.mrf.mxu0  ;;  %v2171_v22 = vpop.f32.mrf.mxu1 }
 0x101   : > { %v486_v24 = vmax.f32 %v407_v19, 0.0  ;;  %v802_v25 = vmax.f32 %v723_v20, 0.0 }
 0x102   : > { %v411_v26 = vpop.f32.mrf.mxu0  ;;  %v727_v27 = vpop.f32.mrf.mxu1 }
 0x103   : > { %v2897_v28 = vmax.f32 %v486_v24, %v802_v25  ;;  %v412_v29 = vadd.f32 %v2839_v38, %v411_v26  ;;  %v728_v30 = vadd.f32 %v2839_v38, %v727_v27 }
 0x104   : > { %v2095_v31 = vpop.f32.mrf.mxu0  ;;  %v2174_v33 = vpop.f32.mrf.mxu1 }
 0x105   : > { %v487_v34 = vmax.f32 %v412_v29, 0.0  ;;  %v803_v35 = vmax.f32 %v728_v30, 0.0 }
 0x106   : > { %v416_v36 = vpop.f32.mrf.mxu0  ;;  %v732_v37 = vpop.f32.mrf.mxu1 }
 0x107   : > { %v2901_v39 = vmax.f32 %v487_v34, %v803_v35  ;;  %v417_v40 = vadd.f32 %v2839_v38, %v416_v36  ;;  %v733_v41 = vadd.f32 %v2839_v38, %v732_v37 }
 0x108   : > { %v2098_v43 = vpop.f32.mrf.mxu0  ;;  %v2177_v44 = vpop.f32.mrf.mxu1 }
 0x109   : > { %v488_v45 = vmax.f32 %v417_v40, 0.0  ;;  %v804_v46 = vmax.f32 %v733_v41, 0.0 }
 0x10a   : > { %v421_v47 = vpop.f32.mrf.mxu0  ;;  %v737_v48 = vpop.f32.mrf.mxu1 }
 0x10b   : > { %v2905_v49 = vmax.f32 %v488_v45, %v804_v46  ;;  %v422_v50 = vadd.f32 %v2839_v38, %v421_v47  ;;  %v738_v53 = vadd.f32 %v2839_v38, %v737_v48 }
 0x10c   : > { %v2101_v54 = vpop.f32.mrf.mxu0  ;;  %v2180_v1 = vpop.f32.mrf.mxu1 }
 0x10d   : > { %v489_v55 = vmax.f32 %v422_v50, 0.0  ;;  %v805_v56 = vmax.f32 %v738_v53, 0.0 }
 0x10e   : > { %v426_v57 = vpop.f32.mrf.mxu0  ;;  %v742_v58 = vpop.f32.mrf.mxu1 }
 0x10f   : > { %v2909_v60 = vmax.f32 %v489_v55, %v805_v56  ;;  %v427_v62 = vadd.f32 %v2839_v38, %v426_v57  ;;  %v743_v63 = vadd.f32 %v2839_v38, %v742_v58 }
 0x110   : > { %v2104_v0 = vpop.f32.mrf.mxu0  ;;  %v2183_v2 = vpop.f32.mrf.mxu1 }
 0x111   : > { %v490_v3 = vmax.f32 %v427_v62, 0.0  ;;  %v806_v4 = vmax.f32 %v743_v63, 0.0 }
 0x112   : > { %v431_v6 = vpop.f32.mrf.mxu0  ;;  %v747_v7 = vpop.f32.mrf.mxu1 }
 0x113   : > { %v2913_v9 = vmax.f32 %v490_v3, %v806_v4  ;;  %v432_v10 = vadd.f32 %v2839_v38, %v431_v6  ;;  %v748_v11 = vadd.f32 %v2839_v38, %v747_v7 }
 0x114   : > { %v2107_v12 = vpop.f32.mrf.mxu0  ;;  %v2186_v13 = vpop.f32.mrf.mxu1 }
 0x115   : > { %v491_v15 = vmax.f32 %v432_v10, 0.0  ;;  %v807_v16 = vmax.f32 %v748_v11, 0.0 }
 0x116   : > { %v436_v17 = vpop.f32.mrf.mxu0  ;;  %v752_v19 = vpop.f32.mrf.mxu1 }
 0x117   : > { %v2917_v20 = vmax.f32 %v491_v15, %v807_v16  ;;  %v437_v21 = vadd.f32 %v2839_v38, %v436_v17  ;;  %v753_v22 = vadd.f32 %v2839_v38, %v752_v19 }
 0x118   : > { %v2110_v24 = vpop.f32.mrf.mxu0  ;;  %v2189_v25 = vpop.f32.mrf.mxu1 }
 0x119   : > { %v492_v26 = vmax.f32 %v437_v21, 0.0  ;;  %v808_v27 = vmax.f32 %v753_v22, 0.0 }
 0x11a   : > { %v441_v29 = vpop.f32.mrf.mxu0  ;;  %v757_v30 = vpop.f32.mrf.mxu1 }
 0x11b   : > { %v2921_v31 = vmax.f32 %v492_v26, %v808_v27  ;;  %v442_v33 = vadd.f32 %v2839_v38, %v441_v29  ;;  %v758_v34 = vadd.f32 %v2839_v38, %v757_v30 }
 0x11c   : > { %v2113_v35 = vpop.f32.mrf.mxu0  ;;  %v2192_v36 = vpop.f32.mrf.mxu1 }
 0x11d   : > { %v493_v37 = vmax.f32 %v442_v33, 0.0  ;;  %v809_v40 = vmax.f32 %v758_v34, 0.0 }
 0x11e   : > { %v446_v41 = vpop.f32.mrf.mxu0  ;;  %v762_v43 = vpop.f32.mrf.mxu1 }
 0x11f   : > { %v2925_v44 = vmax.f32 %v493_v37, %v809_v40  ;;  %v447_v45 = vadd.f32 %v2839_v38, %v446_v41  ;;  %v763_v46 = vadd.f32 %v2839_v38, %v762_v43 }
 0x120   : > { %v2116_v47 = vpop.f32.mrf.mxu0  ;;  %v2195_v48 = vpop.f32.mrf.mxu1 }
 0x121   : > { %v494_v50 = vmax.f32 %v447_v45, 0.0  ;;  %v810_v53 = vmax.f32 %v763_v46, 0.0 }
 0x122   : > { %v451_v54 = vpop.f32.mrf.mxu0  ;;  %v767_v1 = vpop.f32.mrf.mxu1 }
 0x123   : > { %v2929_v55 = vmax.f32 %v494_v50, %v810_v53  ;;  %v452_v56 = vadd.f32 %v2839_v38, %v451_v54  ;;  %v768_v57 = vadd.f32 %v2839_v38, %v767_v1 }
 0x124   : > { %v2119_v58 = vpop.f32.mrf.mxu0  ;;  %v2198_v62 = vpop.f32.mrf.mxu1 }
 0x125   : > { %v495_v63 = vmax.f32 %v452_v56, 0.0  ;;  %v811_v0 = vmax.f32 %v768_v57, 0.0 }
 0x126   : > { %v456_v2 = vpop.f32.mrf.mxu0  ;;  %v772_v3 = vpop.f32.mrf.mxu1 }
 0x127   : > { %v2933_v4 = vmax.f32 %v495_v63, %v811_v0  ;;  %v457_v6 = vadd.f32 %v2839_v38, %v456_v2  ;;  %v773_v7 = vadd.f32 %v2839_v38, %v772_v3 }
 0x128   : > { %v2122_v10 = vpop.f32.mrf.mxu0  ;;  %v2201_v11 = vpop.f32.mrf.mxu1 }
 0x129   : > { %v496_v12 = vmax.f32 %v457_v6, 0.0  ;;  %v812_v13 = vmax.f32 %v773_v7, 0.0 }
 0x12a   : > { %v461_v15 = vpop.f32.mrf.mxu0  ;;  %v777_v16 = vpop.f32.mrf.mxu1 }
 0x12b   : > { %v2937_v17 = vmax.f32 %v496_v12, %v812_v13  ;;  %v462_v19 = vadd.f32 %v2839_v38, %v461_v15  ;;  %v778_v21 = vadd.f32 %v2839_v38, %v777_v16 }
 0x12c   : > { %v2125_v22 = vpop.f32.mrf.mxu0  ;;  %v2204_v24 = vpop.f32.mrf.mxu1 }
 0x12d   : > { %v497_v25 = vmax.f32 %v462_v19, 0.0  ;;  %v813_v26 = vmax.f32 %v778_v21, 0.0 }
 0x12e   : > { %v466_v27 = vpop.f32.mrf.mxu0  ;;  %v782_v29 = vpop.f32.mrf.mxu1 }
 0x12f   : > { %v2941_v30 = vmax.f32 %v497_v25, %v813_v26  ;;  %v467_v33 = vadd.f32 %v2839_v38, %v466_v27  ;;  %v783_v34 = vadd.f32 %v2839_v38, %v782_v29 }
 0x130   : > { %v2128_v35 = vpop.f32.mrf.mxu0  ;;  %v2207_v36 = vpop.f32.mrf.mxu1 }
 0x131   : > { %v498_v37 = vmax.f32 %v467_v33, 0.0  ;;  %v814_v40 = vmax.f32 %v783_v34, 0.0 }
 0x132   : > { %v471_v41 = vpop.f32.mrf.mxu0  ;;  %v787_v43 = vpop.f32.mrf.mxu1 }
 0x133   : > { %v2945_v45 = vmax.f32 %v498_v37, %v814_v40  ;;  %v472_v46 = vadd.f32 %v2839_v38, %v471_v41  ;;  %v788_v47 = vadd.f32 %v2839_v38, %v787_v43 }
 0x134   : > { %v2131_v48 = vpop.f32.mrf.mxu0  ;;  %v2210_v50 = vpop.f32.mrf.mxu1 }
 0x135   : > { %v499_v53 = vmax.f32 %v472_v46, 0.0  ;;  %v815_v54 = vmax.f32 %v788_v47, 0.0 }
 0x136   : > { %v1008_v1 = vpop.f32.mrf.mxu0  ;;  %v1349_v56 = vpop.f32.mrf.mxu1 }
 0x137   : > { %v2949_v57 = vmax.f32 %v499_v53, %v815_v54  ;;  %v1009_v58 = vadd.f32 %v2839_v38, %v1008_v1  ;;  %v1350_v62 = vadd.f32 %v2839_v38, %v1349_v56 }
 0x138   : > { %v2217_v63 = vpop.f32.mrf.mxu0  ;;  %v2296_v0 = vpop.f32.mrf.mxu1 }
 0x139   : > { %v1132_v2 = vmax.f32 %v1009_v58, 0.0  ;;  %v1473_v3 = vmax.f32 %v1350_v62, 0.0 }
 0x13a   : > { %v1013_v6 = vpop.f32.mrf.mxu0  ;;  %v1354_v7 = vpop.f32.mrf.mxu1 }
 0x13b   : > { %v1157_v10 = vmax.f32 %v2853_v51, %v1132_v2  ;;  %v1014_v11 = vadd.f32 %v2839_v38, %v1013_v6  ;;  %v1355_v12 = vadd.f32 %v2839_v38, %v1354_v7 }
 0x13c   : > { %v2220_v13 = vpop.f32.mrf.mxu0  ;;  %v2299_v15 = vpop.f32.mrf.mxu1 }
 0x13d   : > { %v1498_v16 = vmax.f32 %v1157_v10, %v1473_v3  ;;  %v1133_v19 = vmax.f32 %v1014_v11, 0.0  ;;  %v1474_v21 = vmax.f32 %v1355_v12, 0.0 }
 0x13e   : > { %v1018_v22 = vpop.f32.mrf.mxu0  ;;  %v1359_v24 = vpop.f32.mrf.mxu1 }
 0x13f   : > { %v1920_v25 = vpack.c.bf16 %v1498_v16, %v1498_v16  ;;  %v1158_v51 = vmax.f32 %v2857_v59, %v1133_v19  ;;  %v1019_v26 = vadd.f32 %v2839_v38, %v1018_v22  ;;  %v1360_v27 = vadd.f32 %v2839_v38, %v1359_v24 }
 0x140   : > { %v2223_v29 = vpop.f32.mrf.mxu0  ;;  %v2302_v33 = vpop.f32.mrf.mxu1 }
 0x141   : > { %1625 = vst.msk [vmem:[%s2960_s27] sm:$0xf] %vm1624_vm3, %v1920_v25  ;;  %v1499_v34 = vmax.f32 %v1158_v51, %v1474_v21  ;;  %v1134_v35 = vmax.f32 %v1019_v26, 0.0  ;;  %v1475_v36 = vmax.f32 %v1360_v27, 0.0 }
 0x142   : > { %v1023_v37 = vpop.f32.mrf.mxu0  ;;  %v1364_v40 = vpop.f32.mrf.mxu1 }
 0x143   : > { %v1921_v41 = vpack.c.bf16 %v1499_v34, %v1499_v34  ;;  %v1159_v43 = vmax.f32 %v2861_v5, %v1134_v35  ;;  %v1024_v46 = vadd.f32 %v2839_v38, %v1023_v37  ;;  %v1365_v59 = vadd.f32 %v2839_v38, %v1364_v40 }
 0x144   : > { %v2226_v47 = vpop.f32.mrf.mxu0  ;;  %v2305_v48 = vpop.f32.mrf.mxu1 }
 0x145   : > { %1626 = vst.msk [vmem:[%s2960_s27 + $0x4] sm:$0xf] %vm1624_vm3, %v1921_v41  ;;  %v1500_v50 = vmax.f32 %v1159_v43, %v1475_v36  ;;  %v1135_v53 = vmax.f32 %v1024_v46, 0.0  ;;  %v1476_v54 = vmax.f32 %v1365_v59, 0.0 }
 0x146   : > { %v1028_v1 = vpop.f32.mrf.mxu0  ;;  %v1369_v56 = vpop.f32.mrf.mxu1 }
 0x147   : > { %v1922_v58 = vpack.c.bf16 %v1500_v50, %v1500_v50  ;;  %v1160_v62 = vmax.f32 %v2865_v14, %v1135_v53  ;;  %v1029_v63 = vadd.f32 %v2839_v38, %v1028_v1  ;;  %v1370_v5 = vadd.f32 %v2839_v38, %v1369_v56 }
 0x148   : > { %v2229_v0 = vpop.f32.mrf.mxu0  ;;  %v2308_v2 = vpop.f32.mrf.mxu1 }
 0x149   : > { %1627 = vst.msk [vmem:[%s2960_s27 + $0x8] sm:$0xf] %vm1624_vm3, %v1922_v58  ;;  %v1501_v3 = vmax.f32 %v1160_v62, %v1476_v54  ;;  %v1136_v6 = vmax.f32 %v1029_v63, 0.0  ;;  %v1477_v7 = vmax.f32 %v1370_v5, 0.0 }
 0x14a   : > { %v1033_v10 = vpop.f32.mrf.mxu0  ;;  %v1374_v11 = vpop.f32.mrf.mxu1 }
 0x14b   : > { %v1923_v12 = vpack.c.bf16 %v1501_v3, %v1501_v3  ;;  %v1161_v13 = vmax.f32 %v2869_v23, %v1136_v6  ;;  %v1034_v15 = vadd.f32 %v2839_v38, %v1033_v10  ;;  %v1375_v14 = vadd.f32 %v2839_v38, %v1374_v11 }
 0x14c   : > { %v2232_v16 = vpop.f32.mrf.mxu0  ;;  %v2311_v19 = vpop.f32.mrf.mxu1 }
 0x14d   : > { %1628 = vst.msk [vmem:[%s2960_s27 + $0xc] sm:$0xf] %vm1624_vm3, %v1923_v12  ;;  %v1502_v21 = vmax.f32 %v1161_v13, %v1477_v7  ;;  %v1137_v22 = vmax.f32 %v1034_v15, 0.0  ;;  %v1478_v24 = vmax.f32 %v1375_v14, 0.0 }
 0x14e   : > { %v1038_v25 = vpop.f32.mrf.mxu0  ;;  %v1379_v51 = vpop.f32.mrf.mxu1 }
 0x14f   : > { %v1924_v26 = vpack.c.bf16 %v1502_v21, %v1502_v21  ;;  %v1162_v27 = vmax.f32 %v2873_v32, %v1137_v22  ;;  %v1039_v29 = vadd.f32 %v2839_v38, %v1038_v25  ;;  %v1380_v23 = vadd.f32 %v2839_v38, %v1379_v51 }
 0x150   : > { %v2235_v33 = vpop.f32.mrf.mxu0  ;;  %v2314_v34 = vpop.f32.mrf.mxu1 }
 0x151   : > { %1629 = vst.msk [vmem:[%s2960_s27 + $0x10] sm:$0xf] %vm1624_vm3, %v1924_v26  ;;  %v1503_v35 = vmax.f32 %v1162_v27, %v1478_v24  ;;  %v1138_v36 = vmax.f32 %v1039_v29, 0.0  ;;  %v1479_v37 = vmax.f32 %v1380_v23, 0.0 }
 0x152   : > { %v1043_v40 = vpop.f32.mrf.mxu0  ;;  %v1384_v41 = vpop.f32.mrf.mxu1 }
 0x153   : > { %v1925_v43 = vpack.c.bf16 %v1503_v35, %v1503_v35  ;;  %v1163_v46 = vmax.f32 %v2877_v42, %v1138_v36  ;;  %v1044_v59 = vadd.f32 %v2839_v38, %v1043_v40  ;;  %v1385_v32 = vadd.f32 %v2839_v38, %v1384_v41 }
 0x154   : > { %v2238_v47 = vpop.f32.mrf.mxu0  ;;  %v2317_v48 = vpop.f32.mrf.mxu1 }
 0x155   : > { %1630 = vst.msk [vmem:[%s2960_s27 + $0x14] sm:$0xf] %vm1624_vm3, %v1925_v43  ;;  %v1504_v50 = vmax.f32 %v1163_v46, %v1479_v37  ;;  %v1139_v53 = vmax.f32 %v1044_v59, 0.0  ;;  %v1480_v54 = vmax.f32 %v1385_v32, 0.0 }
 0x156   : > { %v1048_v1 = vpop.f32.mrf.mxu0  ;;  %v1389_v56 = vpop.f32.mrf.mxu1 }
 0x157   : > { %v1926_v58 = vpack.c.bf16 %v1504_v50, %v1504_v50  ;;  %v1164_v62 = vmax.f32 %v2881_v52, %v1139_v53  ;;  %v1049_v63 = vadd.f32 %v2839_v38, %v1048_v1  ;;  %v1390_v42 = vadd.f32 %v2839_v38, %v1389_v56 }
 0x158   : > { %v2241_v5 = vpop.f32.mrf.mxu0  ;;  %v2320_v0 = vpop.f32.mrf.mxu1 }
 0x159   : > { %1631 = vst.msk [vmem:[%s2960_s27 + $0x18] sm:$0xf] %vm1624_vm3, %v1926_v58  ;;  %v1505_v2 = vmax.f32 %v1164_v62, %v1480_v54  ;;  %v1140_v3 = vmax.f32 %v1049_v63, 0.0  ;;  %v1481_v6 = vmax.f32 %v1390_v42, 0.0 }
 0x15a   : > { %v1053_v7 = vpop.f32.mrf.mxu0  ;;  %v1394_v10 = vpop.f32.mrf.mxu1 }
 0x15b   : > { %v1927_v11 = vpack.c.bf16 %v1505_v2, %v1505_v2  ;;  %v1165_v12 = vmax.f32 %v2885_v61, %v1140_v3  ;;  %v1054_v13 = vadd.f32 %v2839_v38, %v1053_v7  ;;  %v1395_v52 = vadd.f32 %v2839_v38, %v1394_v10 }
 0x15c   : > { %v2244_v15 = vpop.f32.mrf.mxu0  ;;  %v2323_v14 = vpop.f32.mrf.mxu1 }
 0x15d   : > { %1632 = vst.msk [vmem:[%s2960_s27 + $0x1c] sm:$0xf] %vm1624_vm3, %v1927_v11  ;;  %v1506_v16 = vmax.f32 %v1165_v12, %v1481_v6  ;;  %v1141_v19 = vmax.f32 %v1054_v13, 0.0  ;;  %v1482_v21 = vmax.f32 %v1395_v52, 0.0 }
 0x15e   : > { %v1058_v22 = vpop.f32.mrf.mxu0  ;;  %v1399_v24 = vpop.f32.mrf.mxu1 }
 0x15f   : > { %v1928_v25 = vpack.c.bf16 %v1506_v16, %v1506_v16  ;;  %v1166_v51 = vmax.f32 %v2889_v8, %v1141_v19  ;;  %v1059_v26 = vadd.f32 %v2839_v38, %v1058_v22  ;;  %v1400_v61 = vadd.f32 %v2839_v38, %v1399_v24 }
 0x160   : > { %v2247_v27 = vpop.f32.mrf.mxu0  ;;  %v2326_v29 = vpop.f32.mrf.mxu1 }
 0x161   : > { %1633 = vst.msk [vmem:[%s2960_s27 + $0x20] sm:$0xf] %vm1624_vm3, %v1928_v25  ;;  %v1507_v23 = vmax.f32 %v1166_v51, %v1482_v21  ;;  %v1142_v33 = vmax.f32 %v1059_v26, 0.0  ;;  %v1483_v34 = vmax.f32 %v1400_v61, 0.0 }
 0x162   : > { %v1063_v35 = vpop.f32.mrf.mxu0  ;;  %v1404_v36 = vpop.f32.mrf.mxu1 }
 0x163   : > { %v1929_v37 = vpack.c.bf16 %v1507_v23, %v1507_v23  ;;  %v1167_v40 = vmax.f32 %v2893_v18, %v1142_v33  ;;  %v1064_v41 = vadd.f32 %v2839_v38, %v1063_v35  ;;  %v1405_v8 = vadd.f32 %v2839_v38, %v1404_v36 }
 0x164   : > { %v2250_v43 = vpop.f32.mrf.mxu0  ;;  %v2329_v46 = vpop.f32.mrf.mxu1 }
 0x165   : > { %1634 = vst.msk [vmem:[%s2960_s27 + $0x24] sm:$0xf] %vm1624_vm3, %v1929_v37  ;;  %v1508_v59 = vmax.f32 %v1167_v40, %v1483_v34  ;;  %v1143_v32 = vmax.f32 %v1064_v41, 0.0  ;;  %v1484_v47 = vmax.f32 %v1405_v8, 0.0 }
 0x166   : > { %v1068_v48 = vpop.f32.mrf.mxu0  ;;  %v1409_v50 = vpop.f32.mrf.mxu1 }
 0x167   : > { %v1930_v53 = vpack.c.bf16 %v1508_v59, %v1508_v59  ;;  %v1168_v54 = vmax.f32 %v2897_v28, %v1143_v32  ;;  %v1069_v1 = vadd.f32 %v2839_v38, %v1068_v48  ;;  %v1410_v18 = vadd.f32 %v2839_v38, %v1409_v50 }
 0x168   : > { %v2253_v56 = vpop.f32.mrf.mxu0  ;;  %v2332_v58 = vpop.f32.mrf.mxu1 }
 0x169   : > { %1635 = vst.msk [vmem:[%s2960_s27 + $0x28] sm:$0xf] %vm1624_vm3, %v1930_v53  ;;  %v1509_v62 = vmax.f32 %v1168_v54, %v1484_v47  ;;  %v1144_v63 = vmax.f32 %v1069_v1, 0.0  ;;  %v1485_v42 = vmax.f32 %v1410_v18, 0.0 }
 0x16a   : > { %v1073_v5 = vpop.f32.mrf.mxu0  ;;  %v1414_v0 = vpop.f32.mrf.mxu1 }
 0x16b   : > { %v1931_v2 = vpack.c.bf16 %v1509_v62, %v1509_v62  ;;  %v1169_v3 = vmax.f32 %v2901_v39, %v1144_v63  ;;  %v1074_v6 = vadd.f32 %v2839_v38, %v1073_v5  ;;  %v1415_v28 = vadd.f32 %v2839_v38, %v1414_v0 }
 0x16c   : > { %v2256_v7 = vpop.f32.mrf.mxu0  ;;  %v2335_v10 = vpop.f32.mrf.mxu1 }
 0x16d   : > { %1636 = vst.msk [vmem:[%s2960_s27 + $0x2c] sm:$0xf] %vm1624_vm3, %v1931_v2  ;;  %v1510_v11 = vmax.f32 %v1169_v3, %v1485_v42  ;;  %v1145_v12 = vmax.f32 %v1074_v6, 0.0  ;;  %v1486_v13 = vmax.f32 %v1415_v28, 0.0 }
 0x16e   : > { %v1078_v52 = vpop.f32.mrf.mxu0  ;;  %v1419_v15 = vpop.f32.mrf.mxu1 }
 0x16f   : > { %v1932_v14 = vpack.c.bf16 %v1510_v11, %v1510_v11  ;;  %v1170_v16 = vmax.f32 %v2905_v49, %v1145_v12  ;;  %v1079_v19 = vadd.f32 %v2839_v38, %v1078_v52  ;;  %v1420_v39 = vadd.f32 %v2839_v38, %v1419_v15 }
 0x170   : > { %v2259_v21 = vpop.f32.mrf.mxu0  ;;  %v2338_v22 = vpop.f32.mrf.mxu1 }
 0x171   : > { %1637 = vst.msk [vmem:[%s2960_s27 + $0x30] sm:$0xf] %vm1624_vm3, %v1932_v14  ;;  %v1511_v24 = vmax.f32 %v1170_v16, %v1486_v13  ;;  %v1146_v25 = vmax.f32 %v1079_v19, 0.0  ;;  %v1487_v51 = vmax.f32 %v1420_v39, 0.0 }
 0x172   : > { %v1083_v26 = vpop.f32.mrf.mxu0  ;;  %v1424_v61 = vpop.f32.mrf.mxu1 }
 0x173   : > { %v1933_v27 = vpack.c.bf16 %v1511_v24, %v1511_v24  ;;  %v1171_v29 = vmax.f32 %v2909_v60, %v1146_v25  ;;  %v1084_v23 = vadd.f32 %v2839_v38, %v1083_v26  ;;  %v1425_v49 = vadd.f32 %v2839_v38, %v1424_v61 }
 0x174   : > { %v2262_v33 = vpop.f32.mrf.mxu0  ;;  %v2341_v34 = vpop.f32.mrf.mxu1 }
 0x175   : > { %1638 = vst.msk [vmem:[%s2960_s27 + $0x34] sm:$0xf] %vm1624_vm3, %v1933_v27  ;;  %v1512_v35 = vmax.f32 %v1171_v29, %v1487_v51  ;;  %v1147_v36 = vmax.f32 %v1084_v23, 0.0  ;;  %v1488_v37 = vmax.f32 %v1425_v49, 0.0 }
 0x176   : > { %v1088_v40 = vpop.f32.mrf.mxu0  ;;  %v1429_v41 = vpop.f32.mrf.mxu1 }
 0x177   : > { %v1934_v8 = vpack.c.bf16 %v1512_v35, %v1512_v35  ;;  %v1172_v43 = vmax.f32 %v2913_v9, %v1147_v36  ;;  %v1089_v46 = vadd.f32 %v2839_v38, %v1088_v40  ;;  %v1430_v60 = vadd.f32 %v2839_v38, %v1429_v41 }
 0x178   : > { %v2265_v59 = vpop.f32.mrf.mxu0  ;;  %v2344_v32 = vpop.f32.mrf.mxu1 }
 0x179   : > { %1639 = vst.msk [vmem:[%s2960_s27 + $0x38] sm:$0xf] %vm1624_vm3, %v1934_v8  ;;  %v1513_v47 = vmax.f32 %v1172_v43, %v1488_v37  ;;  %v1148_v48 = vmax.f32 %v1089_v46, 0.0  ;;  %v1489_v50 = vmax.f32 %v1430_v60, 0.0 }
 0x17a   : > { %v1093_v53 = vpop.f32.mrf.mxu0  ;;  %v1434_v54 = vpop.f32.mrf.mxu1 }
 0x17b   : > { %v1935_v1 = vpack.c.bf16 %v1513_v47, %v1513_v47  ;;  %v1173_v18 = vmax.f32 %v2917_v20, %v1148_v48  ;;  %v1094_v56 = vadd.f32 %v2839_v38, %v1093_v53  ;;  %v1435_v9 = vadd.f32 %v2839_v38, %v1434_v54 }
 0x17c   : > { %v2268_v58 = vpop.f32.mrf.mxu0  ;;  %v2347_v62 = vpop.f32.mrf.mxu1 }
 0x17d   : > { %1640 = vst.msk [vmem:[%s2960_s27 + $0x3c] sm:$0xf] %vm1624_vm3, %v1935_v1  ;;  %v1514_v63 = vmax.f32 %v1173_v18, %v1489_v50  ;;  %v1149_v42 = vmax.f32 %v1094_v56, 0.0  ;;  %v1490_v5 = vmax.f32 %v1435_v9, 0.0 }
 0x17e   : > { %v1098_v0 = vpop.f32.mrf.mxu0  ;;  %v1439_v2 = vpop.f32.mrf.mxu1 }
 0x17f   : > { %v1936_v3 = vpack.c.bf16 %v1514_v63, %v1514_v63  ;;  %v1174_v6 = vmax.f32 %v2921_v31, %v1149_v42  ;;  %v1099_v28 = vadd.f32 %v2839_v38, %v1098_v0  ;;  %v1440_v20 = vadd.f32 %v2839_v38, %v1439_v2 }
 0x180   : > { %v2271_v7 = vpop.f32.mrf.mxu0  ;;  %v2350_v10 = vpop.f32.mrf.mxu1 }
 0x181   : > { %1641 = vst.msk [vmem:[%s2960_s27 + $0x40] sm:$0xf] %vm1624_vm3, %v1936_v3  ;;  %v1515_v11 = vmax.f32 %v1174_v6, %v1490_v5  ;;  %v1150_v12 = vmax.f32 %v1099_v28, 0.0  ;;  %v1491_v13 = vmax.f32 %v1440_v20, 0.0 }
 0x182   : > { %v1103_v52 = vpop.f32.mrf.mxu0  ;;  %v1444_v15 = vpop.f32.mrf.mxu1 }
 0x183   : > { %v1937_v14 = vpack.c.bf16 %v1515_v11, %v1515_v11  ;;  %v1175_v16 = vmax.f32 %v2925_v44, %v1150_v12  ;;  %v1104_v19 = vadd.f32 %v2839_v38, %v1103_v52  ;;  %v1445_v31 = vadd.f32 %v2839_v38, %v1444_v15 }
 0x184   : > { %v2274_v39 = vpop.f32.mrf.mxu0  ;;  %v2353_v21 = vpop.f32.mrf.mxu1 }
 0x185   : > { %1642 = vst.msk [vmem:[%s2960_s27 + $0x44] sm:$0xf] %vm1624_vm3, %v1937_v14  ;;  %v1516_v22 = vmax.f32 %v1175_v16, %v1491_v13  ;;  %v1151_v24 = vmax.f32 %v1104_v19, 0.0  ;;  %v1492_v25 = vmax.f32 %v1445_v31, 0.0 }
 0x186   : > { %v1108_v51 = vpop.f32.mrf.mxu0  ;;  %v1449_v26 = vpop.f32.mrf.mxu1 }
 0x187   : > { %v1938_v61 = vpack.c.bf16 %v1516_v22, %v1516_v22  ;;  %v1176_v27 = vmax.f32 %v2929_v55, %v1151_v24  ;;  %v1109_v29 = vadd.f32 %v2839_v38, %v1108_v51  ;;  %v1450_v44 = vadd.f32 %v2839_v38, %v1449_v26 }
 0x188   : > { %v2277_v23 = vpop.f32.mrf.mxu0  ;;  %v2356_v49 = vpop.f32.mrf.mxu1 }
 0x189   : > { %1643 = vst.msk [vmem:[%s2960_s27 + $0x48] sm:$0xf] %vm1624_vm3, %v1938_v61  ;;  %v1517_v33 = vmax.f32 %v1176_v27, %v1492_v25  ;;  %v1152_v34 = vmax.f32 %v1109_v29, 0.0  ;;  %v1493_v35 = vmax.f32 %v1450_v44, 0.0 }
 0x18a   : > { %v1113_v36 = vpop.f32.mrf.mxu0  ;;  %v1454_v37 = vpop.f32.mrf.mxu1 }
 0x18b   : > { %v1939_v40 = vpack.c.bf16 %v1517_v33, %v1517_v33  ;;  %v1177_v41 = vmax.f32 %v2933_v4, %v1152_v34  ;;  %v1114_v8 = vadd.f32 %v2839_v38, %v1113_v36  ;;  %v1455_v55 = vadd.f32 %v2839_v38, %v1454_v37 }
 0x18c   : > { %v2280_v43 = vpop.f32.mrf.mxu0  ;;  %v2359_v46 = vpop.f32.mrf.mxu1 }
 0x18d   : > { %1644 = vst.msk [vmem:[%s2960_s27 + $0x4c] sm:$0xf] %vm1624_vm3, %v1939_v40  ;;  %v1518_v60 = vmax.f32 %v1177_v41, %v1493_v35  ;;  %v1153_v59 = vmax.f32 %v1114_v8, 0.0  ;;  %v1494_v32 = vmax.f32 %v1455_v55, 0.0 }
 0x18e   : > { %v1118_v47 = vpop.f32.mrf.mxu0  ;;  %v1459_v48 = vpop.f32.mrf.mxu1 }
 0x18f   : > { %v1940_v50 = vpack.c.bf16 %v1518_v60, %v1518_v60  ;;  %v1178_v53 = vmax.f32 %v2937_v17, %v1153_v59  ;;  %v1119_v54 = vadd.f32 %v2839_v38, %v1118_v47  ;;  %v1460_v4 = vadd.f32 %v2839_v38, %v1459_v48  ;;  %v2381_v17 = vld [vmem:[%s3086_s2] ss:$0 sm:$0xff] }
 0x190   : > { %v2283_v1 = vpop.f32.mrf.mxu0  ;;  %v2362_v18 = vpop.f32.mrf.mxu1 }
 0x191   : > { %1645 = vst.msk [vmem:[%s2960_s27 + $0x50] sm:$0xf] %vm1624_vm3, %v1940_v50  ;;  %v1519_v56 = vmax.f32 %v1178_v53, %v1494_v32  ;;  %v1154_v9 = vmax.f32 %v1119_v54, 0.0  ;;  %v1495_v58 = vmax.f32 %v1460_v4, 0.0 }
 0x192   : > { %v1123_v62 = vpop.f32.mrf.mxu0  ;;  %v1464_v63 = vpop.f32.mrf.mxu1 }
 0x193   : > { %v1941_v42 = vpack.c.bf16 %v1519_v56, %v1519_v56  ;;  %v1179_v5 = vmax.f32 %v2941_v30, %v1154_v9  ;;  %v1124_v0 = vadd.f32 %v2839_v38, %v1123_v62  ;;  %v1465_v2 = vadd.f32 %v2381_v17, %v1464_v63 }
 0x194   : > { %v2286_v3 = vpop.f32.mrf.mxu0  ;;  %v2365_v6 = vpop.f32.mrf.mxu1 }
 0x195   : > { %1646 = vst.msk [vmem:[%s2960_s27 + $0x54] sm:$0xf] %vm1624_vm3, %v1941_v42  ;;  %v1520_v28 = vmax.f32 %v1179_v5, %v1495_v58  ;;  %v1155_v20 = vmax.f32 %v1124_v0, 0.0  ;;  %v1496_v7 = vmax.f32 %v1465_v2, 0.0 }
 0x196   : > { %v1128_v10 = vpop.f32.mrf.mxu0  ;;  %v1469_v11 = vpop.f32.mrf.mxu1 }
 0x197   : > { %v1942_v12 = vpack.c.bf16 %v1520_v28, %v1520_v28  ;;  %v1180_v38 = vmax.f32 %v2945_v45, %v1155_v20  ;;  %v1129_v30 = vadd.f32 %v2381_v17, %v1128_v10  ;;  %v1470_v13 = vadd.f32 %v2381_v17, %v1469_v11 }
 0x198   : > { %v2289_v52 = vpop.f32.mrf.mxu0  ;;  %v2368_v15 = vpop.f32.mrf.mxu1 }
 0x199   : > { %1647 = vst.msk [vmem:[%s2960_s27 + $0x58] sm:$0xf] %vm1624_vm3, %v1942_v12  ;;  %v1521_v14 = vmax.f32 %v1180_v38, %v1496_v7  ;;  %v1156_v16 = vmax.f32 %v1129_v30, 0.0  ;;  %v1497_v19 = vmax.f32 %v1470_v13, 0.0 }
 0x19b   : > { %v1943_v31 = vpack.c.bf16 %v1521_v14, %v1521_v14  ;;  %v1181_v39 = vmax.f32 %v2949_v57, %v1156_v16 }
 0x19d   : > { %1648 = vst.msk [vmem:[%s2960_s27 + $0x5c] sm:$0xf] %vm1624_vm3, %v1943_v31  ;;  %v1522_v21 = vmax.f32 %v1181_v39, %v1497_v19 }
 0x19f   : > { %v1944_v22 = vpack.c.bf16 %v1522_v21, %v1522_v21 }
 0x1a1   : > { %1650 = vst.msk [vmem:[%s2960_s27 + $0x60] sm:$0x3] %vm1649_vm4, %v1944_v22 }
 0x1a2 PF: > { %s13_s12 = sadd.s32 1, %s2388_s12  }
 0x1a3   : > { %p10_p4 = scmp.ge.s32.totalorder %s13_s12, 4  }
 0x1a5   :  { %12 = sbr.rel (!%p10_p4) target bundleno = 1 (0x1), region = 65 }

// kernel: fashion_cnn_forward.4
= control target key start
LH: loop header
LB: loop body
LE: loop exit
PB: predicated region body
PF: predicated region fallthrough
CT: control target
= control target key end

     0   :  { %s1569_s12 = smov 0   ;;  %s1905_s0 = inlined_call_operand.vmem [shape: bf16[2,4,36,288], index: 0, kind: input, shape index: {}]   ;;  %s1906_s1 = inlined_call_operand.vmem [shape: bf16[288,64], index: 1, kind: input, shape index: {}]   ;;  %s1907_s2 = inlined_call_operand.vmem [shape: f32[1,64], index: 2, kind: input, shape index: {}]   ;;  %s1908_s3 = inlined_call_operand.vmem [shape: bf16[2,36,64], index: 3, kind: output, shape index: {}]  }
   0x1 LB: > { %s1129_s13 = sadd.s32 4294967295, %s1545_s12   ;;  %p1133_p0 = scmp.ge.s32.totalorder %s1545_s12, 1  ;;  %s1545_s12 = sphi %s1569_s12, %s13_s12  }
   0x2   : > { %p137_p1 = scmp.lt.s32.totalorder %s1545_s12, 3 }
   0x4   : > { %p138_p2 = pnand %p1133_p0, %p137_p1 }
   0x5   : > { %p161_p3 = scmp.lt.s32.totalorder (!%p138_p2), %s1129_s13, 1 }
   0x6   : > { %141 = sbr.rel (%p138_p2) target bundleno = 340 (0x154), region = 32 }
   0xb   : > { %v1580_v0 = vld [vmem:[%s1906_s1 + $0x78] sm:$0xff]   ;;  %v1547_v1 = vmov 0.0   ;;  %v1586_v2 = vld [vmem:[%s1906_s1 + $0x88] sm:$0xff]   ;;  %vm1548_vm0 = vmmov 0   ;;  %v1600_v4 = vld [vmem:[%s1906_s1 + $0x70] sm:$0xff]   ;;  %s1910_s13 = smov (!%p161_p3, %s1129_s13), 1 }
   0xc   : > { %1401 = vmatprep.subr.bf16.mxu1 %v1547_v1  ;;  %1245 = vmatprep.subr.bf16.mxu0 %v1580_v0  ;;  %v1592_v3 = vld [vmem:[%s1906_s1 + $0x38] sm:$0xff]   ;;  %v1607_v5 = vld [vmem:[%s1906_s1 + $0x80] sm:$0xff]   ;;  %v1615_v6 = vld [vmem:[%s1906_s1 + $0x30] sm:$0xff]   ;;  %s1465_s26 = smul.u32 240, %s1910_s13  ;;  %vm373_vm1 = vcmask 261120   ;;  %vm1067_vm2 = vcmask 519168  }
   0xd   : > { %1405 = vmatprep.mubr.msk.bf16.mxu1 %vm1548_vm0, %v1547_v1  ;;  %1402 = vmatpush3.bf16.msra.mxu1 %v1586_v2  ;;  %v1621_v7 = vld [vmem:[%s1906_s1 + $0x68] sm:$0xff]   ;;  %v1639_v9 = vld [vmem:[%s1906_s1 + $0x60] sm:$0xff]   ;;  %v1656_v12 = vld [vmem:[%s1906_s1 + $0x58] sm:$0xff]   ;;  %s1466_s4 = smul.u32 20, %s1910_s13  ;;  %vm1072_vm3 = vcmask 517120  }
   0xe   : > { %1246 = vmatpush3.bf16.msra.mxu0 %v1592_v3  ;;  %1403 = vmatprep.subr.bf16.mxu1 %v1547_v1  ;;  %v1627_v8 = vld [vmem:[%s1906_s1 + $0x28] sm:$0xff]   ;;  %s1633_s6 = scalar_lea.vmem %s1905_s0, %s1465_s26  ;;  %v1649_v11 = vld [vmem:[%s1906_s1 + $0x20] sm:$0xff]   ;;  %v1666_v14 = vld [vmem:[%s1906_s1 + $0x18] sm:$0xff]  }
   0xf   : > { %1247 = vmatprep.subr.bf16.mxu0 %v1600_v4  ;;  %v1483_v10 = vld [vmem:[%s1633_s6 + $0x8] ss:$12 sps:$4 sm:$0xff]   ;;  %v1490_v13 = vld [vmem:[%s1633_s6 + $0x20] ss:$12 sps:$4 sm:$0xff]   ;;  %v1500_v18 = vld [vmem:[%s1633_s6 + $0x4] ss:$12 sps:$4 sm:$0xff]  }
  0x10   : > { %v1673_v15 = vld [vmem:[%s1906_s1 + $0x50] sm:$0xff]   ;;  %v1688_v17 = vld [vmem:[%s1906_s1 + $0x48] sm:$0xff]   ;;  %v1495_v19 = vld [vmem:[%s1633_s6 + $0x38] ss:$0 sps:$4 sm:$0x33]   ;;  %415 = vmatprep.mubr.bf16.mxu0 %v1500_v18 }
  0x11   : > { %1404 = vmatpush3.bf16.msra.mxu1 %v1607_v5  ;;  %v1681_v16 = vld [vmem:[%s1906_s1 + $0x10] sm:$0xff]   ;;  %v1699_v20 = vld [vmem:[%s1906_s1 + $0x8] sm:$0xff]   ;;  %v1706_v21 = vld [vmem:[%s1906_s1 + $0x40] sm:$0xff]  }
  0x12   : > { %1248 = vmatpush3.bf16.msra.mxu0 %v1615_v6  ;;  %1284 = vmatprep.subr.bf16.mxu1 %v1580_v0  ;;  %v1503_v22 = vld [vmem:[%s1633_s6 + $0x40] ss:$12 sps:$4 sm:$0xff]   ;;  %v1504_v25 = vld [vmem:[%s1633_s6 + $0x1c] ss:$12 sps:$4 sm:$0xff]   ;;  %v217_v26 = vld [vmem:[%s1633_s6 + $0x30] sm:$0x33] }
  0x13   : > { %1249 = vmatprep.subr.bf16.mxu0 %v1621_v7  ;;  %v1715_v23 = vld [vmem:[%s1906_s1] sm:$0xff]   ;;  %v1501_v27 = vld [vmem:[%s1633_s6 + $0x3c] ss:$12 sps:$4 sm:$0xff]   ;;  %v1144_v29 = vcombine.high %v217_v26, %v217_v26  ;;  %v1175_v31 = vld [vmem:[%s1633_s6 + $0x6c] sm:$0x33]  ;;  %v1143_v32 = vcombine.low %v217_v26, %v217_v26 }
  0x14   : > { %1406 = vmatmul.mubr.msk.bf16.vlgmr.msra.gmra.mxu1 %vm373_vm1, %v1483_v10  ;;  %v1498_v24 = vld [vmem:[%s1633_s6] ss:$12 sps:$4 sm:$0xff]   ;;  %v1506_v28 = vld [vmem:[%s1633_s6 + $0x18] ss:$12 sps:$4 sm:$0xff]   ;;  %v1184_v34 = vcombine.high %v1175_v31, %v1175_v31  ;;  %v1183_v36 = vcombine.low %v1175_v31, %v1175_v31  ;;  %v1518_v37 = vld [vmem:[%s1633_s6 + $0x7c] ss:$12 sps:$4 sm:$0xff]  }
  0x15   : > { %1285 = vmatpush3.bf16.msra.mxu1 %v1592_v3  ;;  %1409 = vmatprep.mubr.msk.bf16.mxu1 %vm1548_vm0, %v1547_v1  ;;  %v1509_v30 = vld [vmem:[%s1633_s6 + $0x58] ss:$12 sps:$4 sm:$0xff]   ;;  %v1511_v33 = vld [vmem:[%s1633_s6 + $0x54] ss:$12 sps:$4 sm:$0xff]   ;;  %v1515_v38 = vld [vmem:[%s1633_s6 + $0x5c] ss:$12 sps:$4 sm:$0xff]  }
  0x16   : > { %1250 = vmatpush3.bf16.msra.mxu0 %v1627_v8  ;;  %1286 = vmatprep.subr.bf16.mxu1 %v1600_v4  ;;  %v1512_v35 = vld [vmem:[%s1633_s6 + $0x44] ss:$12 sps:$4 sm:$0xff]   ;;  %v1519_v40 = vld [vmem:[%s1633_s6 + $0x74] ss:$0 sps:$4 sm:$0x33]  }
  0x17   : > { %1251 = vmatprep.subr.bf16.mxu0 %v1639_v9  ;;  %v1516_v39 = vld [vmem:[%s1633_s6 + $0x78] ss:$12 sps:$4 sm:$0xff]   ;;  %v1520_v41 = vld [vmem:[%s1633_s6 + $0x94] ss:$12 sps:$4 sm:$0xff]   ;;  %v1523_v43 = vld [vmem:[%s1633_s6 + $0x90] ss:$12 sps:$4 sm:$0xff]  }
  0x18   : > { %v1522_v42 = vld [vmem:[%s1633_s6 + $0x80] ss:$12 sps:$4 sm:$0xff]   ;;  %v1525_v46 = vld [vmem:[%s1633_s6 + $0x98] ss:$12 sps:$4 sm:$0xff]   ;;  %v1531_v51 = vld [vmem:[%s1633_s6 + $0xbc] ss:$12 sps:$4 sm:$0xff]  }
  0x19   : > { %1287 = vmatpush3.bf16.msra.mxu1 %v1615_v6  ;;  %v1197_v44 = vld [vmem:[%s1633_s6 + $0xa8] sm:$0x33]  ;;  %v1530_v48 = vld [vmem:[%s1633_s6 + $0xb8] ss:$12 sps:$4 sm:$0xff]   ;;  %v1528_v50 = vld [vmem:[%s1633_s6 + $0xb4] ss:$12 sps:$4 sm:$0xff]  }
  0x1a   : > { %1252 = vmatpush3.bf16.msra.mxu0 %v1649_v11  ;;  %1288 = vmatprep.subr.bf16.mxu1 %v1621_v7  ;;  %v1206_v45 = vcombine.high %v1197_v44, %v1197_v44  ;;  %v1205_v47 = vcombine.low %v1197_v44, %v1197_v44  ;;  %v1527_v49 = vld [vmem:[%s1633_s6 + $0xb0] ss:$0 sps:$4 sm:$0x33]   ;;  %v1219_v53 = vld [vmem:[%s1633_s6 + $0xe4] sm:$0x33] }
  0x1b   : > { %1253 = vmatprep.subr.bf16.mxu0 %v1656_v12  ;;  %v1532_v52 = vld [vmem:[%s1633_s6 + $0xd0] ss:$12 sps:$4 sm:$0xff]   ;;  %v1534_v54 = vld [vmem:[%s1633_s6 + $0xcc] ss:$12 sps:$4 sm:$0xff]   ;;  %v1535_v55 = vld [vmem:[%s1633_s6 + $0xd4] ss:$12 sps:$4 sm:$0xff]   ;;  %v1228_v56 = vcombine.high %v1219_v53, %v1219_v53  ;;  %v1227_v57 = vcombine.low %v1219_v53, %v1219_v53 }
  0x1c   : > { %1410 = vmatmul.mubr.msk.bf16.gmra.mxu1 %vm373_vm1, %v1490_v13  ;;  %v1538_v58 = vld [vmem:[%s1633_s6 + $0xec] ss:$0 sps:$4 sm:$0x33]   ;;  %s1883_s6 = scalar_lea.vmem %s1908_s3, %s1466_s4 }
  0x1d   : > { %1289 = vmatpush3.bf16.msra.mxu1 %v1627_v8  ;;  %1413 = vmatprep.mubr.msk.bf16.mxu1 %vm1548_vm0, %v1547_v1 }
  0x1e   : > { %1254 = vmatpush3.bf16.msra.mxu0 %v1666_v14  ;;  %1290 = vmatprep.subr.bf16.mxu1 %v1639_v9 }
  0x1f   : > { %1255 = vmatprep.subr.bf16.mxu0 %v1673_v15 }
  0x21   : > { %1291 = vmatpush3.bf16.msra.mxu1 %v1649_v11 }
  0x22   : > { %1256 = vmatpush3.bf16.msra.mxu0 %v1681_v16  ;;  %1292 = vmatprep.subr.bf16.mxu1 %v1656_v12 }
  0x23   : > { %1257 = vmatprep.subr.bf16.mxu0 %v1688_v17 }
  0x24   : > { %1414 = vmatmul.mubr.msk.bf16.gmra.mxu1 %vm373_vm1, %v1495_v19 }
  0x25   : > { %1293 = vmatpush3.bf16.msra.mxu1 %v1666_v14  ;;  %592 = vmatprep.mubr.bf16.mxu1 %v1503_v22 }
  0x26   : > { %1258 = vmatpush3.bf16.msra.mxu0 %v1699_v20  ;;  %1294 = vmatprep.subr.bf16.mxu1 %v1673_v15 }
  0x27   : > { %1259 = vmatprep.subr.bf16.mxu0 %v1706_v21 }
  0x29   : > { %1295 = vmatpush3.bf16.msra.mxu1 %v1681_v16 }
  0x2a   : > { %1260 = vmatpush3.bf16.msra.mxu0 %v1715_v23  ;;  %1296 = vmatprep.subr.bf16.mxu1 %v1688_v17 }
  0x2b   : > { %1417 = vmatprep.subr.bf16.mxu0 %v1547_v1 }
  0x2d   : > { %416 = vmatmul.mubr.bf16.vlgmr.msra.gmra.mxu0 %v1498_v24  ;;  %1297 = vmatpush3.bf16.msra.mxu1 %v1699_v20 }
  0x2e   : > { %1418 = vmatpush3.bf16.msra.mxu0 %v1586_v2  ;;  %1298 = vmatprep.subr.bf16.mxu1 %v1706_v21 }
  0x2f   : > { %423 = vmatprep.mubr.bf16.mxu0 %v1504_v25  ;;  %1419 = vmatprep.subr.bf16.mxu0 %v1547_v1 }
  0x31   : > { %1299 = vmatpush3.bf16.msra.mxu1 %v1715_v23 }
  0x32   : > { %1420 = vmatpush3.bf16.msra.mxu0 %v1607_v5  ;;  %1323 = vmatprep.subr.bf16.mxu1 %v1580_v0 }
  0x33   : > { %1433 = vmatprep.subr.bf16.mxu0 %v1547_v1 }
  0x34   : > { %593 = vmatmul.mubr.bf16.vlgmr.msra.gmra.mxu1 %v1501_v27 }
  0x35   : > { %424 = vmatmul.mubr.bf16.gmra.mxu0 %v1506_v28  ;;  %1324 = vmatpush3.bf16.msra.mxu1 %v1592_v3 }
  0x36   : > { %431 = vmatprep.mubr.bf16.mxu0 %v1144_v29  ;;  %1325 = vmatprep.subr.bf16.mxu1 %v1600_v4 }
  0x37   : > { %600 = vmatprep.mubr.bf16.mxu1 %v1509_v30 }
  0x39   : > { %1326 = vmatpush3.bf16.msra.mxu1 %v1615_v6 }
  0x3a   : > { %1327 = vmatprep.subr.bf16.mxu1 %v1621_v7 }
  0x3c   : > { %601 = vmatmul.mubr.bf16.gmra.mxu1 %v1511_v33 }
  0x3d   : > { %432 = vmatmul.mubr.bf16.gmra.mxu0 %v1143_v32  ;;  %1328 = vmatpush3.bf16.msra.mxu1 %v1627_v8 }
  0x3e   : > { %1421 = vmatprep.mubr.msk.bf16.mxu0 %vm1548_vm0, %v1547_v1  ;;  %1329 = vmatprep.subr.bf16.mxu1 %v1639_v9 }
  0x3f   : > { %608 = vmatprep.mubr.bf16.mxu1 %v1184_v34 }
  0x41   : > { %1330 = vmatpush3.bf16.msra.mxu1 %v1649_v11 }
  0x42   : > { %1331 = vmatprep.subr.bf16.mxu1 %v1656_v12 }
  0x44   : > { %609 = vmatmul.mubr.bf16.gmra.mxu1 %v1183_v36 }
  0x45   : > { %1422 = vmatmul.mubr.msk.bf16.vlgmr.msra.gmra.mxu0 %vm373_vm1, %v1512_v35  ;;  %1332 = vmatpush3.bf16.msra.mxu1 %v1666_v14 }
  0x46   : > { %1434 = vmatpush3.bf16.msra.mxu0 %v1586_v2  ;;  %1333 = vmatprep.subr.bf16.mxu1 %v1673_v15 }
  0x47   : > { %1425 = vmatprep.mubr.msk.bf16.mxu0 %vm1548_vm0, %v1547_v1  ;;  %774 = vmatprep.mubr.bf16.mxu1 %v1518_v37 }
  0x48   : > { %1435 = vmatprep.subr.bf16.mxu0 %v1547_v1 }
  0x49   : > { %1334 = vmatpush3.bf16.msra.mxu1 %v1681_v16 }
  0x4a   : > { %1436 = vmatpush3.bf16.msra.mxu0 %v1607_v5  ;;  %1335 = vmatprep.subr.bf16.mxu1 %v1688_v17 }
  0x4b   : > { %1449 = vmatprep.subr.bf16.mxu0 %v1547_v1 }
  0x4d   : > { %1426 = vmatmul.mubr.msk.bf16.gmra.mxu0 %vm373_vm1, %v1515_v38  ;;  %1336 = vmatpush3.bf16.msra.mxu1 %v1699_v20 }
  0x4e   : > { %1429 = vmatprep.mubr.msk.bf16.mxu0 %vm1548_vm0, %v1547_v1  ;;  %1337 = vmatprep.subr.bf16.mxu1 %v1706_v21 }
  0x51   : > { %1338 = vmatpush3.bf16.msra.mxu1 %v1715_v23 }
  0x52   : > { %1362 = vmatprep.subr.bf16.mxu1 %v1580_v0 }
  0x54   : > { %775 = vmatmul.mubr.bf16.vlgmr.msra.gmra.mxu1 %v1516_v39 }
  0x55   : > { %1430 = vmatmul.mubr.msk.bf16.gmra.mxu0 %vm373_vm1, %v1519_v40  ;;  %1363 = vmatpush3.bf16.msra.mxu1 %v1592_v3 }
  0x56   : > { %1437 = vmatprep.mubr.msk.bf16.mxu0 %vm1548_vm0, %v1547_v1  ;;  %1364 = vmatprep.subr.bf16.mxu1 %v1600_v4 }
  0x57   : > { %782 = vmatprep.mubr.bf16.mxu1 %v1520_v41 }
  0x59   : > { %1365 = vmatpush3.bf16.msra.mxu1 %v1615_v6 }
  0x5a   : > { %1366 = vmatprep.subr.bf16.mxu1 %v1621_v7 }
  0x5c   : > { %783 = vmatmul.mubr.bf16.gmra.mxu1 %v1523_v43 }
  0x5d   : > { %1438 = vmatmul.mubr.msk.bf16.vlgmr.msra.gmra.mxu0 %vm373_vm1, %v1522_v42  ;;  %1367 = vmatpush3.bf16.msra.mxu1 %v1627_v8 }
  0x5e   : > { %1450 = vmatpush3.bf16.msra.mxu0 %v1586_v2  ;;  %1368 = vmatprep.subr.bf16.mxu1 %v1639_v9 }
  0x5f   : > { %1441 = vmatprep.mubr.msk.bf16.mxu0 %vm1548_vm0, %v1547_v1  ;;  %790 = vmatprep.mubr.bf16.mxu1 %v1206_v45 }
  0x60   : > { %1451 = vmatprep.subr.bf16.mxu0 %v1547_v1 }
  0x61   : > { %1369 = vmatpush3.bf16.msra.mxu1 %v1649_v11 }
  0x62   : > { %1452 = vmatpush3.bf16.msra.mxu0 %v1607_v5  ;;  %1370 = vmatprep.subr.bf16.mxu1 %v1656_v12 }
  0x64   : > { %791 = vmatmul.mubr.bf16.gmra.mxu1 %v1205_v47 }
  0x65   : > { %1442 = vmatmul.mubr.msk.bf16.gmra.mxu0 %vm373_vm1, %v1525_v46  ;;  %1371 = vmatpush3.bf16.msra.mxu1 %v1666_v14 }
  0x66   : > { %1445 = vmatprep.mubr.msk.bf16.mxu0 %vm1548_vm0, %v1547_v1  ;;  %1372 = vmatprep.subr.bf16.mxu1 %v1673_v15 }
  0x67   : > { %956 = vmatprep.mubr.bf16.mxu1 %v1530_v48 }
  0x69   : > { %1373 = vmatpush3.bf16.msra.mxu1 %v1681_v16 }
  0x6a   : > { %1374 = vmatprep.subr.bf16.mxu1 %v1688_v17 }
  0x6d   : > { %1446 = vmatmul.mubr.msk.bf16.gmra.mxu0 %vm373_vm1, %v1527_v49  ;;  %1375 = vmatpush3.bf16.msra.mxu1 %v1699_v20 }
  0x6e   : > { %1453 = vmatprep.mubr.msk.bf16.mxu0 %vm1548_vm0, %v1547_v1  ;;  %1376 = vmatprep.subr.bf16.mxu1 %v1706_v21 }
  0x71   : > { %1377 = vmatpush3.bf16.msra.mxu1 %v1715_v23 }
  0x74   : > { %957 = vmatmul.mubr.bf16.vlgmr.msra.gmra.mxu1 %v1528_v50 }
  0x75   : > { %1454 = vmatmul.mubr.msk.bf16.vlgmr.msra.gmra.mxu0 %vm373_vm1, %v1531_v51  ;;  %964 = vmatprep.mubr.bf16.mxu1 %v1532_v52 }
  0x76   : > { %1457 = vmatprep.mubr.msk.bf16.mxu0 %vm1548_vm0, %v1547_v1 }
  0x7c   : > { %965 = vmatmul.mubr.bf16.gmra.mxu1 %v1534_v54 }
  0x7d   : > { %1458 = vmatmul.mubr.msk.bf16.gmra.mxu0 %vm373_vm1, %v1535_v55  ;;  %972 = vmatprep.mubr.bf16.mxu1 %v1228_v56 }
  0x7e   : > { %1461 = vmatprep.mubr.msk.bf16.mxu0 %vm1548_vm0, %v1547_v1  ;;  %v1826_v1 = vld [vmem:[%s1907_s2] ss:$0 sm:$0xff] }
  0x84   : > { %973 = vmatmul.mubr.bf16.gmra.mxu1 %v1227_v57 }
  0x85   : > { %1462 = vmatmul.mubr.msk.bf16.gmra.mxu0 %vm373_vm1, %v1538_v58 }
  0xd4   : > { %v473_v59 = vpop.f32.mrf.mxu1 }
  0xd6   : > { %v1407_v60 = vpop.f32.mrf.mxu1 }
  0xd8   : > { %v476_v61 = vpop.f32.mrf.mxu1 }
  0xda   : > { %v1408_v62 = vpop.f32.mrf.mxu1 }
  0xdc   : > { %v481_v63 = vpop.f32.mrf.mxu1 }
  0xde   : > { %v1411_v0 = vpop.f32.mrf.mxu1 }
  0xe0   : > { %v484_v2 = vpop.f32.mrf.mxu1 }
  0xe2   : > { %v1412_v3 = vpop.f32.mrf.mxu1 }
  0xe4   : > { %v489_v4 = vpop.f32.mrf.mxu1 }
  0xe6   : > { %v1415_v5 = vpop.f32.mrf.mxu1 }
  0xe8   : > { %v492_v6 = vpop.f32.mrf.mxu1 }
  0xea   : > { %v1416_v7 = vpop.f32.mrf.mxu1 }
  0xed   : > { %v1261_v8 = vpop.f32.mrf.mxu0 }
  0xef   : > { %v1262_v9 = vpop.f32.mrf.mxu0 }
  0xf0   : > { %v1263_v10 = vadd.f32 %v1262_v9, %v1261_v8 }
  0xf1   : > { %v1264_v11 = vpop.f32.mrf.mxu0 }
  0xf2   : > { %v418_v12 = vadd.f32 %v1263_v10, %v1826_v1 }
  0xf3   : > { %v1265_v13 = vpop.f32.mrf.mxu0 }
  0xf4   : > { %v1829_v14 = vadd.f32 %v473_v59, %v418_v12  ;;  %v1266_v15 = vadd.f32 %v1265_v13, %v1264_v11  ;;  %v1831_v16 = vpop.f32.mrf.mxu1 }
  0xf5   : > { %v1267_v17 = vpop.f32.mrf.mxu0 }
  0xf6   : > { %v421_v18 = vadd.f32 %v1266_v15, %v1826_v1  ;;  %v1301_v19 = vpop.f32.mrf.mxu1 }
  0xf7   : > { %v1268_v20 = vpop.f32.mrf.mxu0 }
  0xf8   : > { %v1834_v21 = vadd.f32 %v476_v61, %v421_v18  ;;  %v1269_v22 = vadd.f32 %v1268_v20, %v1267_v17  ;;  %v1303_v23 = vpop.f32.mrf.mxu1  ;;  %v1302_v20 = vadd.f32 %v1301_v19, %v1831_v16 }
  0xf9   : > { %v1270_v24 = vpop.f32.mrf.mxu0 }
  0xfa   : > { %v426_v25 = vadd.f32 %v1269_v22, %v1826_v1  ;;  %v1304_v26 = vpop.f32.mrf.mxu1 }
  0xfb   : > { %v1271_v27 = vpop.f32.mrf.mxu0 }
  0xfc   : > { %v1837_v28 = vadd.f32 %v481_v63, %v426_v25  ;;  %v1272_v29 = vadd.f32 %v1271_v27, %v1270_v24  ;;  %v1306_v31 = vpop.f32.mrf.mxu1  ;;  %v1305_v25 = vadd.f32 %v1304_v26, %v1303_v23 }
  0xfd   : > { %v1273_v30 = vpop.f32.mrf.mxu0 }
  0xfe   : > { %v429_v32 = vadd.f32 %v1272_v29, %v1826_v1  ;;  %v1307_v34 = vpop.f32.mrf.mxu1  ;;  %v595_v29 = vadd.f32 %v1302_v20, %v1826_v1 }
  0xff   : > { %v1274_v33 = vpop.f32.mrf.mxu0 }
 0x100   : > { %v1840_v35 = vadd.f32 %v484_v2, %v429_v32  ;;  %v1275_v36 = vadd.f32 %v1274_v33, %v1273_v30  ;;  %v1309_v38 = vpop.f32.mrf.mxu1 }
 0x101   : > { %v1276_v37 = vpop.f32.mrf.mxu0 }
 0x102   : > { %v434_v39 = vadd.f32 %v1275_v36, %v1826_v1  ;;  %v1310_v41 = vpop.f32.mrf.mxu1  ;;  %v1308_v37 = vadd.f32 %v1307_v34, %v1306_v31 }
 0x103   : > { %v1277_v40 = vpop.f32.mrf.mxu0  ;;  %v1311_v26 = vadd.f32 %v1310_v41, %v1309_v38 }
 0x104   : > { %v1843_v42 = vadd.f32 %v489_v4, %v434_v39  ;;  %v1845_v44 = vpop.f32.mrf.mxu1  ;;  %v598_v39 = vadd.f32 %v1305_v25, %v1826_v1 }
 0x105   : > { %v650_v43 = vpop.f32.mrf.mxu0 }
 0x106   : > { %v1847_v46 = vpop.f32.mrf.mxu1  ;;  %v651_v33 = vadd.f32 %v650_v43, %v595_v29 }
 0x107   : > { %v1423_v45 = vpop.f32.mrf.mxu0 }
 0x108   : > { %v1315_v48 = vpop.f32.mrf.mxu1 }
 0x109   : > { %v653_v47 = vpop.f32.mrf.mxu0 }
 0x10a   : > { %v1316_v50 = vpop.f32.mrf.mxu1 }
 0x10b   : > { %v1424_v49 = vpop.f32.mrf.mxu0  ;;  %v654_v50 = vadd.f32 %v653_v47, %v598_v39 }
 0x10d   : > { %v1849_v51 = vpop.f32.mrf.mxu0 }
 0x10f   : > { %v1427_v52 = vpop.f32.mrf.mxu0 }
 0x110   : > { %v672_v52 = vmax.f32 %v651_v33, 0.0 }
 0x111   : > { %v1851_v53 = vpop.f32.mrf.mxu0 }
 0x113   : > { %v1428_v54 = vpop.f32.mrf.mxu0 }
 0x114   : > { %v1339_v55 = vpop.f32.mrf.mxu1 }
 0x115   : > { %v1853_v56 = vpop.f32.mrf.mxu0 }
 0x116   : > { %v1340_v57 = vpop.f32.mrf.mxu1 }
 0x117   : > { %v1431_v58 = vpop.f32.mrf.mxu0  ;;  %v1341_v24 = vadd.f32 %v1340_v57, %v1339_v55  ;;  %v603_v55 = vadd.f32 %v1308_v37, %v1826_v1 }
 0x118   : > { %v1342_v59 = vpop.f32.mrf.mxu1 }
 0x119   : > { %v669_v60 = vpop.f32.mrf.mxu0  ;;  %v777_v36 = vadd.f32 %v1341_v24, %v1826_v1  ;;  %v659_v38 = vadd.f32 %v1849_v51, %v603_v55 }
 0x11a   : > { %v1343_v61 = vpop.f32.mrf.mxu1 }
 0x11b   : > { %v1432_v62 = vpop.f32.mrf.mxu0  ;;  %v1344_v30 = vadd.f32 %v1343_v61, %v1342_v59  ;;  %v495_v59 = vmax.f32 %v1829_v14, 0.0  ;;  %v496_v61 = vmax.f32 %v1834_v21, 0.0 }
 0x11c   : > { %v1345_v0 = vpop.f32.mrf.mxu1  ;;  %v673_v62 = vmax.f32 %v654_v50, 0.0 }
 0x11d   : > { %v832_v63 = vpop.f32.mrf.mxu0  ;;  %v780_v16 = vadd.f32 %v1344_v30, %v1826_v1 }
 0x11e   : > { %v1346_v3 = vpop.f32.mrf.mxu1  ;;  %v833_v49 = vadd.f32 %v832_v63, %v777_v36  ;;  %v678_v20 = vmax.f32 %v496_v61, %v673_v62  ;;  %v499_v62 = vmax.f32 %v1843_v42, 0.0 }
 0x11f   : > { %v1439_v2 = vpop.f32.mrf.mxu0  ;;  %v1347_v40 = vadd.f32 %v1346_v3, %v1345_v0  ;;  %v677_v0 = vmax.f32 %v495_v59, %v672_v52 }
 0x120   : > { %v1348_v5 = vpop.f32.mrf.mxu1  ;;  %v854_v60 = vmax.f32 %v833_v49, 0.0  ;;  %v606_v2 = vadd.f32 %v1311_v26, %v1826_v1 }
 0x121   : > { %v835_v4 = vpop.f32.mrf.mxu0  ;;  %v785_v31 = vadd.f32 %v1347_v40, %v1826_v1 }
 0x122   : > { %v1349_v7 = vpop.f32.mrf.mxu1  ;;  %v836_v43 = vadd.f32 %v835_v4, %v780_v16  ;;  %v662_v24 = vadd.f32 %v1851_v53, %v606_v2 }
 0x123   : > { %v1440_v6 = vpop.f32.mrf.mxu0  ;;  %v1350_v57 = vadd.f32 %v1349_v7, %v1348_v5  ;;  %v1314_v5 = vadd.f32 %v1847_v46, %v1845_v44  ;;  %v497_v44 = vmax.f32 %v1837_v28, 0.0 }
 0x124   : > { %v1351_v9 = vpop.f32.mrf.mxu1  ;;  %v855_v14 = vmax.f32 %v836_v43, 0.0 }
 0x125   : > { %v840_v8 = vpop.f32.mrf.mxu0  ;;  %v788_v7 = vadd.f32 %v1350_v57, %v1826_v1  ;;  %v611_v30 = vadd.f32 %v1314_v5, %v1826_v1 }
 0x126   : > { %v1352_v11 = vpop.f32.mrf.mxu1  ;;  %v841_v6 = vadd.f32 %v840_v8, %v785_v31 }
 0x127   : > { %v1443_v10 = vpop.f32.mrf.mxu0 }
 0x128   : > { %v1354_v13 = vpop.f32.mrf.mxu1  ;;  %v856_v33 = vmax.f32 %v841_v6, 0.0 }
 0x129   : > { %v1855_v12 = vpop.f32.mrf.mxu0  ;;  %v859_v13 = vmax.f32 %v677_v0, %v854_v60 }
 0x12a   : > { %v1355_v17 = vpop.f32.mrf.mxu1 }
 0x12b   : > { %v1444_v15 = vpop.f32.mrf.mxu0 }
 0x12c   : > { %v1353_v15 = vadd.f32 %v1352_v11, %v1351_v9  ;;  %v844_v9 = vadd.f32 %v1855_v12, %v788_v7  ;;  %v667_v12 = vadd.f32 %v1853_v56, %v611_v30 }
 0x12d   : > { %v1857_v18 = vpop.f32.mrf.mxu0 }
 0x12e   : > { %v793_v36 = vadd.f32 %v1353_v15, %v1826_v1  ;;  %v857_v52 = vmax.f32 %v844_v9, 0.0  ;;  %v676_v60 = vmax.f32 %v667_v12, 0.0 }
 0x12f   : > { %v1447_v22 = vpop.f32.mrf.mxu0 }
 0x130   : > { %v674_v22 = vmax.f32 %v659_v38, 0.0  ;;  %v849_v43 = vadd.f32 %v1857_v18, %v793_v36 }
 0x131   : > { %v851_v27 = vpop.f32.mrf.mxu0 }
 0x132   : > { %v679_v40 = vmax.f32 %v497_v44, %v674_v22 }
 0x133   : > { %v1448_v32 = vpop.f32.mrf.mxu0 }
 0x134   : > { %v1378_v45 = vpop.f32.mrf.mxu1  ;;  %v860_v32 = vmax.f32 %v678_v20, %v855_v14  ;;  %v861_v26 = vmax.f32 %v679_v40, %v856_v33  ;;  %v681_v14 = vmax.f32 %v499_v62, %v676_v60 }
 0x135   : > { %v1014_v48 = vpop.f32.mrf.mxu0 }
 0x136   : > { %v1379_v19 = vpop.f32.mrf.mxu1 }
 0x137   : > { %v1455_v23 = vpop.f32.mrf.mxu0  ;;  %v1380_v54 = vadd.f32 %v1379_v19, %v1378_v45  ;;  %v675_v45 = vmax.f32 %v662_v24, 0.0 }
 0x138   : > { %v1381_v34 = vpop.f32.mrf.mxu1  ;;  %v498_v23 = vmax.f32 %v1840_v35, 0.0 }
 0x139   : > { %v1017_v58 = vpop.f32.mrf.mxu0  ;;  %v959_v47 = vadd.f32 %v1380_v54, %v1826_v1 }
 0x13a   : > { %v1382_v41 = vpop.f32.mrf.mxu1 }
 0x13b   : > { %v1456_v63 = vpop.f32.mrf.mxu0  ;;  %v1015_v3 = vadd.f32 %v1014_v48, %v959_v47  ;;  %v1383_v4 = vadd.f32 %v1382_v41, %v1381_v34 }
 0x13c   : > { %v1384_v10 = vpop.f32.mrf.mxu1  ;;  %v858_v63 = vmax.f32 %v849_v43, 0.0 }
 0x13d   : > { %v1022_v21 = vpop.f32.mrf.mxu0  ;;  %v1036_v51 = vmax.f32 %v1015_v3, 0.0  ;;  %v962_v17 = vadd.f32 %v1383_v4, %v1826_v1 }
 0x13e   : > { %v1385_v25 = vpop.f32.mrf.mxu1 }
 0x13f   : > { %v1459_v27 = vpop.f32.mrf.mxu0  ;;  %v1041_v46 = vmax.f32 %v859_v13, %v1036_v51  ;;  %v1018_v8 = vadd.f32 %v1017_v58, %v962_v17  ;;  %v1386_v29 = vadd.f32 %v1385_v25, %v1384_v10  ;;  %v680_v58 = vmax.f32 %v498_v23, %v675_v45 }
 0x140   : > { %v1387_v53 = vpop.f32.mrf.mxu1  ;;  %v863_v10 = vmax.f32 %v681_v14, %v858_v63 }
 0x141   : > { %v1025_v11 = vpop.f32.mrf.mxu0  ;;  %v1240_v28 = vpack.c.bf16 %v1041_v46, %v1041_v46  ;;  %v1037_v37 = vmax.f32 %v1018_v8, 0.0  ;;  %v967_v39 = vadd.f32 %v1386_v29, %v1826_v1  ;;  %v862_v38 = vmax.f32 %v680_v58, %v857_v52 }
 0x142   : > { %v1388_v48 = vpop.f32.mrf.mxu1 }
 0x143   : > { %v1460_v49 = vpop.f32.mrf.mxu0  ;;  %1068 = vst.msk [vmem:[%s1883_s6] sm:$0xf] %vm1067_vm2, %v1240_v28  ;;  %v1042_v50 = vmax.f32 %v860_v32, %v1037_v37  ;;  %v1023_v16 = vadd.f32 %v1022_v21, %v967_v39  ;;  %v1389_v19 = vadd.f32 %v1388_v48, %v1387_v53 }
 0x144   : > { %v1390_v54 = vpop.f32.mrf.mxu1 }
 0x145   : > { %v1030_v55 = vpop.f32.mrf.mxu0  ;;  %v1241_v57 = vpack.c.bf16 %v1042_v50, %v1042_v50  ;;  %v1038_v31 = vmax.f32 %v1023_v16, 0.0  ;;  %v970_v34 = vadd.f32 %v1389_v19, %v1826_v1 }
 0x146   : > { %v1391_v56 = vpop.f32.mrf.mxu1 }
 0x147   : > { %v1463_v59 = vpop.f32.mrf.mxu0  ;;  %1069 = vst.msk [vmem:[%s1883_s6 + $0x4] sm:$0xf] %vm1067_vm2, %v1241_v57  ;;  %v1043_v47 = vmax.f32 %v861_v26, %v1038_v31  ;;  %v1026_v61 = vadd.f32 %v1025_v11, %v970_v34  ;;  %v1392_v35 = vadd.f32 %v1391_v56, %v1390_v54 }
 0x148   : > { %v1393_v41 = vpop.f32.mrf.mxu1 }
 0x149   : > { %v1033_v18 = vpop.f32.mrf.mxu0  ;;  %v1242_v0 = vpack.c.bf16 %v1043_v47, %v1043_v47  ;;  %v1039_v2 = vmax.f32 %v1026_v61, 0.0  ;;  %v975_v3 = vadd.f32 %v1392_v35, %v1826_v1 }
 0x14a   : > { %v1394_v4 = vpop.f32.mrf.mxu1 }
 0x14b   : > { %v1464_v5 = vpop.f32.mrf.mxu0  ;;  %1070 = vst.msk [vmem:[%s1883_s6 + $0x8] sm:$0xf] %vm1067_vm2, %v1242_v0  ;;  %v1044_v6 = vmax.f32 %v862_v38, %v1039_v2  ;;  %v1031_v7 = vadd.f32 %v1030_v55, %v975_v3 }
 0x14d   : > { %v1243_v21 = vpack.c.bf16 %v1044_v6, %v1044_v6  ;;  %v1040_v42 = vmax.f32 %v1031_v7, 0.0 }
 0x14f   : > { %1071 = vst.msk [vmem:[%s1883_s6 + $0xc] sm:$0xf] %vm1067_vm2, %v1243_v21  ;;  %v1045_v13 = vmax.f32 %v863_v10, %v1040_v42 }
 0x151   : > { %v1244_v15 = vpack.c.bf16 %v1045_v13, %v1045_v13 }
 0x153   : > { %1073 = vst.msk [vmem:[%s1883_s6 + $0x10] sm:$0x3] %vm1072_vm3, %v1244_v15 }
 0x154 PF: > { %s13_s12 = sadd.s32 1, %s1545_s12  }
 0x155   : > { %p10_p4 = scmp.ge.s32.totalorder %s13_s12, 4  }
 0x157   :  { %12 = sbr.rel (!%p10_p4) target bundleno = 1 (0x1), region = 65 }

// kernel: fashion_cnn_forward.5
= control target key start
LH: loop header
LB: loop body
LE: loop exit
PB: predicated region body
PF: predicated region fallthrough
CT: control target
= control target key end

     0   :  { %v897_v36 = vlaneseq  ;;  %v8641_v37 = vmov 1966171168   ;;  %s11250_s0 = inlined_call_operand.vmem [shape: bf16[2,2304], index: 0, kind: input, shape index: {}]   ;;  %s11251_s1 = inlined_call_operand.vmem [shape: bf16[2304,640], index: 1, kind: input, shape index: {}]   ;;  %s11252_s2 = inlined_call_operand.vmem [shape: f32[1,640], index: 2, kind: input, shape index: {}]   ;;  %s11253_s3 = inlined_call_operand.vmem [shape: bf16[640,128], index: 3, kind: input, shape index: {}]   ;;  %s11254_s4 = inlined_call_operand.vmem [shape: f32[1,128], index: 4, kind: input, shape index: {}]   ;;  %s11255_s5 = inlined_call_operand.vmem [shape: bf16[128,10], index: 5, kind: input, shape index: {}]   ;;  %s11256_s6 = inlined_call_operand.vmem [shape: f32[1,10], index: 6, kind: input, shape index: {}]   ;;  %s11257_s7 = inlined_call_operand.hbm [shape: f32[2,10], index: 7, kind: output, shape index: {}]  }
   0x1   :  { %v7560_v0 = vld [vmem:[%s11251_s1 + $0x11c] ss:$20 sps:$4 sm:$0xff]   ;;  %v7564_v2 = vld [vmem:[%s11251_s1 + $0x118] ss:$20 sps:$4 sm:$0xff]   ;;  %v7566_v4 = vld [vmem:[%s11251_s1 + $0xf4] ss:$20 sps:$4 sm:$0xff]   ;;  %v927_v38 = vunpack.c.l.s4 %v8641_v37 }
   0x2   :  { %v7562_v1 = vld [vmem:[%s11251_s1 + $0x39c] ss:$20 sps:$4 sm:$0xff]   ;;  %4807 = vmatprep.subr.bf16.mxu0 %v7560_v0  ;;  %v7565_v3 = vld [vmem:[%s11251_s1 + $0x398] ss:$20 sps:$4 sm:$0xff]   ;;  %v7568_v5 = vld [vmem:[%s11251_s1 + $0x374] ss:$20 sps:$4 sm:$0xff]  }
   0x3   :  { %4848 = vmatprep.subr.bf16.mxu1 %v7562_v1  ;;  %4808 = vmatpush1.bf16.msra.mxu0 %v7564_v2  ;;  %v7570_v6 = vld [vmem:[%s11251_s1 + $0xf0] ss:$20 sps:$4 sm:$0xff]   ;;  %v7572_v8 = vld [vmem:[%s11251_s1 + $0xcc] ss:$20 sps:$4 sm:$0xff]   ;;  %v7576_v10 = vld [vmem:[%s11251_s1 + $0xc8] ss:$20 sps:$4 sm:$0xff]   ;;  %v928_v43 = vunpack.c.0.s8 %v927_v38 }
   0x4   :  { %4849 = vmatpush1.bf16.msra.mxu1 %v7565_v3  ;;  %4809 = vmatprep.subr.bf16.mxu0 %v7566_v4  ;;  %v7571_v7 = vld [vmem:[%s11251_s1 + $0x370] ss:$20 sps:$4 sm:$0xff]   ;;  %v7574_v9 = vld [vmem:[%s11251_s1 + $0x34c] ss:$20 sps:$4 sm:$0xff]   ;;  %v7577_v11 = vld [vmem:[%s11251_s1 + $0x348] ss:$20 sps:$4 sm:$0xff]  }
   0x5   :  { %4850 = vmatprep.subr.bf16.mxu1 %v7568_v5  ;;  %v7578_v12 = vld [vmem:[%s11251_s1 + $0xa4] ss:$20 sps:$4 sm:$0xff]   ;;  %v7582_v14 = vld [vmem:[%s11251_s1 + $0xa0] ss:$20 sps:$4 sm:$0xff]   ;;  %v7584_v16 = vld [vmem:[%s11251_s1 + $0x7c] ss:$20 sps:$4 sm:$0xff]  }
   0x6   :  { %v7580_v13 = vld [vmem:[%s11251_s1 + $0x324] ss:$20 sps:$4 sm:$0xff]   ;;  %v7583_v15 = vld [vmem:[%s11251_s1 + $0x320] ss:$20 sps:$4 sm:$0xff]   ;;  %v7586_v17 = vld [vmem:[%s11251_s1 + $0x2fc] ss:$20 sps:$4 sm:$0xff]  }
   0x7   :  { %4810 = vmatpush1.bf16.msra.mxu0 %v7570_v6  ;;  %v7588_v18 = vld [vmem:[%s11251_s1 + $0x78] ss:$20 sps:$4 sm:$0xff]   ;;  %v7590_v20 = vld [vmem:[%s11251_s1 + $0x54] ss:$20 sps:$4 sm:$0xff]   ;;  %v7594_v22 = vld [vmem:[%s11251_s1 + $0x50] ss:$20 sps:$4 sm:$0xff]  }
   0x8   :  { %4851 = vmatpush1.bf16.msra.mxu1 %v7571_v7  ;;  %4811 = vmatprep.subr.bf16.mxu0 %v7572_v8  ;;  %v7589_v19 = vld [vmem:[%s11251_s1 + $0x2f8] ss:$20 sps:$4 sm:$0xff]   ;;  %v7592_v21 = vld [vmem:[%s11251_s1 + $0x2d4] ss:$20 sps:$4 sm:$0xff]   ;;  %v7595_v23 = vld [vmem:[%s11251_s1 + $0x2d0] ss:$20 sps:$4 sm:$0xff]  }
   0x9   :  { %4852 = vmatprep.subr.bf16.mxu1 %v7574_v9  ;;  %v7596_v24 = vld [vmem:[%s11251_s1 + $0x2c] ss:$20 sps:$4 sm:$0xff]   ;;  %v7600_v26 = vld [vmem:[%s11251_s1 + $0x28] ss:$20 sps:$4 sm:$0xff]   ;;  %v7602_v28 = vld [vmem:[%s11251_s1 + $0x4] ss:$20 sps:$4 sm:$0xff]  }
   0xa   :  { %v7598_v25 = vld [vmem:[%s11251_s1 + $0x2ac] ss:$20 sps:$4 sm:$0xff]   ;;  %v7601_v27 = vld [vmem:[%s11251_s1 + $0x2a8] ss:$20 sps:$4 sm:$0xff]   ;;  %v7604_v29 = vld [vmem:[%s11251_s1 + $0x284] ss:$20 sps:$4 sm:$0xff]  }
   0xb   :  { %4812 = vmatpush1.bf16.msra.mxu0 %v7576_v10  ;;  %v7606_v30 = vld [vmem:[%s11251_s1] ss:$20 sps:$4 sm:$0xff]   ;;  %v7608_v32 = vld [vmem:[%s11251_s1 + $0x25c] ss:$20 sps:$4 sm:$0xff]   ;;  %v7612_v34 = vld [vmem:[%s11251_s1 + $0x258] ss:$20 sps:$4 sm:$0xff]  }
   0xc   :  { %4853 = vmatpush1.bf16.msra.mxu1 %v7577_v11  ;;  %4813 = vmatprep.subr.bf16.mxu0 %v7578_v12  ;;  %v7607_v31 = vld [vmem:[%s11251_s1 + $0x280] ss:$20 sps:$4 sm:$0xff]   ;;  %v7610_v33 = vld [vmem:[%s11251_s1 + $0x4dc] ss:$20 sps:$4 sm:$0xff]   ;;  %v7613_v35 = vld [vmem:[%s11251_s1 + $0x4d8] ss:$20 sps:$4 sm:$0xff]  }
   0xd   :  { %4854 = vmatprep.subr.bf16.mxu1 %v7580_v13  ;;  %v7614_v39 = vld [vmem:[%s11251_s1 + $0x234] ss:$20 sps:$4 sm:$0xff]   ;;  %v7618_v41 = vld [vmem:[%s11251_s1 + $0x230] ss:$20 sps:$4 sm:$0xff]   ;;  %v8802_v42 = vshrl.u32 %v897_v36, 7 }
   0xe   :  { %v7616_v40 = vld [vmem:[%s11251_s1 + $0x4b4] ss:$20 sps:$4 sm:$0xff]   ;;  %v7619_v44 = vld [vmem:[%s11251_s1 + $0x4b0] ss:$20 sps:$4 sm:$0xff]   ;;  %v7620_v45 = vld [vmem:[%s11251_s1 + $0x20c] ss:$20 sps:$4 sm:$0xff]  }
   0xf   :  { %4814 = vmatpush1.bf16.msra.mxu0 %v7582_v14  ;;  %v7622_v46 = vld [vmem:[%s11251_s1 + $0x48c] ss:$20 sps:$4 sm:$0xff]   ;;  %v7624_v47 = vld [vmem:[%s11251_s1 + $0x208] ss:$20 sps:$4 sm:$0xff]   ;;  %v8820_v49 = vsub.s32 %v928_v43, %v8802_v42  ;;  %v7626_v50 = vld [vmem:[%s11251_s1 + $0x1e4] ss:$20 sps:$4 sm:$0xff]  }
  0x10   :  { %4855 = vmatpush1.bf16.msra.mxu1 %v7583_v15  ;;  %4815 = vmatprep.subr.bf16.mxu0 %v7584_v16  ;;  %v7625_v48 = vld [vmem:[%s11251_s1 + $0x488] ss:$20 sps:$4 sm:$0xff]   ;;  %v7628_v51 = vld [vmem:[%s11251_s1 + $0x464] ss:$20 sps:$4 sm:$0xff]   ;;  %v7630_v53 = vld [vmem:[%s11251_s1 + $0x1e0] ss:$20 sps:$4 sm:$0xff]  }
  0x11   :  { %4856 = vmatprep.subr.bf16.mxu1 %v7586_v17  ;;  %v28_v52 = vld [vmem:[%s11250_s0] sm:$0xff]  ;;  %v7632_v56 = vld [vmem:[%s11251_s1 + $0x1bc] ss:$20 sps:$4 sm:$0xff]   ;;  %v7636_v59 = vld [vmem:[%s11251_s1 + $0x1b8] ss:$20 sps:$4 sm:$0xff]  }
  0x12   :  { %v932_v54 = vrot.slane %v28_v52, %v8820_v49  ;;  %v7631_v55 = vld [vmem:[%s11251_s1 + $0x460] ss:$20 sps:$4 sm:$0xff]   ;;  %v7634_v57 = vld [vmem:[%s11251_s1 + $0x43c] ss:$20 sps:$4 sm:$0xff]   ;;  %v7637_v61 = vld [vmem:[%s11251_s1 + $0x438] ss:$20 sps:$4 sm:$0xff]   ;;  %v925_v1 = vcombine.high %v28_v52, %v28_v52 }
  0x13   :  { %4816 = vmatpush1.bf16.msra.mxu0 %v7588_v18  ;;  %v7638_v62 = vld [vmem:[%s11251_s1 + $0x194] ss:$20 sps:$4 sm:$0xff]   ;;  %v7642_v2 = vld [vmem:[%s11251_s1 + $0x190] ss:$20 sps:$4 sm:$0xff]   ;;  %v7644_v4 = vld [vmem:[%s11251_s1 + $0x16c] ss:$20 sps:$4 sm:$0xff]  }
  0x14   :  { %4857 = vmatpush1.bf16.msra.mxu1 %v7589_v19  ;;  %4817 = vmatprep.subr.bf16.mxu0 %v7590_v20  ;;  %v940_v58 = vcombine.high %v932_v54, %v932_v54  ;;  %v7640_v63 = vld [vmem:[%s11251_s1 + $0x414] ss:$20 sps:$4 sm:$0xff]   ;;  %v7643_v3 = vld [vmem:[%s11251_s1 + $0x410] ss:$20 sps:$4 sm:$0xff]   ;;  %v7646_v5 = vld [vmem:[%s11251_s1 + $0x3ec] ss:$20 sps:$4 sm:$0xff]   ;;  %v8878_v6 = vrot.slane %v925_v1, %v8820_v49  ;;  %v8898_v13 = vrot.slane %v932_v54, %v8820_v49 }
  0x15   :  { %4858 = vmatprep.subr.bf16.mxu1 %v7592_v21  ;;  %v7648_v7 = vld [vmem:[%s11251_s1 + $0x168] ss:$20 sps:$4 sm:$0xff]   ;;  %v7650_v9 = vld [vmem:[%s11251_s1 + $0x144] ss:$20 sps:$4 sm:$0xff]   ;;  %v7654_v12 = vld [vmem:[%s11251_s1 + $0x140] ss:$20 sps:$4 sm:$0xff]  }
  0x16   :  { %v8848_v60 = vrot.slane %v940_v58, %v8820_v49  ;;  %v7649_v8 = vld [vmem:[%s11251_s1 + $0x3e8] ss:$20 sps:$4 sm:$0xff]   ;;  %v7652_v10 = vld [vmem:[%s11251_s1 + $0x3c4] ss:$20 sps:$4 sm:$0xff]   ;;  %v941_v11 = vcombine.high %v8878_v6, %v8878_v6  ;;  %v7655_v14 = vld [vmem:[%s11251_s1 + $0x3c0] ss:$20 sps:$4 sm:$0xff]   ;;  %v8917_v19 = vcombine.high %v8898_v13, %v8898_v13 }
  0x17   :  { %4818 = vmatpush1.bf16.msra.mxu0 %v7594_v22  ;;  %v7658_v15 = vld [vmem:[%s11251_s1 + $0x61c] ss:$20 sps:$4 sm:$0xff]   ;;  %v7656_v18 = vld [vmem:[%s11251_s1 + $0x618] ss:$20 sps:$4 sm:$0xff]   ;;  %v7664_v21 = vld [vmem:[%s11251_s1 + $0x5f4] ss:$20 sps:$4 sm:$0xff]  }
  0x18   :  { %4859 = vmatpush1.bf16.msra.mxu1 %v7595_v23  ;;  %4819 = vmatprep.subr.bf16.mxu0 %v7596_v24  ;;  %v8861_v0 = vcombine.high %v8848_v60, %v8848_v60  ;;  %v7661_v16 = vld [vmem:[%s11251_s1 + $0x89c] ss:$20 sps:$4 sm:$0xff]   ;;  %v8910_v17 = vrot.slane %v941_v11, %v8820_v49  ;;  %v7659_v20 = vld [vmem:[%s11251_s1 + $0x898] ss:$20 sps:$4 sm:$0xff]   ;;  %v7667_v22 = vld [vmem:[%s11251_s1 + $0x874] ss:$20 sps:$4 sm:$0xff]  }
  0x19   :  { %4860 = vmatprep.subr.bf16.mxu1 %v7598_v25  ;;  %4839 = vmatprep.mubr.bf16.mxu0 %v8848_v60  ;;  %v7662_v24 = vld [vmem:[%s11251_s1 + $0x5f0] ss:$20 sps:$4 sm:$0xff]   ;;  %v7680_v36 = vld [vmem:[%s11251_s1 + $0x578] ss:$20 sps:$4 sm:$0xff]   ;;  %v7688_v38 = vld [vmem:[%s11251_s1 + $0x554] ss:$20 sps:$4 sm:$0xff]  }
  0x1a   :  { %4880 = vmatprep.mubr.bf16.mxu1 %v8861_v0  ;;  %v8930_v23 = vcombine.high %v8910_v17, %v8910_v17  ;;  %v7665_v25 = vld [vmem:[%s11251_s1 + $0x870] ss:$20 sps:$4 sm:$0xff]   ;;  %v7683_v37 = vld [vmem:[%s11251_s1 + $0x7f8] ss:$20 sps:$4 sm:$0xff]   ;;  %v7719_v1 = vld [vmem:[%s11251_s1 + $0x988] ss:$20 sps:$4 sm:$0xff]  }
  0x1b   :  { %4820 = vmatpush1.bf16.msra.mxu0 %v7600_v26  ;;  %v7670_v26 = vld [vmem:[%s11251_s1 + $0x5cc] ss:$20 sps:$4 sm:$0xff]   ;;  %v7706_v52 = vld [vmem:[%s11251_s1 + $0x75c] ss:$20 sps:$4 sm:$0xff]   ;;  %v7736_v11 = vld [vmem:[%s11251_s1 + $0x694] ss:$20 sps:$4 sm:$0xff]  }
  0x1c   :  { %4861 = vmatpush1.bf16.msra.mxu1 %v7601_v27  ;;  %4821 = vmatprep.subr.bf16.mxu0 %v7602_v28  ;;  %v7673_v27 = vld [vmem:[%s11251_s1 + $0x84c] ss:$20 sps:$4 sm:$0xff]   ;;  %v7668_v28 = vld [vmem:[%s11251_s1 + $0x5c8] ss:$20 sps:$4 sm:$0xff]   ;;  %v7710_v58 = vld [vmem:[%s11251_s1 + $0x730] ss:$20 sps:$4 sm:$0xff]  }
  0x1d   :  { %4862 = vmatprep.subr.bf16.mxu1 %v7604_v29  ;;  %v7671_v29 = vld [vmem:[%s11251_s1 + $0x848] ss:$20 sps:$4 sm:$0xff]   ;;  %v7694_v43 = vld [vmem:[%s11251_s1 + $0x52c] ss:$20 sps:$4 sm:$0xff]  }
  0x1e   :  { %v7704_v54 = vld [vmem:[%s11251_s1 + $0x758] ss:$20 sps:$4 sm:$0xff]  }
  0x1f   :  { %4822 = vmatpush1.bf16.msra.mxu0 %v7606_v30  ;;  %v7676_v30 = vld [vmem:[%s11251_s1 + $0x5a4] ss:$20 sps:$4 sm:$0xff]  }
  0x20   :  { %4863 = vmatpush1.bf16.msra.mxu1 %v7607_v31  ;;  %4823 = vmatprep.subr.bf16.mxu0 %v7608_v32  ;;  %v7679_v31 = vld [vmem:[%s11251_s1 + $0x824] ss:$20 sps:$4 sm:$0xff]   ;;  %v7674_v32 = vld [vmem:[%s11251_s1 + $0x5a0] ss:$20 sps:$4 sm:$0xff]  }
  0x21   :  { %4864 = vmatprep.subr.bf16.mxu1 %v7610_v33  ;;  %v7677_v33 = vld [vmem:[%s11251_s1 + $0x820] ss:$20 sps:$4 sm:$0xff]  }
  0x23   :  { %4824 = vmatpush2.bf16.msra.mxu0 %v7612_v34  ;;  %v7682_v34 = vld [vmem:[%s11251_s1 + $0x57c] ss:$20 sps:$4 sm:$0xff]  }
  0x24   :  { %4865 = vmatpush2.bf16.msra.mxu1 %v7613_v35  ;;  %4825 = vmatprep.subr.bf16.mxu0 %v7614_v39  ;;  %v7685_v35 = vld [vmem:[%s11251_s1 + $0x7fc] ss:$20 sps:$4 sm:$0xff]   ;;  %v7691_v39 = vld [vmem:[%s11251_s1 + $0x7d4] ss:$20 sps:$4 sm:$0xff]  }
  0x25   :  { %4866 = vmatprep.subr.bf16.mxu1 %v7616_v40  ;;  %v7686_v40 = vld [vmem:[%s11251_s1 + $0x550] ss:$20 sps:$4 sm:$0xff]  }
  0x27   :  { %4826 = vmatpush2.bf16.msra.mxu0 %v7618_v41  ;;  %v7689_v41 = vld [vmem:[%s11251_s1 + $0x7d0] ss:$20 sps:$4 sm:$0xff]  }
  0x28   :  { %4867 = vmatpush2.bf16.msra.mxu1 %v7619_v44  ;;  %4827 = vmatprep.subr.bf16.mxu0 %v7620_v45  ;;  %v7697_v44 = vld [vmem:[%s11251_s1 + $0x7ac] ss:$20 sps:$4 sm:$0xff]   ;;  %v7692_v45 = vld [vmem:[%s11251_s1 + $0x528] ss:$20 sps:$4 sm:$0xff]  }
  0x29   :  { %4868 = vmatprep.subr.bf16.mxu1 %v7622_v46  ;;  %v7695_v46 = vld [vmem:[%s11251_s1 + $0x7a8] ss:$20 sps:$4 sm:$0xff]  }
  0x2b   :  { %4828 = vmatpush2.bf16.msra.mxu0 %v7624_v47  ;;  %v7700_v47 = vld [vmem:[%s11251_s1 + $0x504] ss:$20 sps:$4 sm:$0xff]  }
  0x2c   :  { %4869 = vmatpush2.bf16.msra.mxu1 %v7625_v48  ;;  %4829 = vmatprep.subr.bf16.mxu0 %v7626_v50  ;;  %v7703_v48 = vld [vmem:[%s11251_s1 + $0x784] ss:$20 sps:$4 sm:$0xff]   ;;  %v7698_v50 = vld [vmem:[%s11251_s1 + $0x500] ss:$20 sps:$4 sm:$0xff]  }
  0x2d   :  { %4870 = vmatprep.subr.bf16.mxu1 %v7628_v51  ;;  %v7701_v51 = vld [vmem:[%s11251_s1 + $0x780] ss:$20 sps:$4 sm:$0xff]  }
  0x2f   :  { %4830 = vmatpush2.bf16.msra.mxu0 %v7630_v53  ;;  %v7709_v53 = vld [vmem:[%s11251_s1 + $0x9dc] ss:$20 sps:$4 sm:$0xff]  }
  0x30   :  { %4871 = vmatpush2.bf16.msra.mxu1 %v7631_v55  ;;  %4831 = vmatprep.subr.bf16.mxu0 %v7632_v56  ;;  %v7707_v55 = vld [vmem:[%s11251_s1 + $0x9d8] ss:$20 sps:$4 sm:$0xff]   ;;  %v7712_v56 = vld [vmem:[%s11251_s1 + $0x734] ss:$20 sps:$4 sm:$0xff]  }
  0x31   :  { %4872 = vmatprep.subr.bf16.mxu1 %v7634_v57  ;;  %v7715_v57 = vld [vmem:[%s11251_s1 + $0x9b4] ss:$20 sps:$4 sm:$0xff]  }
  0x33   :  { %4832 = vmatpush2.bf16.msra.mxu0 %v7636_v59  ;;  %v7713_v59 = vld [vmem:[%s11251_s1 + $0x9b0] ss:$20 sps:$4 sm:$0xff]  }
  0x34   :  { %4873 = vmatpush2.bf16.msra.mxu1 %v7637_v61  ;;  %4833 = vmatprep.subr.bf16.mxu0 %v7638_v62  ;;  %v7718_v61 = vld [vmem:[%s11251_s1 + $0x70c] ss:$20 sps:$4 sm:$0xff]  }
  0x35   :  { %4874 = vmatprep.subr.bf16.mxu1 %v7640_v63  ;;  %v7721_v62 = vld [vmem:[%s11251_s1 + $0x98c] ss:$20 sps:$4 sm:$0xff]   ;;  %v7716_v63 = vld [vmem:[%s11251_s1 + $0x708] ss:$20 sps:$4 sm:$0xff]  }
  0x37   :  { %4834 = vmatpush2.bf16.msra.mxu0 %v7642_v2  ;;  %v7724_v2 = vld [vmem:[%s11251_s1 + $0x6e4] ss:$20 sps:$4 sm:$0xff]  }
  0x38   :  { %4875 = vmatpush2.bf16.msra.mxu1 %v7643_v3  ;;  %4835 = vmatprep.subr.bf16.mxu0 %v7644_v4  ;;  %v7727_v3 = vld [vmem:[%s11251_s1 + $0x964] ss:$20 sps:$4 sm:$0xff]   ;;  %v7722_v4 = vld [vmem:[%s11251_s1 + $0x6e0] ss:$20 sps:$4 sm:$0xff]  }
  0x39   :  { %4876 = vmatprep.subr.bf16.mxu1 %v7646_v5  ;;  %v7725_v5 = vld [vmem:[%s11251_s1 + $0x960] ss:$20 sps:$4 sm:$0xff]  }
  0x3b   :  { %4836 = vmatpush2.bf16.msra.mxu0 %v7648_v7  ;;  %v7730_v7 = vld [vmem:[%s11251_s1 + $0x6bc] ss:$20 sps:$4 sm:$0xff]  }
  0x3c   :  { %4877 = vmatpush2.bf16.msra.mxu1 %v7649_v8  ;;  %4837 = vmatprep.subr.bf16.mxu0 %v7650_v9  ;;  %v7733_v8 = vld [vmem:[%s11251_s1 + $0x93c] ss:$20 sps:$4 sm:$0xff]   ;;  %v7728_v9 = vld [vmem:[%s11251_s1 + $0x6b8] ss:$20 sps:$4 sm:$0xff]  }
  0x3d   :  { %4878 = vmatprep.subr.bf16.mxu1 %v7652_v10  ;;  %v7731_v10 = vld [vmem:[%s11251_s1 + $0x938] ss:$20 sps:$4 sm:$0xff]  }
  0x3f   :  { %4838 = vmatpush2.bf16.msra.mxu0 %v7654_v12  ;;  %v7739_v12 = vld [vmem:[%s11251_s1 + $0x914] ss:$20 sps:$4 sm:$0xff]  }
  0x40   :  { %4879 = vmatpush2.bf16.msra.mxu1 %v7655_v14  ;;  %4889 = vmatprep.subr.bf16.mxu0 %v7658_v15  ;;  %v7734_v14 = vld [vmem:[%s11251_s1 + $0x690] ss:$20 sps:$4 sm:$0xff]  }
  0x41   :  { %4930 = vmatprep.subr.bf16.mxu1 %v7661_v16  ;;  %v7737_v15 = vld [vmem:[%s11251_s1 + $0x910] ss:$20 sps:$4 sm:$0xff]   ;;  %v7742_v16 = vld [vmem:[%s11251_s1 + $0x66c] ss:$20 sps:$4 sm:$0xff]  }
  0x42   :  { %4840 = vmatmul.mubr.bf16.vlgmr.msra.gmra.mxu0 %v8898_v13 }
  0x43   :  { %4881 = vmatmul.mubr.bf16.vlgmr.msra.gmra.mxu1 %v8917_v19  ;;  %4890 = vmatpush1.bf16.msra.mxu0 %v7656_v18  ;;  %v7745_v18 = vld [vmem:[%s11251_s1 + $0x8ec] ss:$20 sps:$4 sm:$0xff]  }
  0x44   :  { %4931 = vmatpush1.bf16.msra.mxu1 %v7659_v20  ;;  %4891 = vmatprep.subr.bf16.mxu0 %v7664_v21  ;;  %v7740_v20 = vld [vmem:[%s11251_s1 + $0x668] ss:$20 sps:$4 sm:$0xff]  }
  0x45   :  { %4932 = vmatprep.subr.bf16.mxu1 %v7667_v22  ;;  %4921 = vmatprep.mubr.bf16.mxu0 %v8910_v17  ;;  %v7743_v21 = vld [vmem:[%s11251_s1 + $0x8e8] ss:$20 sps:$4 sm:$0xff]   ;;  %v7748_v22 = vld [vmem:[%s11251_s1 + $0x644] ss:$20 sps:$4 sm:$0xff]  }
  0x46   :  { %4962 = vmatprep.mubr.bf16.mxu1 %v8930_v23 }
  0x47   :  { %4892 = vmatpush1.bf16.msra.mxu0 %v7662_v24  ;;  %v7751_v24 = vld [vmem:[%s11251_s1 + $0x8c4] ss:$20 sps:$4 sm:$0xff]  }
  0x48   :  { %4933 = vmatpush1.bf16.msra.mxu1 %v7665_v25  ;;  %4893 = vmatprep.subr.bf16.mxu0 %v7670_v26  ;;  %v7746_v25 = vld [vmem:[%s11251_s1 + $0x640] ss:$20 sps:$4 sm:$0xff]   ;;  %v9109_v26 = vrot.slane %v8878_v6, %v8820_v49  ;;  %v7753_v6 = vld [vmem:[%s11251_s1 + $0xb18] ss:$20 sps:$4 sm:$0xff]  }
  0x49   :  { %4934 = vmatprep.subr.bf16.mxu1 %v7673_v27  ;;  %v7749_v27 = vld [vmem:[%s11251_s1 + $0x8c0] ss:$20 sps:$4 sm:$0xff]  }
  0x4b   :  { %4894 = vmatpush1.bf16.msra.mxu0 %v7668_v28  ;;  %v7755_v28 = vld [vmem:[%s11251_s1 + $0xb1c] ss:$20 sps:$4 sm:$0xff]  }
  0x4c   :  { %4935 = vmatpush1.bf16.msra.mxu1 %v7671_v29  ;;  %4895 = vmatprep.subr.bf16.mxu0 %v7676_v30  ;;  %v7758_v29 = vld [vmem:[%s11251_s1 + $0xd9c] ss:$20 sps:$4 sm:$0xff]   ;;  %v9125_v30 = vcombine.high %v9109_v26, %v9109_v26 }
  0x4d   :  { %4936 = vmatprep.subr.bf16.mxu1 %v7679_v31  ;;  %v7756_v31 = vld [vmem:[%s11251_s1 + $0xd98] ss:$20 sps:$4 sm:$0xff]  }
  0x4f   :  { %4896 = vmatpush1.bf16.msra.mxu0 %v7674_v32  ;;  %v9133_v32 = vld [vmem:[%s11250_s0 + $0x8] sm:$0xff] }
  0x50   :  { %4937 = vmatpush1.bf16.msra.mxu1 %v7677_v33  ;;  %4897 = vmatprep.subr.bf16.mxu0 %v7682_v34  ;;  %v7761_v33 = vld [vmem:[%s11251_s1 + $0xaf4] ss:$20 sps:$4 sm:$0xff]  }
  0x51   :  { %4938 = vmatprep.subr.bf16.mxu1 %v7685_v35  ;;  %v7764_v34 = vld [vmem:[%s11251_s1 + $0xd74] ss:$20 sps:$4 sm:$0xff]   ;;  %v9143_v35 = vrot.slane %v9133_v32, %v8820_v49 }
  0x53   :  { %4898 = vmatpush1.bf16.msra.mxu0 %v7680_v36  ;;  %v989_v36 = vcombine.high %v9143_v35, %v9143_v35 }
  0x54   :  { %4939 = vmatpush1.bf16.msra.mxu1 %v7683_v37  ;;  %4899 = vmatprep.subr.bf16.mxu0 %v7688_v38  ;;  %v7759_v37 = vld [vmem:[%s11251_s1 + $0xaf0] ss:$20 sps:$4 sm:$0xff]  }
  0x55   :  { %4940 = vmatprep.subr.bf16.mxu1 %v7691_v39  ;;  %v7762_v38 = vld [vmem:[%s11251_s1 + $0xd70] ss:$20 sps:$4 sm:$0xff]   ;;  %v7767_v39 = vld [vmem:[%s11251_s1 + $0xacc] ss:$20 sps:$4 sm:$0xff]  }
  0x57   :  { %4900 = vmatpush1.bf16.msra.mxu0 %v7686_v40  ;;  %v7770_v40 = vld [vmem:[%s11251_s1 + $0xd4c] ss:$20 sps:$4 sm:$0xff]  }
  0x58   :  { %4941 = vmatpush1.bf16.msra.mxu1 %v7689_v41  ;;  %4901 = vmatprep.subr.bf16.mxu0 %v7694_v43  ;;  %v9162_v41 = vrot.slane %v989_v36, %v8820_v49  ;;  %v7831_v36 = vld [vmem:[%s11251_s1 + $0xb90] ss:$20 sps:$4 sm:$0xff]  }
  0x59   :  { %4942 = vmatprep.subr.bf16.mxu1 %v7697_v44  ;;  %v7765_v44 = vld [vmem:[%s11251_s1 + $0xac8] ss:$20 sps:$4 sm:$0xff]  }
  0x5a   :  { %v9167_v43 = vcombine.high %v9162_v41, %v9162_v41 }
  0x5b   :  { %4902 = vmatpush1.bf16.msra.mxu0 %v7692_v45  ;;  %v7768_v45 = vld [vmem:[%s11251_s1 + $0xd48] ss:$20 sps:$4 sm:$0xff]  }
  0x5c   :  { %4943 = vmatpush1.bf16.msra.mxu1 %v7695_v46  ;;  %4903 = vmatprep.subr.bf16.mxu0 %v7700_v47  ;;  %v7773_v46 = vld [vmem:[%s11251_s1 + $0xaa4] ss:$20 sps:$4 sm:$0xff]  }
  0x5d   :  { %4944 = vmatprep.subr.bf16.mxu1 %v7703_v48  ;;  %v7776_v47 = vld [vmem:[%s11251_s1 + $0xd24] ss:$20 sps:$4 sm:$0xff]   ;;  %v7771_v48 = vld [vmem:[%s11251_s1 + $0xaa0] ss:$20 sps:$4 sm:$0xff]  }
  0x5f   :  { %4904 = vmatpush1.bf16.msra.mxu0 %v7698_v50  ;;  %v7774_v50 = vld [vmem:[%s11251_s1 + $0xd20] ss:$20 sps:$4 sm:$0xff]  }
  0x60   :  { %4945 = vmatpush1.bf16.msra.mxu1 %v7701_v51  ;;  %4905 = vmatprep.subr.bf16.mxu0 %v7706_v52  ;;  %v7779_v51 = vld [vmem:[%s11251_s1 + $0xa7c] ss:$20 sps:$4 sm:$0xff]  }
  0x61   :  { %4946 = vmatprep.subr.bf16.mxu1 %v7709_v53  ;;  %v7782_v52 = vld [vmem:[%s11251_s1 + $0xcfc] ss:$20 sps:$4 sm:$0xff]   ;;  %v7777_v53 = vld [vmem:[%s11251_s1 + $0xa78] ss:$20 sps:$4 sm:$0xff]  }
  0x63   :  { %4906 = vmatpush2.bf16.msra.mxu0 %v7704_v54  ;;  %v7780_v54 = vld [vmem:[%s11251_s1 + $0xcf8] ss:$20 sps:$4 sm:$0xff]  }
  0x64   :  { %4947 = vmatpush2.bf16.msra.mxu1 %v7707_v55  ;;  %4907 = vmatprep.subr.bf16.mxu0 %v7712_v56  ;;  %v7785_v55 = vld [vmem:[%s11251_s1 + $0xa54] ss:$20 sps:$4 sm:$0xff]  }
  0x65   :  { %4948 = vmatprep.subr.bf16.mxu1 %v7715_v57  ;;  %v7788_v56 = vld [vmem:[%s11251_s1 + $0xcd4] ss:$20 sps:$4 sm:$0xff]   ;;  %v7783_v57 = vld [vmem:[%s11251_s1 + $0xa50] ss:$20 sps:$4 sm:$0xff]  }
  0x67   :  { %4908 = vmatpush2.bf16.msra.mxu0 %v7710_v58  ;;  %v7786_v58 = vld [vmem:[%s11251_s1 + $0xcd0] ss:$20 sps:$4 sm:$0xff]  }
  0x68   :  { %4949 = vmatpush2.bf16.msra.mxu1 %v7713_v59  ;;  %4909 = vmatprep.subr.bf16.mxu0 %v7718_v61  ;;  %v7791_v59 = vld [vmem:[%s11251_s1 + $0xa2c] ss:$20 sps:$4 sm:$0xff]  }
  0x69   :  { %4950 = vmatprep.subr.bf16.mxu1 %v7721_v62  ;;  %v7794_v61 = vld [vmem:[%s11251_s1 + $0xcac] ss:$20 sps:$4 sm:$0xff]   ;;  %v7789_v62 = vld [vmem:[%s11251_s1 + $0xa28] ss:$20 sps:$4 sm:$0xff]  }
  0x6b   :  { %4910 = vmatpush2.bf16.msra.mxu0 %v7716_v63  ;;  %v7792_v63 = vld [vmem:[%s11251_s1 + $0xca8] ss:$20 sps:$4 sm:$0xff]  }
  0x6c   :  { %4951 = vmatpush2.bf16.msra.mxu1 %v7719_v1  ;;  %4911 = vmatprep.subr.bf16.mxu0 %v7724_v2  ;;  %v7797_v1 = vld [vmem:[%s11251_s1 + $0xa04] ss:$20 sps:$4 sm:$0xff]  }
  0x6d   :  { %4952 = vmatprep.subr.bf16.mxu1 %v7727_v3  ;;  %v7800_v2 = vld [vmem:[%s11251_s1 + $0xc84] ss:$20 sps:$4 sm:$0xff]   ;;  %v7795_v3 = vld [vmem:[%s11251_s1 + $0xa00] ss:$20 sps:$4 sm:$0xff]  }
  0x6f   :  { %4912 = vmatpush2.bf16.msra.mxu0 %v7722_v4  ;;  %v7798_v4 = vld [vmem:[%s11251_s1 + $0xc80] ss:$20 sps:$4 sm:$0xff]  }
  0x70   :  { %4953 = vmatpush2.bf16.msra.mxu1 %v7725_v5  ;;  %4913 = vmatprep.subr.bf16.mxu0 %v7730_v7  ;;  %v7803_v5 = vld [vmem:[%s11251_s1 + $0xc5c] ss:$20 sps:$4 sm:$0xff]  }
  0x71   :  { %4954 = vmatprep.subr.bf16.mxu1 %v7733_v8  ;;  %v7806_v7 = vld [vmem:[%s11251_s1 + $0xedc] ss:$20 sps:$4 sm:$0xff]   ;;  %v7801_v8 = vld [vmem:[%s11251_s1 + $0xc58] ss:$20 sps:$4 sm:$0xff]  }
  0x73   :  { %4914 = vmatpush2.bf16.msra.mxu0 %v7728_v9  ;;  %v7804_v9 = vld [vmem:[%s11251_s1 + $0xed8] ss:$20 sps:$4 sm:$0xff]  }
  0x74   :  { %4955 = vmatpush2.bf16.msra.mxu1 %v7731_v10  ;;  %4915 = vmatprep.subr.bf16.mxu0 %v7736_v11  ;;  %v7809_v10 = vld [vmem:[%s11251_s1 + $0xc34] ss:$20 sps:$4 sm:$0xff]  }
  0x75   :  { %4956 = vmatprep.subr.bf16.mxu1 %v7739_v12  ;;  %v7812_v11 = vld [vmem:[%s11251_s1 + $0xeb4] ss:$20 sps:$4 sm:$0xff]   ;;  %v7807_v12 = vld [vmem:[%s11251_s1 + $0xc30] ss:$20 sps:$4 sm:$0xff]  }
  0x77   :  { %4916 = vmatpush2.bf16.msra.mxu0 %v7734_v14  ;;  %v7810_v14 = vld [vmem:[%s11251_s1 + $0xeb0] ss:$20 sps:$4 sm:$0xff]  }
  0x78   :  { %4957 = vmatpush2.bf16.msra.mxu1 %v7737_v15  ;;  %4917 = vmatprep.subr.bf16.mxu0 %v7742_v16  ;;  %v7815_v15 = vld [vmem:[%s11251_s1 + $0xc0c] ss:$20 sps:$4 sm:$0xff]  }
  0x79   :  { %4958 = vmatprep.subr.bf16.mxu1 %v7745_v18  ;;  %v7818_v16 = vld [vmem:[%s11251_s1 + $0xe8c] ss:$20 sps:$4 sm:$0xff]   ;;  %v7813_v18 = vld [vmem:[%s11251_s1 + $0xc08] ss:$20 sps:$4 sm:$0xff]  }
  0x7b   :  { %4918 = vmatpush2.bf16.msra.mxu0 %v7740_v20  ;;  %v7816_v20 = vld [vmem:[%s11251_s1 + $0xe88] ss:$20 sps:$4 sm:$0xff]  }
  0x7c   :  { %4959 = vmatpush2.bf16.msra.mxu1 %v7743_v21  ;;  %4919 = vmatprep.subr.bf16.mxu0 %v7748_v22  ;;  %v7821_v21 = vld [vmem:[%s11251_s1 + $0xbe4] ss:$20 sps:$4 sm:$0xff]  }
  0x7d   :  { %4960 = vmatprep.subr.bf16.mxu1 %v7751_v24  ;;  %v7824_v22 = vld [vmem:[%s11251_s1 + $0xe64] ss:$20 sps:$4 sm:$0xff]   ;;  %v7819_v24 = vld [vmem:[%s11251_s1 + $0xbe0] ss:$20 sps:$4 sm:$0xff]  }
  0x7f   :  { %4920 = vmatpush2.bf16.msra.mxu0 %v7746_v25  ;;  %v7822_v25 = vld [vmem:[%s11251_s1 + $0xe60] ss:$20 sps:$4 sm:$0xff]  }
  0x80   :  { %4961 = vmatpush2.bf16.msra.mxu1 %v7749_v27  ;;  %4971 = vmatprep.subr.bf16.mxu0 %v7755_v28  ;;  %v7827_v27 = vld [vmem:[%s11251_s1 + $0xbbc] ss:$20 sps:$4 sm:$0xff]  }
  0x81   :  { %5012 = vmatprep.subr.bf16.mxu1 %v7758_v29  ;;  %v7830_v28 = vld [vmem:[%s11251_s1 + $0xe3c] ss:$20 sps:$4 sm:$0xff]   ;;  %v7825_v29 = vld [vmem:[%s11251_s1 + $0xbb8] ss:$20 sps:$4 sm:$0xff]  }
  0x82   :  { %4922 = vmatmul.mubr.bf16.vlgmr.msra.gmra.mxu0 %v9109_v26 }
  0x83   :  { %4963 = vmatmul.mubr.bf16.vlgmr.msra.gmra.mxu1 %v9125_v30  ;;  %4972 = vmatpush1.bf16.msra.mxu0 %v7753_v6  ;;  %v7828_v6 = vld [vmem:[%s11251_s1 + $0xe38] ss:$20 sps:$4 sm:$0xff]  }
  0x84   :  { %5013 = vmatpush1.bf16.msra.mxu1 %v7756_v31  ;;  %4973 = vmatprep.subr.bf16.mxu0 %v7761_v33  ;;  %v7833_v31 = vld [vmem:[%s11251_s1 + $0xb94] ss:$20 sps:$4 sm:$0xff]  }
  0x85   :  { %5014 = vmatprep.subr.bf16.mxu1 %v7764_v34  ;;  %5003 = vmatprep.mubr.bf16.mxu0 %v9162_v41  ;;  %v7836_v33 = vld [vmem:[%s11251_s1 + $0xe14] ss:$20 sps:$4 sm:$0xff]   ;;  %v974_v34 = vcombine.high %v9133_v32, %v9133_v32  ;;  %v7842_v32 = vld [vmem:[%s11251_s1 + $0xdec] ss:$20 sps:$4 sm:$0xff]  }
  0x86   :  { %5044 = vmatprep.mubr.bf16.mxu1 %v9167_v43 }
  0x87   :  { %4974 = vmatpush1.bf16.msra.mxu0 %v7759_v37  ;;  %v7834_v37 = vld [vmem:[%s11251_s1 + $0xe10] ss:$20 sps:$4 sm:$0xff]  }
  0x88   :  { %5015 = vmatpush1.bf16.msra.mxu1 %v7762_v38  ;;  %4975 = vmatprep.subr.bf16.mxu0 %v7767_v39  ;;  %v7839_v38 = vld [vmem:[%s11251_s1 + $0xb6c] ss:$20 sps:$4 sm:$0xff]   ;;  %v9317_v39 = vrot.slane %v974_v34, %v8820_v49 }
  0x89   :  { %5016 = vmatprep.subr.bf16.mxu1 %v7770_v40  ;;  %v7837_v40 = vld [vmem:[%s11251_s1 + $0xb68] ss:$20 sps:$4 sm:$0xff]   ;;  %v7900_v34 = vld [vmem:[%s11251_s1 + $0x13d8] ss:$20 sps:$4 sm:$0xff]  }
  0x8b   :  { %4976 = vmatpush1.bf16.msra.mxu0 %v7765_v44  ;;  %v7840_v44 = vld [vmem:[%s11251_s1 + $0xde8] ss:$20 sps:$4 sm:$0xff]  }
  0x8c   :  { %5017 = vmatpush1.bf16.msra.mxu1 %v7768_v45  ;;  %4977 = vmatprep.subr.bf16.mxu0 %v7773_v46  ;;  %v7845_v45 = vld [vmem:[%s11251_s1 + $0xb44] ss:$20 sps:$4 sm:$0xff]  }
  0x8d   :  { %5018 = vmatprep.subr.bf16.mxu1 %v7776_v47  ;;  %v7848_v46 = vld [vmem:[%s11251_s1 + $0xdc4] ss:$20 sps:$4 sm:$0xff]   ;;  %v990_v47 = vcombine.high %v9317_v39, %v9317_v39 }
  0x8f   :  { %4978 = vmatpush1.bf16.msra.mxu0 %v7771_v48  ;;  %v7843_v48 = vld [vmem:[%s11251_s1 + $0xb40] ss:$20 sps:$4 sm:$0xff]  }
  0x90   :  { %5019 = vmatpush1.bf16.msra.mxu1 %v7774_v50  ;;  %4979 = vmatprep.subr.bf16.mxu0 %v7779_v51  ;;  %v9338_v50 = vrot.slane %v9143_v35, %v8820_v49  ;;  %v7846_v51 = vld [vmem:[%s11251_s1 + $0xdc0] ss:$20 sps:$4 sm:$0xff]   ;;  %v7849_v35 = vld [vmem:[%s11251_s1 + $0x1018] ss:$20 sps:$4 sm:$0xff]  }
  0x91   :  { %5020 = vmatprep.subr.bf16.mxu1 %v7782_v52  ;;  %v7851_v52 = vld [vmem:[%s11251_s1 + $0x101c] ss:$20 sps:$4 sm:$0xff]  }
  0x93   :  { %4980 = vmatpush1.bf16.msra.mxu0 %v7777_v53  ;;  %v7854_v53 = vld [vmem:[%s11251_s1 + $0x129c] ss:$20 sps:$4 sm:$0xff]  }
  0x94   :  { %5021 = vmatpush1.bf16.msra.mxu1 %v7780_v54  ;;  %4981 = vmatprep.subr.bf16.mxu0 %v7785_v55  ;;  %v9350_v54 = vrot.slane %v990_v47, %v8820_v49  ;;  %v9357_v55 = vcombine.high %v9338_v50, %v9338_v50  ;;  %v7917_v47 = vld [vmem:[%s11251_s1 + $0x10e4] ss:$20 sps:$4 sm:$0xff]  }
  0x95   :  { %5022 = vmatprep.subr.bf16.mxu1 %v7788_v56  ;;  %v7852_v56 = vld [vmem:[%s11251_s1 + $0x1298] ss:$20 sps:$4 sm:$0xff]  }
  0x97   :  { %4982 = vmatpush1.bf16.msra.mxu0 %v7783_v57  ;;  %v7857_v57 = vld [vmem:[%s11251_s1 + $0xff4] ss:$20 sps:$4 sm:$0xff]  }
  0x98   :  { %5023 = vmatpush1.bf16.msra.mxu1 %v7786_v58  ;;  %4983 = vmatprep.subr.bf16.mxu0 %v7791_v59  ;;  %v7860_v58 = vld [vmem:[%s11251_s1 + $0x1274] ss:$20 sps:$4 sm:$0xff]   ;;  %v9370_v59 = vcombine.high %v9350_v54, %v9350_v54 }
  0x99   :  { %5024 = vmatprep.subr.bf16.mxu1 %v7794_v61  ;;  %v7855_v61 = vld [vmem:[%s11251_s1 + $0xff0] ss:$20 sps:$4 sm:$0xff]  }
  0x9b   :  { %4984 = vmatpush1.bf16.msra.mxu0 %v7789_v62  ;;  %v7858_v62 = vld [vmem:[%s11251_s1 + $0x1270] ss:$20 sps:$4 sm:$0xff]  }
  0x9c   :  { %5025 = vmatpush1.bf16.msra.mxu1 %v7792_v63  ;;  %4985 = vmatprep.subr.bf16.mxu0 %v7797_v1  ;;  %v7863_v63 = vld [vmem:[%s11251_s1 + $0xfcc] ss:$20 sps:$4 sm:$0xff]  }
  0x9d   :  { %5026 = vmatprep.subr.bf16.mxu1 %v7800_v2  ;;  %v7866_v1 = vld [vmem:[%s11251_s1 + $0x124c] ss:$20 sps:$4 sm:$0xff]   ;;  %v7861_v2 = vld [vmem:[%s11251_s1 + $0xfc8] ss:$20 sps:$4 sm:$0xff]  }
  0x9f   :  { %4986 = vmatpush1.bf16.msra.mxu0 %v7795_v3  ;;  %v7864_v3 = vld [vmem:[%s11251_s1 + $0x1248] ss:$20 sps:$4 sm:$0xff]  }
  0xa0   :  { %5027 = vmatpush1.bf16.msra.mxu1 %v7798_v4  ;;  %4987 = vmatprep.subr.bf16.mxu0 %v7803_v5  ;;  %v7869_v4 = vld [vmem:[%s11251_s1 + $0xfa4] ss:$20 sps:$4 sm:$0xff]  }
  0xa1   :  { %5028 = vmatprep.subr.bf16.mxu1 %v7806_v7  ;;  %v7872_v5 = vld [vmem:[%s11251_s1 + $0x1224] ss:$20 sps:$4 sm:$0xff]   ;;  %v7867_v7 = vld [vmem:[%s11251_s1 + $0xfa0] ss:$20 sps:$4 sm:$0xff]  }
  0xa3   :  { %4988 = vmatpush2.bf16.msra.mxu0 %v7801_v8  ;;  %v7870_v8 = vld [vmem:[%s11251_s1 + $0x1220] ss:$20 sps:$4 sm:$0xff]  }
  0xa4   :  { %5029 = vmatpush2.bf16.msra.mxu1 %v7804_v9  ;;  %4989 = vmatprep.subr.bf16.mxu0 %v7809_v10  ;;  %v7875_v9 = vld [vmem:[%s11251_s1 + $0xf7c] ss:$20 sps:$4 sm:$0xff]  }
  0xa5   :  { %5030 = vmatprep.subr.bf16.mxu1 %v7812_v11  ;;  %v7878_v10 = vld [vmem:[%s11251_s1 + $0x11fc] ss:$20 sps:$4 sm:$0xff]   ;;  %v7873_v11 = vld [vmem:[%s11251_s1 + $0xf78] ss:$20 sps:$4 sm:$0xff]  }
  0xa7   :  { %4990 = vmatpush2.bf16.msra.mxu0 %v7807_v12  ;;  %v7876_v12 = vld [vmem:[%s11251_s1 + $0x11f8] ss:$20 sps:$4 sm:$0xff]  }
  0xa8   :  { %5031 = vmatpush2.bf16.msra.mxu1 %v7810_v14  ;;  %4991 = vmatprep.subr.bf16.mxu0 %v7815_v15  ;;  %v7881_v14 = vld [vmem:[%s11251_s1 + $0xf54] ss:$20 sps:$4 sm:$0xff]  }
  0xa9   :  { %5032 = vmatprep.subr.bf16.mxu1 %v7818_v16  ;;  %v7884_v15 = vld [vmem:[%s11251_s1 + $0x11d4] ss:$20 sps:$4 sm:$0xff]   ;;  %v7879_v16 = vld [vmem:[%s11251_s1 + $0xf50] ss:$20 sps:$4 sm:$0xff]  }
  0xab   :  { %4992 = vmatpush2.bf16.msra.mxu0 %v7813_v18  ;;  %v7882_v18 = vld [vmem:[%s11251_s1 + $0x11d0] ss:$20 sps:$4 sm:$0xff]  }
  0xac   :  { %5033 = vmatpush2.bf16.msra.mxu1 %v7816_v20  ;;  %4993 = vmatprep.subr.bf16.mxu0 %v7821_v21  ;;  %v7887_v20 = vld [vmem:[%s11251_s1 + $0xf2c] ss:$20 sps:$4 sm:$0xff]  }
  0xad   :  { %5034 = vmatprep.subr.bf16.mxu1 %v7824_v22  ;;  %v7890_v21 = vld [vmem:[%s11251_s1 + $0x11ac] ss:$20 sps:$4 sm:$0xff]   ;;  %v7885_v22 = vld [vmem:[%s11251_s1 + $0xf28] ss:$20 sps:$4 sm:$0xff]  }
  0xaf   :  { %4994 = vmatpush2.bf16.msra.mxu0 %v7819_v24  ;;  %v7888_v24 = vld [vmem:[%s11251_s1 + $0x11a8] ss:$20 sps:$4 sm:$0xff]  }
  0xb0   :  { %5035 = vmatpush2.bf16.msra.mxu1 %v7822_v25  ;;  %4995 = vmatprep.subr.bf16.mxu0 %v7827_v27  ;;  %v7893_v25 = vld [vmem:[%s11251_s1 + $0xf04] ss:$20 sps:$4 sm:$0xff]  }
  0xb1   :  { %5036 = vmatprep.subr.bf16.mxu1 %v7830_v28  ;;  %v7896_v27 = vld [vmem:[%s11251_s1 + $0x1184] ss:$20 sps:$4 sm:$0xff]   ;;  %v7891_v28 = vld [vmem:[%s11251_s1 + $0xf00] ss:$20 sps:$4 sm:$0xff]  }
  0xb3   :  { %4996 = vmatpush2.bf16.msra.mxu0 %v7825_v29  ;;  %v7894_v29 = vld [vmem:[%s11251_s1 + $0x1180] ss:$20 sps:$4 sm:$0xff]  }
  0xb4   :  { %5037 = vmatpush2.bf16.msra.mxu1 %v7828_v6  ;;  %4997 = vmatprep.subr.bf16.mxu0 %v7833_v31  ;;  %v7899_v6 = vld [vmem:[%s11251_s1 + $0x115c] ss:$20 sps:$4 sm:$0xff]  }
  0xb5   :  { %5038 = vmatprep.subr.bf16.mxu1 %v7836_v33  ;;  %v7902_v31 = vld [vmem:[%s11251_s1 + $0x13dc] ss:$20 sps:$4 sm:$0xff]   ;;  %v7897_v33 = vld [vmem:[%s11251_s1 + $0x1158] ss:$20 sps:$4 sm:$0xff]  }
  0xb7   :  { %4998 = vmatpush2.bf16.msra.mxu0 %v7831_v36  ;;  %v7905_v36 = vld [vmem:[%s11251_s1 + $0x1134] ss:$20 sps:$4 sm:$0xff]  }
  0xb8   :  { %5039 = vmatpush2.bf16.msra.mxu1 %v7834_v37  ;;  %4999 = vmatprep.subr.bf16.mxu0 %v7839_v38  ;;  %v7908_v37 = vld [vmem:[%s11251_s1 + $0x13b4] ss:$20 sps:$4 sm:$0xff]   ;;  %v7903_v38 = vld [vmem:[%s11251_s1 + $0x1130] ss:$20 sps:$4 sm:$0xff]  }
  0xb9   :  { %5040 = vmatprep.subr.bf16.mxu1 %v7842_v32  ;;  %v7906_v32 = vld [vmem:[%s11251_s1 + $0x13b0] ss:$20 sps:$4 sm:$0xff]  }
  0xbb   :  { %5000 = vmatpush2.bf16.msra.mxu0 %v7837_v40  ;;  %v7911_v40 = vld [vmem:[%s11251_s1 + $0x110c] ss:$20 sps:$4 sm:$0xff]  }
  0xbc   :  { %5041 = vmatpush2.bf16.msra.mxu1 %v7840_v44  ;;  %5001 = vmatprep.subr.bf16.mxu0 %v7845_v45  ;;  %v7914_v44 = vld [vmem:[%s11251_s1 + $0x138c] ss:$20 sps:$4 sm:$0xff]   ;;  %v7909_v45 = vld [vmem:[%s11251_s1 + $0x1108] ss:$20 sps:$4 sm:$0xff]  }
  0xbd   :  { %5042 = vmatprep.subr.bf16.mxu1 %v7848_v46  ;;  %v7912_v46 = vld [vmem:[%s11251_s1 + $0x1388] ss:$20 sps:$4 sm:$0xff]  }
  0xbf   :  { %5002 = vmatpush2.bf16.msra.mxu0 %v7843_v48  ;;  %v7920_v48 = vld [vmem:[%s11251_s1 + $0x1364] ss:$20 sps:$4 sm:$0xff]  }
  0xc0   :  { %5043 = vmatpush2.bf16.msra.mxu1 %v7846_v51  ;;  %5053 = vmatprep.subr.bf16.mxu0 %v7851_v52  ;;  %v7915_v51 = vld [vmem:[%s11251_s1 + $0x10e0] ss:$20 sps:$4 sm:$0xff]  }
  0xc1   :  { %5094 = vmatprep.subr.bf16.mxu1 %v7854_v53  ;;  %v7918_v52 = vld [vmem:[%s11251_s1 + $0x1360] ss:$20 sps:$4 sm:$0xff]   ;;  %v7923_v53 = vld [vmem:[%s11251_s1 + $0x10bc] ss:$20 sps:$4 sm:$0xff]  }
  0xc2   :  { %5004 = vmatmul.mubr.bf16.vlgmr.msra.gmra.mxu0 %v9338_v50 }
  0xc3   :  { %5045 = vmatmul.mubr.bf16.vlgmr.msra.gmra.mxu1 %v9357_v55  ;;  %5054 = vmatpush1.bf16.msra.mxu0 %v7849_v35  ;;  %v7926_v35 = vld [vmem:[%s11251_s1 + $0x133c] ss:$20 sps:$4 sm:$0xff]  }
  0xc4   :  { %5095 = vmatpush1.bf16.msra.mxu1 %v7852_v56  ;;  %5055 = vmatprep.subr.bf16.mxu0 %v7857_v57  ;;  %v7921_v56 = vld [vmem:[%s11251_s1 + $0x10b8] ss:$20 sps:$4 sm:$0xff]  }
  0xc5   :  { %5096 = vmatprep.subr.bf16.mxu1 %v7860_v58  ;;  %5085 = vmatprep.mubr.bf16.mxu0 %v9350_v54  ;;  %v7924_v57 = vld [vmem:[%s11251_s1 + $0x1338] ss:$20 sps:$4 sm:$0xff]   ;;  %v7929_v58 = vld [vmem:[%s11251_s1 + $0x1094] ss:$20 sps:$4 sm:$0xff]  }
  0xc6   :  { %5126 = vmatprep.mubr.bf16.mxu1 %v9370_v59 }
  0xc7   :  { %5056 = vmatpush1.bf16.msra.mxu0 %v7855_v61  ;;  %v7932_v61 = vld [vmem:[%s11251_s1 + $0x1314] ss:$20 sps:$4 sm:$0xff]  }
  0xc8   :  { %5097 = vmatpush1.bf16.msra.mxu1 %v7858_v62  ;;  %5057 = vmatprep.subr.bf16.mxu0 %v7863_v63  ;;  %v7927_v62 = vld [vmem:[%s11251_s1 + $0x1090] ss:$20 sps:$4 sm:$0xff]  }
  0xc9   :  { %5098 = vmatprep.subr.bf16.mxu1 %v7866_v1  ;;  %v7930_v63 = vld [vmem:[%s11251_s1 + $0x1310] ss:$20 sps:$4 sm:$0xff]   ;;  %v7935_v1 = vld [vmem:[%s11251_s1 + $0x106c] ss:$20 sps:$4 sm:$0xff]  }
  0xcb   :  { %5058 = vmatpush1.bf16.msra.mxu0 %v7861_v2  ;;  %v7938_v2 = vld [vmem:[%s11251_s1 + $0x12ec] ss:$20 sps:$4 sm:$0xff]  }
  0xcc   :  { %5099 = vmatpush1.bf16.msra.mxu1 %v7864_v3  ;;  %5059 = vmatprep.subr.bf16.mxu0 %v7869_v4  ;;  %v7933_v3 = vld [vmem:[%s11251_s1 + $0x1068] ss:$20 sps:$4 sm:$0xff]  }
  0xcd   :  { %5100 = vmatprep.subr.bf16.mxu1 %v7872_v5  ;;  %v7936_v4 = vld [vmem:[%s11251_s1 + $0x12e8] ss:$20 sps:$4 sm:$0xff]   ;;  %v7941_v5 = vld [vmem:[%s11251_s1 + $0x1044] ss:$20 sps:$4 sm:$0xff]  }
  0xcf   :  { %5060 = vmatpush1.bf16.msra.mxu0 %v7867_v7  ;;  %v7944_v7 = vld [vmem:[%s11251_s1 + $0x12c4] ss:$20 sps:$4 sm:$0xff]  }
  0xd0   :  { %5101 = vmatpush1.bf16.msra.mxu1 %v7870_v8  ;;  %5061 = vmatprep.subr.bf16.mxu0 %v7875_v9  ;;  %v7939_v8 = vld [vmem:[%s11251_s1 + $0x1040] ss:$20 sps:$4 sm:$0xff]  }
  0xd1   :  { %5102 = vmatprep.subr.bf16.mxu1 %v7878_v10  ;;  %v7942_v9 = vld [vmem:[%s11251_s1 + $0x12c0] ss:$20 sps:$4 sm:$0xff]   ;;  %v9552_v10 = vrot.slane %v9317_v39, %v8820_v49  ;;  %v7948_v39 = vld [vmem:[%s11251_s1 + $0x151c] ss:$20 sps:$4 sm:$0xff]  }
  0xd3   :  { %5062 = vmatpush1.bf16.msra.mxu0 %v7873_v11  ;;  %v9557_v11 = vld.sshfl [vmem:[%s11250_s0 + $0x10] sm:$0x11 pattern:$0x75316420] }
  0xd4   :  { %5103 = vmatpush1.bf16.msra.mxu1 %v7876_v12  ;;  %5063 = vmatprep.subr.bf16.mxu0 %v7881_v14  ;;  %v895_v12 = vld [vmem:[%s11252_s2] sm:$0x1f]  ;;  %v899_v14 = vsub.s32 0, %v8802_v42 }
  0xd5   :  { %5104 = vmatprep.subr.bf16.mxu1 %v7884_v15  ;;  %v7951_v15 = vld [vmem:[%s11251_s1 + $0x124] ss:$20 sps:$4 sm:$0xff]  }
  0xd7   :  { %5064 = vmatpush1.bf16.msra.mxu0 %v7879_v16  ;;  %v903_v16 = vsub.s32 1, %v8802_v42 }
  0xd8   :  { %5105 = vmatpush1.bf16.msra.mxu1 %v7882_v18  ;;  %5065 = vmatprep.subr.bf16.mxu0 %v7887_v20  ;;  %v1030_v18 = vcombine.high %v9557_v11, %v9557_v11  ;;  %v7946_v20 = vld [vmem:[%s11251_s1 + $0x1518] ss:$20 sps:$4 sm:$0xff]  }
  0xd9   :  { %5106 = vmatprep.subr.bf16.mxu1 %v7890_v21  ;;  %v9577_v21 = vcombine.high %v9552_v10, %v9552_v10 }
  0xdb   :  { %5066 = vmatpush1.bf16.msra.mxu0 %v7885_v22  ;;  %v900_v22 = vrot.slane %v895_v12, %v899_v14  ;;  %v7985_v14 = vld [vmem:[%s11251_s1 + $0x30] ss:$20 sps:$4 sm:$0xff]  }
  0xdc   :  { %5107 = vmatpush1.bf16.msra.mxu1 %v7888_v24  ;;  %5067 = vmatprep.subr.bf16.mxu0 %v7893_v25  ;;  %v7949_v24 = vld [vmem:[%s11251_s1 + $0x120] ss:$20 sps:$4 sm:$0xff]  }
  0xdd   :  { %5108 = vmatprep.subr.bf16.mxu1 %v7896_v27  ;;  %v7954_v25 = vld [vmem:[%s11251_s1 + $0x14f4] ss:$20 sps:$4 sm:$0xff]   ;;  %v7957_v27 = vld [vmem:[%s11251_s1 + $0xfc] ss:$20 sps:$4 sm:$0xff]  }
  0xdf   :  { %5068 = vmatpush1.bf16.msra.mxu0 %v7891_v28  ;;  %v904_v28 = vrot.slane %v895_v12, %v903_v16  ;;  %v7982_v12 = vld [vmem:[%s11251_s1 + $0x1428] ss:$20 sps:$4 sm:$0xff]   ;;  %v7988_v16 = vld [vmem:[%s11251_s1 + $0x1400] ss:$20 sps:$4 sm:$0xff]  }
  0xe0   :  { %5109 = vmatpush1.bf16.msra.mxu1 %v7894_v29  ;;  %5069 = vmatprep.subr.bf16.mxu0 %v7899_v6  ;;  %v7952_v29 = vld [vmem:[%s11251_s1 + $0x14f0] ss:$20 sps:$4 sm:$0xff]   ;;  %v9592_v6 = vrot.slane %v1030_v18, %v8820_v49  ;;  %v7991_v18 = vld [vmem:[%s11251_s1 + $0x8] ss:$20 sps:$4 sm:$0xff]  }
  0xe1   :  { %5110 = vmatprep.subr.bf16.mxu1 %v7902_v31 }
  0xe3   :  { %5070 = vmatpush2.bf16.msra.mxu0 %v7897_v33 }
  0xe4   :  { %5111 = vmatpush2.bf16.msra.mxu1 %v7900_v34  ;;  %5071 = vmatprep.subr.bf16.mxu0 %v7905_v36  ;;  %v7955_v34 = vld [vmem:[%s11251_s1 + $0xf8] ss:$20 sps:$4 sm:$0xff]  }
  0xe5   :  { %5112 = vmatprep.subr.bf16.mxu1 %v7908_v37  ;;  %v7960_v37 = vld [vmem:[%s11251_s1 + $0x14cc] ss:$20 sps:$4 sm:$0xff]  }
  0xe7   :  { %5072 = vmatpush2.bf16.msra.mxu0 %v7903_v38 }
  0xe8   :  { %5113 = vmatpush2.bf16.msra.mxu1 %v7906_v32  ;;  %5073 = vmatprep.subr.bf16.mxu0 %v7911_v40  ;;  %v7963_v40 = vld [vmem:[%s11251_s1 + $0xd4] ss:$20 sps:$4 sm:$0xff]  }
  0xe9   :  { %5114 = vmatprep.subr.bf16.mxu1 %v7914_v44 }
  0xeb   :  { %5074 = vmatpush2.bf16.msra.mxu0 %v7909_v45 }
  0xec   :  { %5115 = vmatpush2.bf16.msra.mxu1 %v7912_v46  ;;  %5075 = vmatprep.subr.bf16.mxu0 %v7917_v47  ;;  %v7958_v46 = vld [vmem:[%s11251_s1 + $0x14c8] ss:$20 sps:$4 sm:$0xff]   ;;  %v7961_v47 = vld [vmem:[%s11251_s1 + $0xd0] ss:$20 sps:$4 sm:$0xff]  }
  0xed   :  { %5116 = vmatprep.subr.bf16.mxu1 %v7920_v48 }
  0xef   :  { %5076 = vmatpush2.bf16.msra.mxu0 %v7915_v51 }
  0xf0   :  { %5117 = vmatpush2.bf16.msra.mxu1 %v7918_v52  ;;  %5077 = vmatprep.subr.bf16.mxu0 %v7923_v53 }
  0xf1   :  { %5118 = vmatprep.subr.bf16.mxu1 %v7926_v35  ;;  %v7966_v35 = vld [vmem:[%s11251_s1 + $0x14a4] ss:$20 sps:$4 sm:$0xff]  }
  0xf3   :  { %5078 = vmatpush2.bf16.msra.mxu0 %v7921_v56  ;;  %v7969_v56 = vld [vmem:[%s11251_s1 + $0xac] ss:$20 sps:$4 sm:$0xff]  }
  0xf4   :  { %5119 = vmatpush2.bf16.msra.mxu1 %v7924_v57  ;;  %5079 = vmatprep.subr.bf16.mxu0 %v7929_v58  ;;  %v7964_v58 = vld [vmem:[%s11251_s1 + $0x14a0] ss:$20 sps:$4 sm:$0xff]  }
  0xf5   :  { %5120 = vmatprep.subr.bf16.mxu1 %v7932_v61  ;;  %v7967_v61 = vld [vmem:[%s11251_s1 + $0xa8] ss:$20 sps:$4 sm:$0xff]  }
  0xf7   :  { %5080 = vmatpush2.bf16.msra.mxu0 %v7927_v62  ;;  %v7972_v62 = vld [vmem:[%s11251_s1 + $0x147c] ss:$20 sps:$4 sm:$0xff]  }
  0xf8   :  { %5121 = vmatpush2.bf16.msra.mxu1 %v7930_v63  ;;  %5081 = vmatprep.subr.bf16.mxu0 %v7935_v1  ;;  %v7975_v63 = vld [vmem:[%s11251_s1 + $0x84] ss:$20 sps:$4 sm:$0xff]  }
  0xf9   :  { %5122 = vmatprep.subr.bf16.mxu1 %v7938_v2  ;;  %v7970_v1 = vld [vmem:[%s11251_s1 + $0x1478] ss:$20 sps:$4 sm:$0xff]   ;;  %v7973_v2 = vld [vmem:[%s11251_s1 + $0x80] ss:$20 sps:$4 sm:$0xff]  }
  0xfb   :  { %5082 = vmatpush2.bf16.msra.mxu0 %v7933_v3  ;;  %v7978_v3 = vld [vmem:[%s11251_s1 + $0x1454] ss:$20 sps:$4 sm:$0xff]  }
  0xfc   :  { %5123 = vmatpush2.bf16.msra.mxu1 %v7936_v4  ;;  %5083 = vmatprep.subr.bf16.mxu0 %v7941_v5  ;;  %v7981_v4 = vld [vmem:[%s11251_s1 + $0x5c] ss:$20 sps:$4 sm:$0xff]  }
  0xfd   :  { %5124 = vmatprep.subr.bf16.mxu1 %v7944_v7  ;;  %v7976_v5 = vld [vmem:[%s11251_s1 + $0x1450] ss:$20 sps:$4 sm:$0xff]   ;;  %v7979_v7 = vld [vmem:[%s11251_s1 + $0x58] ss:$20 sps:$4 sm:$0xff]  }
  0xff   :  { %5084 = vmatpush2.bf16.msra.mxu0 %v7939_v8  ;;  %v7984_v8 = vld [vmem:[%s11251_s1 + $0x142c] ss:$20 sps:$4 sm:$0xff]  }
 0x100   :  { %5125 = vmatpush2.bf16.msra.mxu1 %v7942_v9  ;;  %5135 = vmatprep.subr.bf16.mxu0 %v7948_v39  ;;  %v7987_v9 = vld [vmem:[%s11251_s1 + $0x34] ss:$20 sps:$4 sm:$0xff]   ;;  %v7990_v39 = vld [vmem:[%s11251_s1 + $0x1404] ss:$20 sps:$4 sm:$0xff]  }
 0x101   :  { %5176 = vmatprep.subr.bf16.mxu1 %v7951_v15  ;;  %v7993_v15 = vld [vmem:[%s11251_s1 + $0xc] ss:$20 sps:$4 sm:$0xff]  }
 0x102   :  { %v4841_v31 = vpop.f32.mrf.mxu0  ;;  %5086 = vmatmul.mubr.bf16.vlgmr.msra.gmra.mxu0 %v9552_v10 }
 0x103   :  { %5127 = vmatmul.mubr.bf16.vlgmr.msra.gmra.mxu1 %v9577_v21  ;;  %v4882_v33 = vpop.f32.mrf.mxu1  ;;  %v4842_v36 = vadd.f32 %v4841_v31, %v900_v22  ;;  %5136 = vmatpush1.bf16.msra.mxu0 %v7946_v20  ;;  %v7996_v20 = vld [vmem:[%s11251_s1 + $0x165c] ss:$20 sps:$4 sm:$0xff]   ;;  %v7999_v22 = vld [vmem:[%s11251_s1 + $0x264] ss:$20 sps:$4 sm:$0xff]  }
 0x104   :  { %5177 = vmatpush1.bf16.msra.mxu1 %v7949_v24  ;;  %v4843_v38 = vpop.f32.mrf.mxu0  ;;  %5137 = vmatprep.subr.bf16.mxu0 %v7954_v25  ;;  %v7994_v24 = vld [vmem:[%s11251_s1 + $0x1658] ss:$20 sps:$4 sm:$0xff]   ;;  %v7997_v25 = vld [vmem:[%s11251_s1 + $0x260] ss:$20 sps:$4 sm:$0xff]  }
 0x105   :  { %v4884_v32 = vpop.f32.mrf.mxu1  ;;  %5178 = vmatprep.subr.bf16.mxu1 %v7957_v27  ;;  %v4844_v44 = vadd.f32 %v4843_v38, %v904_v28  ;;  %v9605_v45 = vadd.f32 %v4882_v33, %v4842_v36  ;;  %5167 = vmatprep.mubr.bf16.mxu0 %v9592_v6  ;;  %v8002_v27 = vld [vmem:[%s11251_s1 + $0x1634] ss:$20 sps:$4 sm:$0xff]   ;;  %v8005_v28 = vld [vmem:[%s11251_s1 + $0x23c] ss:$20 sps:$4 sm:$0xff]   ;;  %v8003_v31 = vld [vmem:[%s11251_s1 + $0x238] ss:$20 sps:$4 sm:$0xff]  }
 0x106   :  { %5208 = vmatprep.mubr.bf16.mxu1 %v8848_v60  ;;  %v4845_v48 = vpop.f32.mrf.mxu0  ;;  %v8008_v33 = vld [vmem:[%s11251_s1 + $0x160c] ss:$20 sps:$4 sm:$0xff]   ;;  %v8006_v36 = vld [vmem:[%s11251_s1 + $0x1608] ss:$20 sps:$4 sm:$0xff]   ;;  %v8014_v38 = vld [vmem:[%s11251_s1 + $0x15e4] ss:$20 sps:$4 sm:$0xff]  }
 0x107   :  { %v4886_v51 = vpop.f32.mrf.mxu1  ;;  %v9615_v52 = vadd.f32 %v4884_v32, %v4844_v44  ;;  %5138 = vmatpush1.bf16.msra.mxu0 %v7952_v29  ;;  %v8000_v29 = vld [vmem:[%s11251_s1 + $0x1630] ss:$20 sps:$4 sm:$0xff]   ;;  %v8017_v32 = vld [vmem:[%s11251_s1 + $0x1ec] ss:$20 sps:$4 sm:$0xff]   ;;  %v8015_v44 = vld [vmem:[%s11251_s1 + $0x1e8] ss:$20 sps:$4 sm:$0xff]  }
 0x108   :  { %5179 = vmatpush1.bf16.msra.mxu1 %v7955_v34  ;;  %v4846_v53 = vpop.f32.mrf.mxu0  ;;  %5139 = vmatprep.subr.bf16.mxu0 %v7960_v37  ;;  %v8011_v34 = vld [vmem:[%s11251_s1 + $0x214] ss:$20 sps:$4 sm:$0xff]   ;;  %v8009_v37 = vld [vmem:[%s11251_s1 + $0x210] ss:$20 sps:$4 sm:$0xff]   ;;  %v8018_v48 = vld [vmem:[%s11251_s1 + $0x15b8] ss:$20 sps:$4 sm:$0xff]  }
 0x109   :  { %5180 = vmatprep.subr.bf16.mxu1 %v7963_v40  ;;  %v4887_v57 = vpop.f32.mrf.mxu1  ;;  %v8012_v40 = vld [vmem:[%s11251_s1 + $0x15e0] ss:$20 sps:$4 sm:$0xff]  }
 0x10a   :  { %v8021_v51 = vld [vmem:[%s11251_s1 + $0x1c0] ss:$20 sps:$4 sm:$0xff]   ;;  %v8027_v57 = vld [vmem:[%s11251_s1 + $0x198] ss:$20 sps:$4 sm:$0xff]  }
 0x10b   :  { %5140 = vmatpush1.bf16.msra.mxu0 %v7958_v46  ;;  %v8020_v46 = vld [vmem:[%s11251_s1 + $0x15bc] ss:$20 sps:$4 sm:$0xff]   ;;  %v8026_v53 = vld [vmem:[%s11251_s1 + $0x1594] ss:$20 sps:$4 sm:$0xff]  }
 0x10c   :  { %5181 = vmatpush1.bf16.msra.mxu1 %v7961_v47  ;;  %5141 = vmatprep.subr.bf16.mxu0 %v7966_v35  ;;  %v8023_v47 = vld [vmem:[%s11251_s1 + $0x1c4] ss:$20 sps:$4 sm:$0xff]   ;;  %v8029_v35 = vld [vmem:[%s11251_s1 + $0x19c] ss:$20 sps:$4 sm:$0xff]  }
 0x10d   :  { %5182 = vmatprep.subr.bf16.mxu1 %v7969_v56  ;;  %v8024_v56 = vld [vmem:[%s11251_s1 + $0x1590] ss:$20 sps:$4 sm:$0xff]  }
 0x10f   :  { %5142 = vmatpush1.bf16.msra.mxu0 %v7964_v58  ;;  %v8032_v58 = vld [vmem:[%s11251_s1 + $0x156c] ss:$20 sps:$4 sm:$0xff]  }
 0x110   :  { %5183 = vmatpush1.bf16.msra.mxu1 %v7967_v61  ;;  %5143 = vmatprep.subr.bf16.mxu0 %v7972_v62  ;;  %v8035_v61 = vld [vmem:[%s11251_s1 + $0x174] ss:$20 sps:$4 sm:$0xff]  }
 0x111   :  { %5184 = vmatprep.subr.bf16.mxu1 %v7975_v63  ;;  %v8030_v62 = vld [vmem:[%s11251_s1 + $0x1568] ss:$20 sps:$4 sm:$0xff]   ;;  %v8033_v63 = vld [vmem:[%s11251_s1 + $0x170] ss:$20 sps:$4 sm:$0xff]  }
 0x113   :  { %5144 = vmatpush1.bf16.msra.mxu0 %v7970_v1  ;;  %v8038_v1 = vld [vmem:[%s11251_s1 + $0x1544] ss:$20 sps:$4 sm:$0xff]  }
 0x114   :  { %5185 = vmatpush1.bf16.msra.mxu1 %v7973_v2  ;;  %5145 = vmatprep.subr.bf16.mxu0 %v7978_v3  ;;  %v8041_v2 = vld [vmem:[%s11251_s1 + $0x14c] ss:$20 sps:$4 sm:$0xff]  }
 0x115   :  { %5186 = vmatprep.subr.bf16.mxu1 %v7981_v4  ;;  %v8036_v3 = vld [vmem:[%s11251_s1 + $0x1540] ss:$20 sps:$4 sm:$0xff]   ;;  %v8039_v4 = vld [vmem:[%s11251_s1 + $0x148] ss:$20 sps:$4 sm:$0xff]  }
 0x117   :  { %5146 = vmatpush1.bf16.msra.mxu0 %v7976_v5  ;;  %v8044_v5 = vld [vmem:[%s11251_s1 + $0x3a4] ss:$20 sps:$4 sm:$0xff]  }
 0x118   :  { %5187 = vmatpush1.bf16.msra.mxu1 %v7979_v7  ;;  %5147 = vmatprep.subr.bf16.mxu0 %v7984_v8  ;;  %v8047_v7 = vld [vmem:[%s11251_s1 + $0x624] ss:$20 sps:$4 sm:$0xff]   ;;  %v8042_v8 = vld [vmem:[%s11251_s1 + $0x3a0] ss:$20 sps:$4 sm:$0xff]  }
 0x119   :  { %5188 = vmatprep.subr.bf16.mxu1 %v7987_v9  ;;  %v8045_v9 = vld [vmem:[%s11251_s1 + $0x620] ss:$20 sps:$4 sm:$0xff]  }
 0x11b   :  { %5148 = vmatpush1.bf16.msra.mxu0 %v7982_v12  ;;  %v9787_v12 = vrot.slane %v9557_v11, %v8820_v49  ;;  %v8051_v49 = vld [vmem:[%s11251_s1 + $0x5f8] ss:$20 sps:$4 sm:$0xff]  }
 0x11c   :  { %5189 = vmatpush1.bf16.msra.mxu1 %v7985_v14  ;;  %5149 = vmatprep.subr.bf16.mxu0 %v7990_v39  ;;  %v8050_v14 = vld [vmem:[%s11251_s1 + $0x37c] ss:$20 sps:$4 sm:$0xff]  }
 0x11d   :  { %5190 = vmatprep.subr.bf16.mxu1 %v7993_v15  ;;  %v8053_v39 = vld [vmem:[%s11251_s1 + $0x5fc] ss:$20 sps:$4 sm:$0xff]   ;;  %v8048_v15 = vld [vmem:[%s11251_s1 + $0x378] ss:$20 sps:$4 sm:$0xff]  }
 0x11f   :  { %5150 = vmatpush1.bf16.msra.mxu0 %v7988_v16 }
 0x120   :  { %5191 = vmatpush1.bf16.msra.mxu1 %v7991_v18  ;;  %5151 = vmatprep.subr.bf16.mxu0 %v7996_v20 }
 0x121   :  { %5192 = vmatprep.subr.bf16.mxu1 %v7999_v22 }
 0x123   :  { %5152 = vmatpush2.bf16.msra.mxu0 %v7994_v24  ;;  %v8056_v24 = vld [vmem:[%s11251_s1 + $0x354] ss:$20 sps:$4 sm:$0xff]  }
 0x124   :  { %5193 = vmatpush2.bf16.msra.mxu1 %v7997_v25  ;;  %5153 = vmatprep.subr.bf16.mxu0 %v8002_v27  ;;  %v8059_v25 = vld [vmem:[%s11251_s1 + $0x5d4] ss:$20 sps:$4 sm:$0xff]  }
 0x125   :  { %5194 = vmatprep.subr.bf16.mxu1 %v8005_v28 }
 0x127   :  { %5154 = vmatpush2.bf16.msra.mxu0 %v8000_v29  ;;  %v8057_v29 = vld [vmem:[%s11251_s1 + $0x5d0] ss:$20 sps:$4 sm:$0xff]  }
 0x128   :  { %5195 = vmatpush2.bf16.msra.mxu1 %v8003_v31  ;;  %5155 = vmatprep.subr.bf16.mxu0 %v8008_v33 }
 0x129   :  { %5196 = vmatprep.subr.bf16.mxu1 %v8011_v34 }
 0x12b   :  { %5156 = vmatpush2.bf16.msra.mxu0 %v8006_v36  ;;  %v8062_v36 = vld [vmem:[%s11251_s1 + $0x32c] ss:$20 sps:$4 sm:$0xff]  }
 0x12c   :  { %5197 = vmatpush2.bf16.msra.mxu1 %v8009_v37  ;;  %5157 = vmatprep.subr.bf16.mxu0 %v8014_v38  ;;  %v8065_v37 = vld [vmem:[%s11251_s1 + $0x5ac] ss:$20 sps:$4 sm:$0xff]  }
 0x12d   :  { %5198 = vmatprep.subr.bf16.mxu1 %v8017_v32  ;;  %v8060_v32 = vld [vmem:[%s11251_s1 + $0x328] ss:$20 sps:$4 sm:$0xff]  }
 0x12f   :  { %5158 = vmatpush2.bf16.msra.mxu0 %v8012_v40  ;;  %v8063_v40 = vld [vmem:[%s11251_s1 + $0x5a8] ss:$20 sps:$4 sm:$0xff]  }
 0x130   :  { %5199 = vmatpush2.bf16.msra.mxu1 %v8015_v44  ;;  %5159 = vmatprep.subr.bf16.mxu0 %v8020_v46  ;;  %v8068_v44 = vld [vmem:[%s11251_s1 + $0x304] ss:$20 sps:$4 sm:$0xff]  }
 0x131   :  { %5200 = vmatprep.subr.bf16.mxu1 %v8023_v47  ;;  %v8071_v46 = vld [vmem:[%s11251_s1 + $0x584] ss:$20 sps:$4 sm:$0xff]   ;;  %v8066_v47 = vld [vmem:[%s11251_s1 + $0x300] ss:$20 sps:$4 sm:$0xff]  }
 0x133   :  { %5160 = vmatpush2.bf16.msra.mxu0 %v8018_v48  ;;  %v8069_v48 = vld [vmem:[%s11251_s1 + $0x580] ss:$20 sps:$4 sm:$0xff]  }
 0x134   :  { %5201 = vmatpush2.bf16.msra.mxu1 %v8021_v51  ;;  %5161 = vmatprep.subr.bf16.mxu0 %v8026_v53  ;;  %v8074_v51 = vld [vmem:[%s11251_s1 + $0x2dc] ss:$20 sps:$4 sm:$0xff]  }
 0x135   :  { %5202 = vmatprep.subr.bf16.mxu1 %v8029_v35  ;;  %v8077_v53 = vld [vmem:[%s11251_s1 + $0x55c] ss:$20 sps:$4 sm:$0xff]   ;;  %v8072_v35 = vld [vmem:[%s11251_s1 + $0x2d8] ss:$20 sps:$4 sm:$0xff]  }
 0x137   :  { %5162 = vmatpush2.bf16.msra.mxu0 %v8024_v56  ;;  %v8075_v56 = vld [vmem:[%s11251_s1 + $0x558] ss:$20 sps:$4 sm:$0xff]  }
 0x138   :  { %5203 = vmatpush2.bf16.msra.mxu1 %v8027_v57  ;;  %5163 = vmatprep.subr.bf16.mxu0 %v8032_v58  ;;  %v8080_v57 = vld [vmem:[%s11251_s1 + $0x2b4] ss:$20 sps:$4 sm:$0xff]  }
 0x139   :  { %5204 = vmatprep.subr.bf16.mxu1 %v8035_v61  ;;  %v8083_v58 = vld [vmem:[%s11251_s1 + $0x534] ss:$20 sps:$4 sm:$0xff]   ;;  %v8078_v61 = vld [vmem:[%s11251_s1 + $0x2b0] ss:$20 sps:$4 sm:$0xff]  }
 0x13b   :  { %5164 = vmatpush2.bf16.msra.mxu0 %v8030_v62  ;;  %v8081_v62 = vld [vmem:[%s11251_s1 + $0x530] ss:$20 sps:$4 sm:$0xff]  }
 0x13c   :  { %5205 = vmatpush2.bf16.msra.mxu1 %v8033_v63  ;;  %5165 = vmatprep.subr.bf16.mxu0 %v8038_v1  ;;  %v8086_v63 = vld [vmem:[%s11251_s1 + $0x28c] ss:$20 sps:$4 sm:$0xff]  }
 0x13d   :  { %5206 = vmatprep.subr.bf16.mxu1 %v8041_v2  ;;  %v8089_v1 = vld [vmem:[%s11251_s1 + $0x50c] ss:$20 sps:$4 sm:$0xff]   ;;  %v8084_v2 = vld [vmem:[%s11251_s1 + $0x288] ss:$20 sps:$4 sm:$0xff]  }
 0x13f   :  { %5166 = vmatpush2.bf16.msra.mxu0 %v8036_v3  ;;  %v8087_v3 = vld [vmem:[%s11251_s1 + $0x508] ss:$20 sps:$4 sm:$0xff]  }
 0x140   :  { %5207 = vmatpush2.bf16.msra.mxu1 %v8039_v4  ;;  %5217 = vmatprep.subr.bf16.mxu0 %v8044_v5  ;;  %v8092_v4 = vld [vmem:[%s11251_s1 + $0x4e4] ss:$20 sps:$4 sm:$0xff]  }
 0x141   :  { %5258 = vmatprep.subr.bf16.mxu1 %v8047_v7  ;;  %v8095_v5 = vld [vmem:[%s11251_s1 + $0x764] ss:$20 sps:$4 sm:$0xff]   ;;  %v8090_v7 = vld [vmem:[%s11251_s1 + $0x4e0] ss:$20 sps:$4 sm:$0xff]  }
 0x142   :  { %v4923_v11 = vpop.f32.mrf.mxu0  ;;  %5168 = vmatmul.mubr.bf16.vlgmr.msra.gmra.mxu0 %v9787_v12 }
 0x143   :  { %5209 = vmatmul.mubr.bf16.vlgmr.msra.gmra.mxu1 %v8898_v13  ;;  %v4964_v16 = vpop.f32.mrf.mxu1  ;;  %v4924_v18 = vadd.f32 %v4923_v11, %v9605_v45  ;;  %5218 = vmatpush1.bf16.msra.mxu0 %v8042_v8  ;;  %v8054_v45 = vld [vmem:[%s11251_s1 + $0x350] ss:$20 sps:$4 sm:$0xff]   ;;  %v8093_v8 = vld [vmem:[%s11251_s1 + $0x760] ss:$20 sps:$4 sm:$0xff]  }
 0x144   :  { %5259 = vmatpush1.bf16.msra.mxu1 %v8045_v9  ;;  %v4925_v20 = vpop.f32.mrf.mxu0  ;;  %5219 = vmatprep.subr.bf16.mxu0 %v8050_v14  ;;  %v8098_v9 = vld [vmem:[%s11251_s1 + $0x4bc] ss:$20 sps:$4 sm:$0xff]   ;;  %v8107_v11 = vld [vmem:[%s11251_s1 + $0x714] ss:$20 sps:$4 sm:$0xff]  }
 0x145   :  { %v4966_v22 = vpop.f32.mrf.mxu1  ;;  %5260 = vmatprep.subr.bf16.mxu1 %v8053_v39  ;;  %v4926_v27 = vadd.f32 %v4925_v20, %v9615_v52  ;;  %v9811_v28 = vadd.f32 %v4964_v16, %v4924_v18  ;;  %5249 = vmatprep.mubr.bf16.mxu0 %v8861_v0  ;;  %v8101_v14 = vld [vmem:[%s11251_s1 + $0x73c] ss:$20 sps:$4 sm:$0xff]   ;;  %v8096_v39 = vld [vmem:[%s11251_s1 + $0x4b8] ss:$20 sps:$4 sm:$0xff]  }
 0x146   :  { %5290 = vmatprep.mubr.bf16.mxu1 %v8910_v17  ;;  %v4927_v31 = vpop.f32.mrf.mxu0  ;;  %v8102_v16 = vld [vmem:[%s11251_s1 + $0x490] ss:$20 sps:$4 sm:$0xff]   ;;  %v8110_v20 = vld [vmem:[%s11251_s1 + $0x46c] ss:$20 sps:$4 sm:$0xff]  }
 0x147   :  { %v4968_v33 = vpop.f32.mrf.mxu1  ;;  %v9821_v34 = vadd.f32 %v4966_v22, %v4926_v27  ;;  %5220 = vmatpush1.bf16.msra.mxu0 %v8048_v15  ;;  %v8099_v15 = vld [vmem:[%s11251_s1 + $0x738] ss:$20 sps:$4 sm:$0xff]   ;;  %v8105_v18 = vld [vmem:[%s11251_s1 + $0x710] ss:$20 sps:$4 sm:$0xff]   ;;  %v8117_v31 = vld [vmem:[%s11251_s1 + $0x6c0] ss:$20 sps:$4 sm:$0xff]  }
 0x148   :  { %5261 = vmatpush1.bf16.msra.mxu1 %v8051_v49  ;;  %v4928_v52 = vpop.f32.mrf.mxu0  ;;  %5221 = vmatprep.subr.bf16.mxu0 %v8056_v24  ;;  %v8104_v49 = vld [vmem:[%s11251_s1 + $0x494] ss:$20 sps:$4 sm:$0xff]   ;;  %v8113_v22 = vld [vmem:[%s11251_s1 + $0x6ec] ss:$20 sps:$4 sm:$0xff]   ;;  %v8116_v27 = vld [vmem:[%s11251_s1 + $0x444] ss:$20 sps:$4 sm:$0xff]  }
 0x149   :  { %5262 = vmatprep.subr.bf16.mxu1 %v8059_v25  ;;  %v4969_v38 = vpop.f32.mrf.mxu1  ;;  %v8108_v24 = vld [vmem:[%s11251_s1 + $0x468] ss:$20 sps:$4 sm:$0xff]  }
 0x14a   :  { %v8111_v25 = vld [vmem:[%s11251_s1 + $0x6e8] ss:$20 sps:$4 sm:$0xff]  }
 0x14b   :  { %5222 = vmatpush1.bf16.msra.mxu0 %v8054_v45  ;;  %v8119_v45 = vld [vmem:[%s11251_s1 + $0x6c4] ss:$20 sps:$4 sm:$0xff]   ;;  %v8122_v33 = vld [vmem:[%s11251_s1 + $0x41c] ss:$20 sps:$4 sm:$0xff]   ;;  %v8128_v38 = vld [vmem:[%s11251_s1 + $0x3f4] ss:$20 sps:$4 sm:$0xff]  }
 0x14c   :  { %5263 = vmatpush1.bf16.msra.mxu1 %v8057_v29  ;;  %5223 = vmatprep.subr.bf16.mxu0 %v8062_v36  ;;  %v8114_v29 = vld [vmem:[%s11251_s1 + $0x440] ss:$20 sps:$4 sm:$0xff]   ;;  %v8125_v52 = vld [vmem:[%s11251_s1 + $0x69c] ss:$20 sps:$4 sm:$0xff]   ;;  %v8120_v36 = vld [vmem:[%s11251_s1 + $0x418] ss:$20 sps:$4 sm:$0xff]  }
 0x14d   :  { %5264 = vmatprep.subr.bf16.mxu1 %v8065_v37  ;;  %v8123_v37 = vld [vmem:[%s11251_s1 + $0x698] ss:$20 sps:$4 sm:$0xff]  }
 0x14f   :  { %5224 = vmatpush1.bf16.msra.mxu0 %v8060_v32  ;;  %v8131_v32 = vld [vmem:[%s11251_s1 + $0x674] ss:$20 sps:$4 sm:$0xff]  }
 0x150   :  { %5265 = vmatpush1.bf16.msra.mxu1 %v8063_v40  ;;  %5225 = vmatprep.subr.bf16.mxu0 %v8068_v44  ;;  %v8126_v40 = vld [vmem:[%s11251_s1 + $0x3f0] ss:$20 sps:$4 sm:$0xff]  }
 0x151   :  { %5266 = vmatprep.subr.bf16.mxu1 %v8071_v46  ;;  %v8129_v44 = vld [vmem:[%s11251_s1 + $0x670] ss:$20 sps:$4 sm:$0xff]   ;;  %v8134_v46 = vld [vmem:[%s11251_s1 + $0x3cc] ss:$20 sps:$4 sm:$0xff]  }
 0x153   :  { %5226 = vmatpush1.bf16.msra.mxu0 %v8066_v47  ;;  %v8137_v47 = vld [vmem:[%s11251_s1 + $0x64c] ss:$20 sps:$4 sm:$0xff]  }
 0x154   :  { %5267 = vmatpush1.bf16.msra.mxu1 %v8069_v48  ;;  %5227 = vmatprep.subr.bf16.mxu0 %v8074_v51  ;;  %v8132_v48 = vld [vmem:[%s11251_s1 + $0x3c8] ss:$20 sps:$4 sm:$0xff]  }
 0x155   :  { %5268 = vmatprep.subr.bf16.mxu1 %v8077_v53  ;;  %v8135_v51 = vld [vmem:[%s11251_s1 + $0x648] ss:$20 sps:$4 sm:$0xff]   ;;  %v8140_v53 = vld [vmem:[%s11251_s1 + $0x8a4] ss:$20 sps:$4 sm:$0xff]  }
 0x157   :  { %5228 = vmatpush1.bf16.msra.mxu0 %v8072_v35  ;;  %v8143_v35 = vld [vmem:[%s11251_s1 + $0xb24] ss:$20 sps:$4 sm:$0xff]  }
 0x158   :  { %5269 = vmatpush1.bf16.msra.mxu1 %v8075_v56  ;;  %5229 = vmatprep.subr.bf16.mxu0 %v8080_v57  ;;  %v8138_v56 = vld [vmem:[%s11251_s1 + $0x8a0] ss:$20 sps:$4 sm:$0xff]  }
 0x159   :  { %5270 = vmatprep.subr.bf16.mxu1 %v8083_v58  ;;  %v8141_v57 = vld [vmem:[%s11251_s1 + $0xb20] ss:$20 sps:$4 sm:$0xff]   ;;  %v8146_v58 = vld [vmem:[%s11251_s1 + $0x87c] ss:$20 sps:$4 sm:$0xff]  }
 0x15b   :  { %5230 = vmatpush1.bf16.msra.mxu0 %v8078_v61  ;;  %v8149_v61 = vld [vmem:[%s11251_s1 + $0xafc] ss:$20 sps:$4 sm:$0xff]  }
 0x15c   :  { %5271 = vmatpush1.bf16.msra.mxu1 %v8081_v62  ;;  %5231 = vmatprep.subr.bf16.mxu0 %v8086_v63  ;;  %v8144_v62 = vld [vmem:[%s11251_s1 + $0x878] ss:$20 sps:$4 sm:$0xff]  }
 0x15d   :  { %5272 = vmatprep.subr.bf16.mxu1 %v8089_v1  ;;  %v8147_v63 = vld [vmem:[%s11251_s1 + $0xaf8] ss:$20 sps:$4 sm:$0xff]  }
 0x15f   :  { %5232 = vmatpush1.bf16.msra.mxu0 %v8084_v2 }
 0x160   :  { %5273 = vmatpush1.bf16.msra.mxu1 %v8087_v3  ;;  %5233 = vmatprep.subr.bf16.mxu0 %v8092_v4 }
 0x161   :  { %5274 = vmatprep.subr.bf16.mxu1 %v8095_v5 }
 0x163   :  { %5234 = vmatpush2.bf16.msra.mxu0 %v8090_v7  ;;  %v8152_v7 = vld [vmem:[%s11251_s1 + $0x854] ss:$20 sps:$4 sm:$0xff]  }
 0x164   :  { %5275 = vmatpush2.bf16.msra.mxu1 %v8093_v8  ;;  %5235 = vmatprep.subr.bf16.mxu0 %v8098_v9  ;;  %v8155_v8 = vld [vmem:[%s11251_s1 + $0xad4] ss:$20 sps:$4 sm:$0xff]  }
 0x165   :  { %5276 = vmatprep.subr.bf16.mxu1 %v8101_v14 }
 0x167   :  { %5236 = vmatpush2.bf16.msra.mxu0 %v8096_v39  ;;  %v8153_v39 = vld [vmem:[%s11251_s1 + $0xad0] ss:$20 sps:$4 sm:$0xff]  }
 0x168   :  { %5277 = vmatpush2.bf16.msra.mxu1 %v8099_v15  ;;  %5237 = vmatprep.subr.bf16.mxu0 %v8104_v49 }
 0x169   :  { %5278 = vmatprep.subr.bf16.mxu1 %v8107_v11 }
 0x16b   :  { %5238 = vmatpush2.bf16.msra.mxu0 %v8102_v16  ;;  %v8158_v16 = vld [vmem:[%s11251_s1 + $0x82c] ss:$20 sps:$4 sm:$0xff]  }
 0x16c   :  { %5279 = vmatpush2.bf16.msra.mxu1 %v8105_v18  ;;  %5239 = vmatprep.subr.bf16.mxu0 %v8110_v20  ;;  %v8161_v18 = vld [vmem:[%s11251_s1 + $0xaac] ss:$20 sps:$4 sm:$0xff]  }
 0x16d   :  { %5280 = vmatprep.subr.bf16.mxu1 %v8113_v22  ;;  %v8156_v22 = vld [vmem:[%s11251_s1 + $0x828] ss:$20 sps:$4 sm:$0xff]  }
 0x16f   :  { %5240 = vmatpush2.bf16.msra.mxu0 %v8108_v24  ;;  %v8159_v24 = vld [vmem:[%s11251_s1 + $0xaa8] ss:$20 sps:$4 sm:$0xff]  }
 0x170   :  { %5281 = vmatpush2.bf16.msra.mxu1 %v8111_v25  ;;  %5241 = vmatprep.subr.bf16.mxu0 %v8116_v27  ;;  %v8164_v25 = vld [vmem:[%s11251_s1 + $0x804] ss:$20 sps:$4 sm:$0xff]  }
 0x171   :  { %5282 = vmatprep.subr.bf16.mxu1 %v8119_v45  ;;  %v8167_v27 = vld [vmem:[%s11251_s1 + $0xa84] ss:$20 sps:$4 sm:$0xff]   ;;  %v8162_v45 = vld [vmem:[%s11251_s1 + $0x800] ss:$20 sps:$4 sm:$0xff]  }
 0x173   :  { %5242 = vmatpush2.bf16.msra.mxu0 %v8114_v29  ;;  %v8165_v29 = vld [vmem:[%s11251_s1 + $0xa80] ss:$20 sps:$4 sm:$0xff]  }
 0x174   :  { %5283 = vmatpush2.bf16.msra.mxu1 %v8117_v31  ;;  %5243 = vmatprep.subr.bf16.mxu0 %v8122_v33  ;;  %v8170_v31 = vld [vmem:[%s11251_s1 + $0x7dc] ss:$20 sps:$4 sm:$0xff]  }
 0x175   :  { %5284 = vmatprep.subr.bf16.mxu1 %v8125_v52  ;;  %v8173_v33 = vld [vmem:[%s11251_s1 + $0xa5c] ss:$20 sps:$4 sm:$0xff]   ;;  %v8168_v52 = vld [vmem:[%s11251_s1 + $0x7d8] ss:$20 sps:$4 sm:$0xff]  }
 0x177   :  { %5244 = vmatpush2.bf16.msra.mxu0 %v8120_v36  ;;  %v8171_v36 = vld [vmem:[%s11251_s1 + $0xa58] ss:$20 sps:$4 sm:$0xff]  }
 0x178   :  { %5285 = vmatpush2.bf16.msra.mxu1 %v8123_v37  ;;  %5245 = vmatprep.subr.bf16.mxu0 %v8128_v38  ;;  %v8176_v37 = vld [vmem:[%s11251_s1 + $0x7b4] ss:$20 sps:$4 sm:$0xff]  }
 0x179   :  { %5286 = vmatprep.subr.bf16.mxu1 %v8131_v32  ;;  %v8179_v38 = vld [vmem:[%s11251_s1 + $0xa34] ss:$20 sps:$4 sm:$0xff]   ;;  %v8174_v32 = vld [vmem:[%s11251_s1 + $0x7b0] ss:$20 sps:$4 sm:$0xff]  }
 0x17b   :  { %5246 = vmatpush2.bf16.msra.mxu0 %v8126_v40  ;;  %v8177_v40 = vld [vmem:[%s11251_s1 + $0xa30] ss:$20 sps:$4 sm:$0xff]  }
 0x17c   :  { %5287 = vmatpush2.bf16.msra.mxu1 %v8129_v44  ;;  %5247 = vmatprep.subr.bf16.mxu0 %v8134_v46  ;;  %v8182_v44 = vld [vmem:[%s11251_s1 + $0x78c] ss:$20 sps:$4 sm:$0xff]  }
 0x17d   :  { %5288 = vmatprep.subr.bf16.mxu1 %v8137_v47  ;;  %v8185_v46 = vld [vmem:[%s11251_s1 + $0xa0c] ss:$20 sps:$4 sm:$0xff]   ;;  %v8180_v47 = vld [vmem:[%s11251_s1 + $0x788] ss:$20 sps:$4 sm:$0xff]  }
 0x17f   :  { %5248 = vmatpush2.bf16.msra.mxu0 %v8132_v48  ;;  %v8183_v48 = vld [vmem:[%s11251_s1 + $0xa08] ss:$20 sps:$4 sm:$0xff]  }
 0x180   :  { %5289 = vmatpush2.bf16.msra.mxu1 %v8135_v51  ;;  %5299 = vmatprep.subr.bf16.mxu0 %v8140_v53  ;;  %v8188_v51 = vld [vmem:[%s11251_s1 + $0x9e4] ss:$20 sps:$4 sm:$0xff]  }
 0x181   :  { %5340 = vmatprep.subr.bf16.mxu1 %v8143_v35  ;;  %v8191_v53 = vld [vmem:[%s11251_s1 + $0xc64] ss:$20 sps:$4 sm:$0xff]   ;;  %v8186_v35 = vld [vmem:[%s11251_s1 + $0x9e0] ss:$20 sps:$4 sm:$0xff]  }
 0x182   :  { %v5005_v1 = vpop.f32.mrf.mxu0  ;;  %5250 = vmatmul.mubr.bf16.vlgmr.msra.gmra.mxu0 %v8917_v19 }
 0x183   :  { %5291 = vmatmul.mubr.bf16.vlgmr.msra.gmra.mxu1 %v9109_v26  ;;  %v5046_v2 = vpop.f32.mrf.mxu1  ;;  %v5006_v3 = vadd.f32 %v5005_v1, %v9811_v28  ;;  %5300 = vmatpush1.bf16.msra.mxu0 %v8138_v56  ;;  %v8150_v28 = vld [vmem:[%s11251_s1 + $0x850] ss:$20 sps:$4 sm:$0xff]   ;;  %v8189_v56 = vld [vmem:[%s11251_s1 + $0xc60] ss:$20 sps:$4 sm:$0xff]  }
 0x184   :  { %5341 = vmatpush1.bf16.msra.mxu1 %v8141_v57  ;;  %v5007_v4 = vpop.f32.mrf.mxu0  ;;  %5301 = vmatprep.subr.bf16.mxu0 %v8146_v58  ;;  %v8194_v57 = vld [vmem:[%s11251_s1 + $0x9bc] ss:$20 sps:$4 sm:$0xff]   ;;  %v8203_v1 = vld [vmem:[%s11251_s1 + $0xc14] ss:$20 sps:$4 sm:$0xff]  }
 0x185   :  { %v5048_v5 = vpop.f32.mrf.mxu1  ;;  %5342 = vmatprep.subr.bf16.mxu1 %v8149_v61  ;;  %v5008_v9 = vadd.f32 %v5007_v4, %v9821_v34  ;;  %v10013_v14 = vadd.f32 %v5046_v2, %v5006_v3  ;;  %5331 = vmatprep.mubr.bf16.mxu0 %v8930_v23  ;;  %v8197_v58 = vld [vmem:[%s11251_s1 + $0xc3c] ss:$20 sps:$4 sm:$0xff]   ;;  %v8192_v61 = vld [vmem:[%s11251_s1 + $0x9b8] ss:$20 sps:$4 sm:$0xff]  }
 0x186   :  { %5372 = vmatprep.mubr.bf16.mxu1 %v9162_v41  ;;  %v5009_v15 = vpop.f32.mrf.mxu0  ;;  %v8198_v2 = vld [vmem:[%s11251_s1 + $0x990] ss:$20 sps:$4 sm:$0xff]   ;;  %v8206_v4 = vld [vmem:[%s11251_s1 + $0x96c] ss:$20 sps:$4 sm:$0xff]  }
 0x187   :  { %v5050_v49 = vpop.f32.mrf.mxu1  ;;  %v10023_v11 = vadd.f32 %v5048_v5, %v5008_v9  ;;  %5302 = vmatpush1.bf16.msra.mxu0 %v8144_v62  ;;  %v8195_v62 = vld [vmem:[%s11251_s1 + $0xc38] ss:$20 sps:$4 sm:$0xff]   ;;  %v8201_v3 = vld [vmem:[%s11251_s1 + $0xc10] ss:$20 sps:$4 sm:$0xff]   ;;  %v8213_v15 = vld [vmem:[%s11251_s1 + $0xbc0] ss:$20 sps:$4 sm:$0xff]  }
 0x188   :  { %5343 = vmatpush1.bf16.msra.mxu1 %v8147_v63  ;;  %v5010_v34 = vpop.f32.mrf.mxu0  ;;  %5303 = vmatprep.subr.bf16.mxu0 %v8152_v7  ;;  %v8200_v63 = vld [vmem:[%s11251_s1 + $0x994] ss:$20 sps:$4 sm:$0xff]   ;;  %v8209_v5 = vld [vmem:[%s11251_s1 + $0xbec] ss:$20 sps:$4 sm:$0xff]   ;;  %v8212_v9 = vld [vmem:[%s11251_s1 + $0x944] ss:$20 sps:$4 sm:$0xff]  }
 0x189   :  { %5344 = vmatprep.subr.bf16.mxu1 %v8155_v8  ;;  %v5051_v20 = vpop.f32.mrf.mxu1  ;;  %v8204_v7 = vld [vmem:[%s11251_s1 + $0x968] ss:$20 sps:$4 sm:$0xff]  }
 0x18a   :  { %v8207_v8 = vld [vmem:[%s11251_s1 + $0xbe8] ss:$20 sps:$4 sm:$0xff]  }
 0x18b   :  { %5304 = vmatpush1.bf16.msra.mxu0 %v8150_v28  ;;  %v8215_v28 = vld [vmem:[%s11251_s1 + $0xbc4] ss:$20 sps:$4 sm:$0xff]   ;;  %v8218_v49 = vld [vmem:[%s11251_s1 + $0x91c] ss:$20 sps:$4 sm:$0xff]   ;;  %v8224_v20 = vld [vmem:[%s11251_s1 + $0x8f4] ss:$20 sps:$4 sm:$0xff]  }
 0x18c   :  { %5345 = vmatpush1.bf16.msra.mxu1 %v8153_v39  ;;  %5305 = vmatprep.subr.bf16.mxu0 %v8158_v16  ;;  %v8210_v39 = vld [vmem:[%s11251_s1 + $0x940] ss:$20 sps:$4 sm:$0xff]   ;;  %v8221_v34 = vld [vmem:[%s11251_s1 + $0xb9c] ss:$20 sps:$4 sm:$0xff]   ;;  %v8216_v16 = vld [vmem:[%s11251_s1 + $0x918] ss:$20 sps:$4 sm:$0xff]  }
 0x18d   :  { %5346 = vmatprep.subr.bf16.mxu1 %v8161_v18  ;;  %v8219_v18 = vld [vmem:[%s11251_s1 + $0xb98] ss:$20 sps:$4 sm:$0xff]  }
 0x18f   :  { %5306 = vmatpush1.bf16.msra.mxu0 %v8156_v22  ;;  %v8227_v22 = vld [vmem:[%s11251_s1 + $0xb74] ss:$20 sps:$4 sm:$0xff]  }
 0x190   :  { %5347 = vmatpush1.bf16.msra.mxu1 %v8159_v24  ;;  %5307 = vmatprep.subr.bf16.mxu0 %v8164_v25  ;;  %v8222_v24 = vld [vmem:[%s11251_s1 + $0x8f0] ss:$20 sps:$4 sm:$0xff]  }
 0x191   :  { %5348 = vmatprep.subr.bf16.mxu1 %v8167_v27  ;;  %v8225_v25 = vld [vmem:[%s11251_s1 + $0xb70] ss:$20 sps:$4 sm:$0xff]   ;;  %v8230_v27 = vld [vmem:[%s11251_s1 + $0x8cc] ss:$20 sps:$4 sm:$0xff]  }
 0x193   :  { %5308 = vmatpush1.bf16.msra.mxu0 %v8162_v45  ;;  %v8233_v45 = vld [vmem:[%s11251_s1 + $0xb4c] ss:$20 sps:$4 sm:$0xff]  }
 0x194   :  { %5349 = vmatpush1.bf16.msra.mxu1 %v8165_v29  ;;  %5309 = vmatprep.subr.bf16.mxu0 %v8170_v31  ;;  %v8228_v29 = vld [vmem:[%s11251_s1 + $0x8c8] ss:$20 sps:$4 sm:$0xff]  }
 0x195   :  { %5350 = vmatprep.subr.bf16.mxu1 %v8173_v33  ;;  %v8231_v31 = vld [vmem:[%s11251_s1 + $0xb48] ss:$20 sps:$4 sm:$0xff]   ;;  %v8236_v33 = vld [vmem:[%s11251_s1 + $0xda4] ss:$20 sps:$4 sm:$0xff]  }
 0x197   :  { %5310 = vmatpush1.bf16.msra.mxu0 %v8168_v52  ;;  %v8239_v52 = vld [vmem:[%s11251_s1 + $0x1024] ss:$20 sps:$4 sm:$0xff]  }
 0x198   :  { %5351 = vmatpush1.bf16.msra.mxu1 %v8171_v36  ;;  %5311 = vmatprep.subr.bf16.mxu0 %v8176_v37  ;;  %v8234_v36 = vld [vmem:[%s11251_s1 + $0xda0] ss:$20 sps:$4 sm:$0xff]  }
 0x199   :  { %5352 = vmatprep.subr.bf16.mxu1 %v8179_v38  ;;  %v8237_v37 = vld [vmem:[%s11251_s1 + $0x1020] ss:$20 sps:$4 sm:$0xff]   ;;  %v8242_v38 = vld [vmem:[%s11251_s1 + $0xd7c] ss:$20 sps:$4 sm:$0xff]  }
 0x19b   :  { %5312 = vmatpush1.bf16.msra.mxu0 %v8174_v32  ;;  %v8245_v32 = vld [vmem:[%s11251_s1 + $0xffc] ss:$20 sps:$4 sm:$0xff]  }
 0x19c   :  { %5353 = vmatpush1.bf16.msra.mxu1 %v8177_v40  ;;  %5313 = vmatprep.subr.bf16.mxu0 %v8182_v44  ;;  %v8240_v40 = vld [vmem:[%s11251_s1 + $0xd78] ss:$20 sps:$4 sm:$0xff]  }
 0x19d   :  { %5354 = vmatprep.subr.bf16.mxu1 %v8185_v46  ;;  %v8243_v44 = vld [vmem:[%s11251_s1 + $0xff8] ss:$20 sps:$4 sm:$0xff]  }
 0x19f   :  { %5314 = vmatpush1.bf16.msra.mxu0 %v8180_v47 }
 0x1a0   :  { %5355 = vmatpush1.bf16.msra.mxu1 %v8183_v48  ;;  %5315 = vmatprep.subr.bf16.mxu0 %v8188_v51 }
 0x1a1   :  { %5356 = vmatprep.subr.bf16.mxu1 %v8191_v53 }
 0x1a3   :  { %5316 = vmatpush2.bf16.msra.mxu0 %v8186_v35  ;;  %v8248_v35 = vld [vmem:[%s11251_s1 + $0xd54] ss:$20 sps:$4 sm:$0xff]  }
 0x1a4   :  { %5357 = vmatpush2.bf16.msra.mxu1 %v8189_v56  ;;  %5317 = vmatprep.subr.bf16.mxu0 %v8194_v57  ;;  %v8251_v56 = vld [vmem:[%s11251_s1 + $0xfd4] ss:$20 sps:$4 sm:$0xff]  }
 0x1a5   :  { %5358 = vmatprep.subr.bf16.mxu1 %v8197_v58 }
 0x1a7   :  { %5318 = vmatpush2.bf16.msra.mxu0 %v8192_v61  ;;  %v8249_v61 = vld [vmem:[%s11251_s1 + $0xfd0] ss:$20 sps:$4 sm:$0xff]  }
 0x1a8   :  { %5359 = vmatpush2.bf16.msra.mxu1 %v8195_v62  ;;  %5319 = vmatprep.subr.bf16.mxu0 %v8200_v63 }
 0x1a9   :  { %5360 = vmatprep.subr.bf16.mxu1 %v8203_v1 }
 0x1ab   :  { %5320 = vmatpush2.bf16.msra.mxu0 %v8198_v2  ;;  %v8254_v2 = vld [vmem:[%s11251_s1 + $0xd2c] ss:$20 sps:$4 sm:$0xff]  }
 0x1ac   :  { %5361 = vmatpush2.bf16.msra.mxu1 %v8201_v3  ;;  %5321 = vmatprep.subr.bf16.mxu0 %v8206_v4  ;;  %v8257_v3 = vld [vmem:[%s11251_s1 + $0xfac] ss:$20 sps:$4 sm:$0xff]  }
 0x1ad   :  { %5362 = vmatprep.subr.bf16.mxu1 %v8209_v5  ;;  %v8252_v5 = vld [vmem:[%s11251_s1 + $0xd28] ss:$20 sps:$4 sm:$0xff]  }
 0x1af   :  { %5322 = vmatpush2.bf16.msra.mxu0 %v8204_v7  ;;  %v8255_v7 = vld [vmem:[%s11251_s1 + $0xfa8] ss:$20 sps:$4 sm:$0xff]  }
 0x1b0   :  { %5363 = vmatpush2.bf16.msra.mxu1 %v8207_v8  ;;  %5323 = vmatprep.subr.bf16.mxu0 %v8212_v9  ;;  %v8260_v8 = vld [vmem:[%s11251_s1 + $0xd04] ss:$20 sps:$4 sm:$0xff]  }
 0x1b1   :  { %5364 = vmatprep.subr.bf16.mxu1 %v8215_v28  ;;  %v8263_v9 = vld [vmem:[%s11251_s1 + $0xf84] ss:$20 sps:$4 sm:$0xff]   ;;  %v8258_v28 = vld [vmem:[%s11251_s1 + $0xd00] ss:$20 sps:$4 sm:$0xff]  }
 0x1b3   :  { %5324 = vmatpush2.bf16.msra.mxu0 %v8210_v39  ;;  %v8261_v39 = vld [vmem:[%s11251_s1 + $0xf80] ss:$20 sps:$4 sm:$0xff]  }
 0x1b4   :  { %5365 = vmatpush2.bf16.msra.mxu1 %v8213_v15  ;;  %5325 = vmatprep.subr.bf16.mxu0 %v8218_v49  ;;  %v8266_v15 = vld [vmem:[%s11251_s1 + $0xcdc] ss:$20 sps:$4 sm:$0xff]  }
 0x1b5   :  { %5366 = vmatprep.subr.bf16.mxu1 %v8221_v34  ;;  %v8269_v49 = vld [vmem:[%s11251_s1 + $0xf5c] ss:$20 sps:$4 sm:$0xff]   ;;  %v8264_v34 = vld [vmem:[%s11251_s1 + $0xcd8] ss:$20 sps:$4 sm:$0xff]  }
 0x1b7   :  { %5326 = vmatpush2.bf16.msra.mxu0 %v8216_v16  ;;  %v8267_v16 = vld [vmem:[%s11251_s1 + $0xf58] ss:$20 sps:$4 sm:$0xff]  }
 0x1b8   :  { %5367 = vmatpush2.bf16.msra.mxu1 %v8219_v18  ;;  %5327 = vmatprep.subr.bf16.mxu0 %v8224_v20  ;;  %v8272_v18 = vld [vmem:[%s11251_s1 + $0xcb4] ss:$20 sps:$4 sm:$0xff]  }
 0x1b9   :  { %5368 = vmatprep.subr.bf16.mxu1 %v8227_v22  ;;  %v8275_v20 = vld [vmem:[%s11251_s1 + $0xf34] ss:$20 sps:$4 sm:$0xff]   ;;  %v8270_v22 = vld [vmem:[%s11251_s1 + $0xcb0] ss:$20 sps:$4 sm:$0xff]  }
 0x1bb   :  { %5328 = vmatpush2.bf16.msra.mxu0 %v8222_v24  ;;  %v8273_v24 = vld [vmem:[%s11251_s1 + $0xf30] ss:$20 sps:$4 sm:$0xff]  }
 0x1bc   :  { %5369 = vmatpush2.bf16.msra.mxu1 %v8225_v25  ;;  %5329 = vmatprep.subr.bf16.mxu0 %v8230_v27  ;;  %v8278_v25 = vld [vmem:[%s11251_s1 + $0xc8c] ss:$20 sps:$4 sm:$0xff]  }
 0x1bd   :  { %5370 = vmatprep.subr.bf16.mxu1 %v8233_v45  ;;  %v8281_v27 = vld [vmem:[%s11251_s1 + $0xf0c] ss:$20 sps:$4 sm:$0xff]   ;;  %v8276_v45 = vld [vmem:[%s11251_s1 + $0xc88] ss:$20 sps:$4 sm:$0xff]  }
 0x1bf   :  { %5330 = vmatpush2.bf16.msra.mxu0 %v8228_v29  ;;  %v8279_v29 = vld [vmem:[%s11251_s1 + $0xf08] ss:$20 sps:$4 sm:$0xff]  }
 0x1c0   :  { %5371 = vmatpush2.bf16.msra.mxu1 %v8231_v31  ;;  %5381 = vmatprep.subr.bf16.mxu0 %v8236_v33  ;;  %v8284_v31 = vld [vmem:[%s11251_s1 + $0xee4] ss:$20 sps:$4 sm:$0xff]  }
 0x1c1   :  { %5422 = vmatprep.subr.bf16.mxu1 %v8239_v52  ;;  %v8287_v33 = vld [vmem:[%s11251_s1 + $0x1164] ss:$20 sps:$4 sm:$0xff]   ;;  %v8282_v52 = vld [vmem:[%s11251_s1 + $0xee0] ss:$20 sps:$4 sm:$0xff]  }
 0x1c2   :  { %v5087_v46 = vpop.f32.mrf.mxu0  ;;  %5332 = vmatmul.mubr.bf16.vlgmr.msra.gmra.mxu0 %v9125_v30 }
 0x1c3   :  { %5373 = vmatmul.mubr.bf16.vlgmr.msra.gmra.mxu1 %v9338_v50  ;;  %v5128_v47 = vpop.f32.mrf.mxu1  ;;  %v5088_v48 = vadd.f32 %v5087_v46, %v10013_v14  ;;  %5382 = vmatpush1.bf16.msra.mxu0 %v8234_v36  ;;  %v8246_v14 = vld [vmem:[%s11251_s1 + $0xd50] ss:$20 sps:$4 sm:$0xff]   ;;  %v8285_v36 = vld [vmem:[%s11251_s1 + $0x1160] ss:$20 sps:$4 sm:$0xff]  }
 0x1c4   :  { %5423 = vmatpush1.bf16.msra.mxu1 %v8237_v37  ;;  %v5089_v51 = vpop.f32.mrf.mxu0  ;;  %5383 = vmatprep.subr.bf16.mxu0 %v8242_v38  ;;  %v8290_v37 = vld [vmem:[%s11251_s1 + $0xebc] ss:$20 sps:$4 sm:$0xff]   ;;  %v8299_v46 = vld [vmem:[%s11251_s1 + $0x1114] ss:$20 sps:$4 sm:$0xff]  }
 0x1c5   :  { %v5130_v53 = vpop.f32.mrf.mxu1  ;;  %5424 = vmatprep.subr.bf16.mxu1 %v8245_v32  ;;  %v5090_v57 = vadd.f32 %v5089_v51, %v10023_v11  ;;  %v10215_v58 = vadd.f32 %v5128_v47, %v5088_v48  ;;  %5413 = vmatprep.mubr.bf16.mxu0 %v9167_v43  ;;  %v8293_v38 = vld [vmem:[%s11251_s1 + $0x113c] ss:$20 sps:$4 sm:$0xff]   ;;  %v8288_v32 = vld [vmem:[%s11251_s1 + $0xeb8] ss:$20 sps:$4 sm:$0xff]  }
 0x1c6   :  { %5454 = vmatprep.mubr.bf16.mxu1 %v9350_v54  ;;  %v5091_v62 = vpop.f32.mrf.mxu0  ;;  %v8294_v47 = vld [vmem:[%s11251_s1 + $0xe90] ss:$20 sps:$4 sm:$0xff]   ;;  %v8302_v51 = vld [vmem:[%s11251_s1 + $0xe6c] ss:$20 sps:$4 sm:$0xff]  }
 0x1c7   :  { %v5132_v63 = vpop.f32.mrf.mxu1  ;;  %v10225_v1 = vadd.f32 %v5130_v53, %v5090_v57  ;;  %5384 = vmatpush1.bf16.msra.mxu0 %v8240_v40  ;;  %v8291_v40 = vld [vmem:[%s11251_s1 + $0x1138] ss:$20 sps:$4 sm:$0xff]   ;;  %v8297_v48 = vld [vmem:[%s11251_s1 + $0x1110] ss:$20 sps:$4 sm:$0xff]   ;;  %v8309_v62 = vld [vmem:[%s11251_s1 + $0x10c0] ss:$20 sps:$4 sm:$0xff]  }
 0x1c8   :  { %5425 = vmatpush1.bf16.msra.mxu1 %v8243_v44  ;;  %v5092_v11 = vpop.f32.mrf.mxu0  ;;  %5385 = vmatprep.subr.bf16.mxu0 %v8248_v35  ;;  %v8296_v44 = vld [vmem:[%s11251_s1 + $0xe94] ss:$20 sps:$4 sm:$0xff]   ;;  %v8305_v53 = vld [vmem:[%s11251_s1 + $0x10ec] ss:$20 sps:$4 sm:$0xff]   ;;  %v8308_v57 = vld [vmem:[%s11251_s1 + $0xe44] ss:$20 sps:$4 sm:$0xff]  }
 0x1c9   :  { %5426 = vmatprep.subr.bf16.mxu1 %v8251_v56  ;;  %v5133_v4 = vpop.f32.mrf.mxu1  ;;  %v8300_v35 = vld [vmem:[%s11251_s1 + $0xe68] ss:$20 sps:$4 sm:$0xff]  }
 0x1ca   :  { %v8303_v56 = vld [vmem:[%s11251_s1 + $0x10e8] ss:$20 sps:$4 sm:$0xff]  }
 0x1cb   :  { %5386 = vmatpush1.bf16.msra.mxu0 %v8246_v14  ;;  %v8311_v14 = vld [vmem:[%s11251_s1 + $0x10c4] ss:$20 sps:$4 sm:$0xff]   ;;  %v8314_v63 = vld [vmem:[%s11251_s1 + $0xe1c] ss:$20 sps:$4 sm:$0xff]   ;;  %v8320_v4 = vld [vmem:[%s11251_s1 + $0xdf4] ss:$20 sps:$4 sm:$0xff]  }
 0x1cc   :  { %5427 = vmatpush1.bf16.msra.mxu1 %v8249_v61  ;;  %5387 = vmatprep.subr.bf16.mxu0 %v8254_v2  ;;  %v8306_v61 = vld [vmem:[%s11251_s1 + $0xe40] ss:$20 sps:$4 sm:$0xff]   ;;  %v8317_v11 = vld [vmem:[%s11251_s1 + $0x109c] ss:$20 sps:$4 sm:$0xff]   ;;  %v8312_v2 = vld [vmem:[%s11251_s1 + $0xe18] ss:$20 sps:$4 sm:$0xff]  }
 0x1cd   :  { %5428 = vmatprep.subr.bf16.mxu1 %v8257_v3  ;;  %v8315_v3 = vld [vmem:[%s11251_s1 + $0x1098] ss:$20 sps:$4 sm:$0xff]  }
 0x1cf   :  { %5388 = vmatpush1.bf16.msra.mxu0 %v8252_v5  ;;  %v8323_v5 = vld [vmem:[%s11251_s1 + $0x1074] ss:$20 sps:$4 sm:$0xff]  }
 0x1d0   :  { %5429 = vmatpush1.bf16.msra.mxu1 %v8255_v7  ;;  %5389 = vmatprep.subr.bf16.mxu0 %v8260_v8  ;;  %v8318_v7 = vld [vmem:[%s11251_s1 + $0xdf0] ss:$20 sps:$4 sm:$0xff]  }
 0x1d1   :  { %5430 = vmatprep.subr.bf16.mxu1 %v8263_v9  ;;  %v8321_v8 = vld [vmem:[%s11251_s1 + $0x1070] ss:$20 sps:$4 sm:$0xff]   ;;  %v8326_v9 = vld [vmem:[%s11251_s1 + $0xdcc] ss:$20 sps:$4 sm:$0xff]  }
 0x1d3   :  { %5390 = vmatpush1.bf16.msra.mxu0 %v8258_v28  ;;  %v8329_v28 = vld [vmem:[%s11251_s1 + $0x104c] ss:$20 sps:$4 sm:$0xff]  }
 0x1d4   :  { %5431 = vmatpush1.bf16.msra.mxu1 %v8261_v39  ;;  %5391 = vmatprep.subr.bf16.mxu0 %v8266_v15  ;;  %v8324_v39 = vld [vmem:[%s11251_s1 + $0xdc8] ss:$20 sps:$4 sm:$0xff]  }
 0x1d5   :  { %5432 = vmatprep.subr.bf16.mxu1 %v8269_v49  ;;  %v8327_v15 = vld [vmem:[%s11251_s1 + $0x1048] ss:$20 sps:$4 sm:$0xff]   ;;  %v8332_v49 = vld [vmem:[%s11251_s1 + $0x12a4] ss:$20 sps:$4 sm:$0xff]  }
 0x1d7   :  { %5392 = vmatpush1.bf16.msra.mxu0 %v8264_v34  ;;  %v8335_v34 = vld [vmem:[%s11251_s1 + $0x1524] ss:$20 sps:$4 sm:$0xff]  }
 0x1d8   :  { %5433 = vmatpush1.bf16.msra.mxu1 %v8267_v16  ;;  %5393 = vmatprep.subr.bf16.mxu0 %v8272_v18  ;;  %v8330_v16 = vld [vmem:[%s11251_s1 + $0x12a0] ss:$20 sps:$4 sm:$0xff]  }
 0x1d9   :  { %5434 = vmatprep.subr.bf16.mxu1 %v8275_v20  ;;  %v8333_v18 = vld [vmem:[%s11251_s1 + $0x1520] ss:$20 sps:$4 sm:$0xff]   ;;  %v8338_v20 = vld [vmem:[%s11251_s1 + $0x127c] ss:$20 sps:$4 sm:$0xff]  }
 0x1db   :  { %5394 = vmatpush1.bf16.msra.mxu0 %v8270_v22  ;;  %v8341_v22 = vld [vmem:[%s11251_s1 + $0x14fc] ss:$20 sps:$4 sm:$0xff]  }
 0x1dc   :  { %5435 = vmatpush1.bf16.msra.mxu1 %v8273_v24  ;;  %5395 = vmatprep.subr.bf16.mxu0 %v8278_v25  ;;  %v8336_v24 = vld [vmem:[%s11251_s1 + $0x1278] ss:$20 sps:$4 sm:$0xff]  }
 0x1dd   :  { %5436 = vmatprep.subr.bf16.mxu1 %v8281_v27  ;;  %v8339_v25 = vld [vmem:[%s11251_s1 + $0x14f8] ss:$20 sps:$4 sm:$0xff]  }
 0x1df   :  { %5396 = vmatpush1.bf16.msra.mxu0 %v8276_v45 }
 0x1e0   :  { %5437 = vmatpush1.bf16.msra.mxu1 %v8279_v29  ;;  %5397 = vmatprep.subr.bf16.mxu0 %v8284_v31 }
 0x1e1   :  { %5438 = vmatprep.subr.bf16.mxu1 %v8287_v33  ;;  %v8344_v33 = vld [vmem:[%s11251_s1 + $0x1254] ss:$20 sps:$4 sm:$0xff]  }
 0x1e3   :  { %5398 = vmatpush2.bf16.msra.mxu0 %v8282_v52  ;;  %v8347_v52 = vld [vmem:[%s11251_s1 + $0x14d4] ss:$20 sps:$4 sm:$0xff]  }
 0x1e4   :  { %5439 = vmatpush2.bf16.msra.mxu1 %v8285_v36  ;;  %5399 = vmatprep.subr.bf16.mxu0 %v8290_v37 }
 0x1e5   :  { %5440 = vmatprep.subr.bf16.mxu1 %v8293_v38  ;;  %v8345_v38 = vld [vmem:[%s11251_s1 + $0x14d0] ss:$20 sps:$4 sm:$0xff]  }
 0x1e7   :  { %5400 = vmatpush2.bf16.msra.mxu0 %v8288_v32 }
 0x1e8   :  { %5441 = vmatpush2.bf16.msra.mxu1 %v8291_v40  ;;  %5401 = vmatprep.subr.bf16.mxu0 %v8296_v44 }
 0x1e9   :  { %5442 = vmatprep.subr.bf16.mxu1 %v8299_v46  ;;  %v8353_v46 = vld [vmem:[%s11251_s1 + $0x14ac] ss:$20 sps:$4 sm:$0xff]  }
 0x1eb   :  { %5402 = vmatpush2.bf16.msra.mxu0 %v8294_v47 }
 0x1ec   :  { %5443 = vmatpush2.bf16.msra.mxu1 %v8297_v48  ;;  %5403 = vmatprep.subr.bf16.mxu0 %v8302_v51  ;;  %v8348_v48 = vld [vmem:[%s11251_s1 + $0x1228] ss:$20 sps:$4 sm:$0xff]  }
 0x1ed   :  { %5444 = vmatprep.subr.bf16.mxu1 %v8305_v53  ;;  %v8351_v51 = vld [vmem:[%s11251_s1 + $0x14a8] ss:$20 sps:$4 sm:$0xff]   ;;  %v8356_v53 = vld [vmem:[%s11251_s1 + $0x1204] ss:$20 sps:$4 sm:$0xff]  }
 0x1ef   :  { %5404 = vmatpush2.bf16.msra.mxu0 %v8300_v35  ;;  %v8359_v35 = vld [vmem:[%s11251_s1 + $0x1484] ss:$20 sps:$4 sm:$0xff]  }
 0x1f0   :  { %5445 = vmatpush2.bf16.msra.mxu1 %v8303_v56  ;;  %5405 = vmatprep.subr.bf16.mxu0 %v8308_v57  ;;  %v8354_v56 = vld [vmem:[%s11251_s1 + $0x1200] ss:$20 sps:$4 sm:$0xff]  }
 0x1f1   :  { %5446 = vmatprep.subr.bf16.mxu1 %v8311_v14  ;;  %v8357_v57 = vld [vmem:[%s11251_s1 + $0x1480] ss:$20 sps:$4 sm:$0xff]   ;;  %v8362_v14 = vld [vmem:[%s11251_s1 + $0x11dc] ss:$20 sps:$4 sm:$0xff]  }
 0x1f3   :  { %5406 = vmatpush2.bf16.msra.mxu0 %v8306_v61  ;;  %v8365_v61 = vld [vmem:[%s11251_s1 + $0x145c] ss:$20 sps:$4 sm:$0xff]  }
 0x1f4   :  { %5447 = vmatpush2.bf16.msra.mxu1 %v8309_v62  ;;  %5407 = vmatprep.subr.bf16.mxu0 %v8314_v63  ;;  %v8360_v62 = vld [vmem:[%s11251_s1 + $0x11d8] ss:$20 sps:$4 sm:$0xff]  }
 0x1f5   :  { %5448 = vmatprep.subr.bf16.mxu1 %v8317_v11  ;;  %v8363_v63 = vld [vmem:[%s11251_s1 + $0x1458] ss:$20 sps:$4 sm:$0xff]   ;;  %v8368_v11 = vld [vmem:[%s11251_s1 + $0x11b4] ss:$20 sps:$4 sm:$0xff]  }
 0x1f7   :  { %5408 = vmatpush2.bf16.msra.mxu0 %v8312_v2  ;;  %v8371_v2 = vld [vmem:[%s11251_s1 + $0x1434] ss:$20 sps:$4 sm:$0xff]  }
 0x1f8   :  { %5449 = vmatpush2.bf16.msra.mxu1 %v8315_v3  ;;  %5409 = vmatprep.subr.bf16.mxu0 %v8320_v4  ;;  %v8366_v3 = vld [vmem:[%s11251_s1 + $0x11b0] ss:$20 sps:$4 sm:$0xff]  }
 0x1f9   :  { %5450 = vmatprep.subr.bf16.mxu1 %v8323_v5  ;;  %v8369_v4 = vld [vmem:[%s11251_s1 + $0x1430] ss:$20 sps:$4 sm:$0xff]   ;;  %v8374_v5 = vld [vmem:[%s11251_s1 + $0x118c] ss:$20 sps:$4 sm:$0xff]  }
 0x1fb   :  { %5410 = vmatpush2.bf16.msra.mxu0 %v8318_v7  ;;  %v8377_v7 = vld [vmem:[%s11251_s1 + $0x140c] ss:$20 sps:$4 sm:$0xff]  }
 0x1fc   :  { %5451 = vmatpush2.bf16.msra.mxu1 %v8321_v8  ;;  %5411 = vmatprep.subr.bf16.mxu0 %v8326_v9  ;;  %v8372_v8 = vld [vmem:[%s11251_s1 + $0x1188] ss:$20 sps:$4 sm:$0xff]  }
 0x1fd   :  { %5452 = vmatprep.subr.bf16.mxu1 %v8329_v28  ;;  %v8375_v9 = vld [vmem:[%s11251_s1 + $0x1408] ss:$20 sps:$4 sm:$0xff]   ;;  %v8380_v28 = vld [vmem:[%s11251_s1 + $0x13e4] ss:$20 sps:$4 sm:$0xff]  }
 0x1ff   :  { %5412 = vmatpush2.bf16.msra.mxu0 %v8324_v39  ;;  %v8383_v39 = vld [vmem:[%s11251_s1 + $0x1664] ss:$20 sps:$4 sm:$0xff]  }
 0x200   :  { %5453 = vmatpush2.bf16.msra.mxu1 %v8327_v15  ;;  %5463 = vmatprep.subr.bf16.mxu0 %v8332_v49  ;;  %v8378_v15 = vld [vmem:[%s11251_s1 + $0x13e0] ss:$20 sps:$4 sm:$0xff]  }
 0x201   :  { %5504 = vmatprep.subr.bf16.mxu1 %v8335_v34  ;;  %v8381_v49 = vld [vmem:[%s11251_s1 + $0x1660] ss:$20 sps:$4 sm:$0xff]   ;;  %v8386_v34 = vld [vmem:[%s11251_s1 + $0x13bc] ss:$20 sps:$4 sm:$0xff]  }
 0x202   :  { %v5169_v27 = vpop.f32.mrf.mxu0  ;;  %5414 = vmatmul.mubr.bf16.vlgmr.msra.gmra.mxu0 %v9357_v55 }
 0x203   :  { %5455 = vmatmul.mubr.bf16.vlgmr.msra.gmra.mxu1 %v9552_v10  ;;  %v10409_v45 = vpop.f32.mrf.mxu1  ;;  %v10412_v29 = vadd.f32 %v5169_v27, %v10215_v58  ;;  %5464 = vmatpush1.bf16.msra.mxu0 %v8330_v16  ;;  %v8342_v58 = vld [vmem:[%s11251_s1 + $0x1250] ss:$20 sps:$4 sm:$0xff]  }
 0x204   :  { %5505 = vmatpush1.bf16.msra.mxu1 %v8333_v18  ;;  %v5171_v31 = vpop.f32.mrf.mxu0  ;;  %5465 = vmatprep.subr.bf16.mxu0 %v8338_v20  ;;  %v8389_v16 = vld [vmem:[%s11251_s1 + $0x163c] ss:$20 sps:$4 sm:$0xff]  }
 0x205   :  { %5506 = vmatprep.subr.bf16.mxu1 %v8341_v22  ;;  %v10420_v36 = vpop.f32.mrf.mxu1  ;;  %v10423_v37 = vadd.f32 %v5171_v31, %v10225_v1  ;;  %5495 = vmatprep.mubr.bf16.mxu0 %v9370_v59  ;;  %v8350_v1 = vld [vmem:[%s11251_s1 + $0x122c] ss:$20 sps:$4 sm:$0xff]  }
 0x206   :  { %5536 = vmatprep.mubr.bf16.mxu1 %v9592_v6  ;;  %v5173_v32 = vpop.f32.mrf.mxu0 }
 0x207   :  { %v5214_v40 = vpop.f32.mrf.mxu1  ;;  %5466 = vmatpush1.bf16.msra.mxu0 %v8336_v24 }
 0x208   :  { %5507 = vmatpush1.bf16.msra.mxu1 %v8339_v25  ;;  %v5174_v44 = vpop.f32.mrf.mxu0  ;;  %5467 = vmatprep.subr.bf16.mxu0 %v8344_v33 }
 0x209   :  { %5508 = vmatprep.subr.bf16.mxu1 %v8347_v52  ;;  %v5215_v47 = vpop.f32.mrf.mxu1 }
 0x20b   :  { %5468 = vmatpush1.bf16.msra.mxu0 %v8342_v58 }
 0x20c   :  { %5509 = vmatpush1.bf16.msra.mxu1 %v8345_v38  ;;  %5469 = vmatprep.subr.bf16.mxu0 %v8350_v1 }
 0x20d   :  { %5510 = vmatprep.subr.bf16.mxu1 %v8353_v46 }
 0x20f   :  { %5470 = vmatpush1.bf16.msra.mxu0 %v8348_v48 }
 0x210   :  { %5511 = vmatpush1.bf16.msra.mxu1 %v8351_v51  ;;  %5471 = vmatprep.subr.bf16.mxu0 %v8356_v53 }
 0x211   :  { %5512 = vmatprep.subr.bf16.mxu1 %v8359_v35 }
 0x213   :  { %5472 = vmatpush1.bf16.msra.mxu0 %v8354_v56 }
 0x214   :  { %5513 = vmatpush1.bf16.msra.mxu1 %v8357_v57  ;;  %5473 = vmatprep.subr.bf16.mxu0 %v8362_v14 }
 0x215   :  { %5514 = vmatprep.subr.bf16.mxu1 %v8365_v61 }
 0x217   :  { %5474 = vmatpush1.bf16.msra.mxu0 %v8360_v62 }
 0x218   :  { %5515 = vmatpush1.bf16.msra.mxu1 %v8363_v63  ;;  %5475 = vmatprep.subr.bf16.mxu0 %v8368_v11 }
 0x219   :  { %5516 = vmatprep.subr.bf16.mxu1 %v8371_v2 }
 0x21b   :  { %5476 = vmatpush1.bf16.msra.mxu0 %v8366_v3 }
 0x21c   :  { %5517 = vmatpush1.bf16.msra.mxu1 %v8369_v4  ;;  %5477 = vmatprep.subr.bf16.mxu0 %v8374_v5 }
 0x21d   :  { %5518 = vmatprep.subr.bf16.mxu1 %v8377_v7 }
 0x21f   :  { %5478 = vmatpush1.bf16.msra.mxu0 %v8372_v8 }
 0x220   :  { %5519 = vmatpush1.bf16.msra.mxu1 %v8375_v9  ;;  %5479 = vmatprep.subr.bf16.mxu0 %v8380_v28 }
 0x221   :  { %5520 = vmatprep.subr.bf16.mxu1 %v8383_v39 }
 0x222   :  { %12 = vsyncpa [#allocation3], 0  ;;  %v8384_v18 = vld [vmem:[%s11251_s1 + $0x13b8] ss:$20 sps:$4 sm:$0xff]   ;;  %v8392_v22 = vld [vmem:[%s11251_s1 + $0x1394] ss:$20 sps:$4 sm:$0xff]  }
 0x223   :  { %5480 = vmatpush2.bf16.msra.mxu0 %v8378_v15  ;;  %v8387_v20 = vld [vmem:[%s11251_s1 + $0x1638] ss:$20 sps:$4 sm:$0xff]   ;;  %v8395_v24 = vld [vmem:[%s11251_s1 + $0x1614] ss:$20 sps:$4 sm:$0xff]   ;;  %v8390_v25 = vld [vmem:[%s11251_s1 + $0x1390] ss:$20 sps:$4 sm:$0xff]  }
 0x224   :  { %5521 = vmatpush2.bf16.msra.mxu1 %v8381_v49  ;;  %5481 = vmatprep.subr.bf16.mxu0 %v8386_v34  ;;  %v8393_v27 = vld [vmem:[%s11251_s1 + $0x1610] ss:$20 sps:$4 sm:$0xff]   ;;  %v8398_v31 = vld [vmem:[%s11251_s1 + $0x136c] ss:$20 sps:$4 sm:$0xff]   ;;  %v8396_v52 = vld [vmem:[%s11251_s1 + $0x1368] ss:$20 sps:$4 sm:$0xff]  }
 0x225   :  { %5522 = vmatprep.subr.bf16.mxu1 %v8389_v16  ;;  %v8401_v33 = vld [vmem:[%s11251_s1 + $0x15ec] ss:$20 sps:$4 sm:$0xff]   ;;  %v8399_v58 = vld [vmem:[%s11251_s1 + $0x15e8] ss:$20 sps:$4 sm:$0xff]   ;;  %v8404_v38 = vld [vmem:[%s11251_s1 + $0x1344] ss:$20 sps:$4 sm:$0xff]  }
 0x226   :  { %v8407_v32 = vld [vmem:[%s11251_s1 + $0x15c4] ss:$20 sps:$4 sm:$0xff]   ;;  %v8402_v40 = vld [vmem:[%s11251_s1 + $0x1340] ss:$20 sps:$4 sm:$0xff]   ;;  %v8410_v1 = vld [vmem:[%s11251_s1 + $0x131c] ss:$20 sps:$4 sm:$0xff]  }
 0x227   :  { %5482 = vmatpush2.bf16.msra.mxu0 %v8384_v18  ;;  %v8405_v44 = vld [vmem:[%s11251_s1 + $0x15c0] ss:$20 sps:$4 sm:$0xff]   ;;  %v8413_v46 = vld [vmem:[%s11251_s1 + $0x159c] ss:$20 sps:$4 sm:$0xff]   ;;  %v8408_v47 = vld [vmem:[%s11251_s1 + $0x1318] ss:$20 sps:$4 sm:$0xff]  }
 0x228   :  { %5523 = vmatpush2.bf16.msra.mxu1 %v8387_v20  ;;  %5483 = vmatprep.subr.bf16.mxu0 %v8392_v22  ;;  %v8411_v48 = vld [vmem:[%s11251_s1 + $0x1598] ss:$20 sps:$4 sm:$0xff]   ;;  %v8416_v51 = vld [vmem:[%s11251_s1 + $0x12f4] ss:$20 sps:$4 sm:$0xff]   ;;  %v8414_v35 = vld [vmem:[%s11251_s1 + $0x12f0] ss:$20 sps:$4 sm:$0xff]  }
 0x229   :  { %5524 = vmatprep.subr.bf16.mxu1 %v8395_v24  ;;  %v8419_v53 = vld [vmem:[%s11251_s1 + $0x1574] ss:$20 sps:$4 sm:$0xff]   ;;  %v8417_v56 = vld [vmem:[%s11251_s1 + $0x1570] ss:$20 sps:$4 sm:$0xff]   ;;  %v8422_v57 = vld [vmem:[%s11251_s1 + $0x12cc] ss:$20 sps:$4 sm:$0xff]  }
 0x22a   :  { %v8425_v14 = vld [vmem:[%s11251_s1 + $0x154c] ss:$20 sps:$4 sm:$0xff]   ;;  %v907_v61 = vsub.s32 2, %v8802_v42  ;;  %v911_v62 = vsub.s32 3, %v8802_v42  ;;  %v8420_v63 = vld [vmem:[%s11251_s1 + $0x12c8] ss:$20 sps:$4 sm:$0xff]  }
 0x22b   :  { %5484 = vmatpush2.bf16.msra.mxu0 %v8390_v25  ;;  %v8423_v11 = vld [vmem:[%s11251_s1 + $0x1548] ss:$20 sps:$4 sm:$0xff]   ;;  %v10600_v4 = vld [vmem:[%s11252_s2] sm:$0x1f]  ;;  %v8434_v25 = vld [vmem:[%s11251_s1 + $0x218] ss:$20 sps:$4 sm:$0xff]  }
 0x22c   :  { %5525 = vmatpush2.bf16.msra.mxu1 %v8393_v27  ;;  %5485 = vmatprep.subr.bf16.mxu0 %v8398_v31  ;;  %v8426_v2 = vld [vmem:[%s11251_s1 + $0x268] ss:$20 sps:$4 sm:$0xff]   ;;  %v908_v5 = vrot.slane %v10600_v4, %v907_v61  ;;  %v912_v7 = vrot.slane %v10600_v4, %v911_v62  ;;  %v8430_v28 = vld [vmem:[%s11251_s1 + $0x240] ss:$20 sps:$4 sm:$0xff]   ;;  %v8450_v61 = vld [vmem:[%s11251_s1 + $0x178] ss:$20 sps:$4 sm:$0xff]  }
 0x22d   :  { %5526 = vmatprep.subr.bf16.mxu1 %v8401_v33  ;;  %v8427_v3 = vld [vmem:[%s11251_s1 + $0x4e8] ss:$20 sps:$4 sm:$0xff]   ;;  %v8431_v39 = vld [vmem:[%s11251_s1 + $0x4c0] ss:$20 sps:$4 sm:$0xff]   ;;  %v8451_v62 = vld [vmem:[%s11251_s1 + $0x3f8] ss:$20 sps:$4 sm:$0xff]  }
 0x22e   :  { %v8428_v8 = vld [vmem:[%s11251_s1 + $0x128] ss:$20 sps:$4 sm:$0xff]   ;;  %v5211_v15 = vadd.f32 %v10409_v45, %v908_v5  ;;  %v5213_v16 = vadd.f32 %v10420_v36, %v912_v7  ;;  %v8432_v20 = vld [vmem:[%s11251_s1 + $0x100] ss:$20 sps:$4 sm:$0xff]   ;;  %v8435_v36 = vld [vmem:[%s11251_s1 + $0x498] ss:$20 sps:$4 sm:$0xff]  }
 0x22f   :  { %5486 = vmatpush2.bf16.msra.mxu0 %v8396_v52  ;;  %v8429_v9 = vld [vmem:[%s11251_s1 + $0x3a8] ss:$20 sps:$4 sm:$0xff]   ;;  %v8433_v22 = vld [vmem:[%s11251_s1 + $0x380] ss:$20 sps:$4 sm:$0xff]   ;;  %v8456_v5 = vld [vmem:[%s11251_s1 + $0x10] ss:$20 sps:$4 sm:$0xff]  }
 0x230   :  { %5527 = vmatpush2.bf16.msra.mxu1 %v8399_v58  ;;  %5487 = vmatprep.subr.bf16.mxu0 %v8404_v38  ;;  %v8436_v38 = vld [vmem:[%s11251_s1 + $0xd8] ss:$20 sps:$4 sm:$0xff]   ;;  %v8457_v7 = vld [vmem:[%s11251_s1 + $0x290] ss:$20 sps:$4 sm:$0xff]   ;;  %vm8643_vm0 = vmmov 0   ;;  %s8644_s17 = smov [#allocation2]  }
 0x231   :  { %5528 = vmatprep.subr.bf16.mxu1 %v8407_v32  ;;  %v8437_v32 = vld [vmem:[%s11251_s1 + $0x358] ss:$20 sps:$4 sm:$0xff]   ;;  %s6477_s18 = sshll.u32 %s8644_s17, 4  ;;  %vm6469_vm1 = vcmask 74752   ;;  %s6478_s18 = int_to_ptr.vmem [resolvable:$true] %s6477_s18 }
 0x232   :  { %p8624_p1 = scmp.lt.s32.totalorder %s6478_s18, %s6478_s18 }
 0x233   :  { %5488 = vmatpush2.bf16.msra.mxu0 %v8402_v40 }
 0x234   :  { %5529 = vmatpush2.bf16.msra.mxu1 %v8405_v44  ;;  %5489 = vmatprep.subr.bf16.mxu0 %v8410_v1  ;;  %v8440_v1 = vld [vmem:[%s11251_s1 + $0xb0] ss:$20 sps:$4 sm:$0xff]  }
 0x235   :  { %5530 = vmatprep.subr.bf16.mxu1 %v8413_v46  ;;  %v8441_v46 = vld [vmem:[%s11251_s1 + $0x330] ss:$20 sps:$4 sm:$0xff]  }
 0x237   :  { %5490 = vmatpush2.bf16.msra.mxu0 %v8408_v47  ;;  %v8442_v47 = vld [vmem:[%s11251_s1 + $0x1c8] ss:$20 sps:$4 sm:$0xff]  }
 0x238   :  { %5531 = vmatpush2.bf16.msra.mxu1 %v8411_v48  ;;  %5491 = vmatprep.subr.bf16.mxu0 %v8416_v51  ;;  %v8443_v48 = vld [vmem:[%s11251_s1 + $0x448] ss:$20 sps:$4 sm:$0xff]  }
 0x239   :  { %5532 = vmatprep.subr.bf16.mxu1 %v8419_v53  ;;  %v8444_v51 = vld [vmem:[%s11251_s1 + $0x88] ss:$20 sps:$4 sm:$0xff]  }
 0x23a   :  { %v8445_v53 = vld [vmem:[%s11251_s1 + $0x308] ss:$20 sps:$4 sm:$0xff]  }
 0x23b   :  { %5492 = vmatpush2.bf16.msra.mxu0 %v8414_v35  ;;  %v8446_v35 = vld [vmem:[%s11251_s1 + $0x1a0] ss:$20 sps:$4 sm:$0xff]  }
 0x23c   :  { %5533 = vmatpush2.bf16.msra.mxu1 %v8417_v56  ;;  %5493 = vmatprep.subr.bf16.mxu0 %v8422_v57  ;;  %v8447_v56 = vld [vmem:[%s11251_s1 + $0x420] ss:$20 sps:$4 sm:$0xff]  }
 0x23d   :  { %5534 = vmatprep.subr.bf16.mxu1 %v8425_v14  ;;  %v8448_v57 = vld [vmem:[%s11251_s1 + $0x60] ss:$20 sps:$4 sm:$0xff]  }
 0x23e   :  { %v8449_v14 = vld [vmem:[%s11251_s1 + $0x2e0] ss:$20 sps:$4 sm:$0xff]  }
 0x23f   :  { %5494 = vmatpush2.bf16.msra.mxu0 %v8420_v63  ;;  %v8452_v63 = vld [vmem:[%s11251_s1 + $0x38] ss:$20 sps:$4 sm:$0xff]  }
 0x240   :  { %5535 = vmatpush2.bf16.msra.mxu1 %v8423_v11  ;;  %7256 = vmatprep.subr.bf16.mxu0 %v8426_v2  ;;  %v8453_v11 = vld [vmem:[%s11251_s1 + $0x2b8] ss:$20 sps:$4 sm:$0xff]   ;;  %v8454_v2 = vld [vmem:[%s11251_s1 + $0x150] ss:$20 sps:$4 sm:$0xff]  }
 0x241   :  { %7278 = vmatprep.subr.bf16.mxu1 %v8427_v3  ;;  %v8455_v3 = vld [vmem:[%s11251_s1 + $0x3d0] ss:$20 sps:$4 sm:$0xff]  }
 0x242   :  { %v5251_v49 = vpop.f32.mrf.mxu0  ;;  %5496 = vmatmul.mubr.bf16.vlgmr.msra.gmra.mxu0 %v9577_v21 }
 0x243   :  { %5537 = vmatmul.mubr.bf16.vlgmr.msra.gmra.mxu1 %v9787_v12  ;;  %v5292_v34 = vpop.f32.mrf.mxu1  ;;  %v5252_v18 = vadd.f32 %v5251_v49, %v5211_v15  ;;  %7257 = vmatpush3.bf16.msra.mxu0 %v8428_v8  ;;  %v8458_v8 = vld [vmem:[%s11251_s1 + $0x768] ss:$20 sps:$4 sm:$0xff]   ;;  %v8462_v15 = vld [vmem:[%s11251_s1 + $0x740] ss:$20 sps:$4 sm:$0xff]  }
 0x244   :  { %7279 = vmatpush3.bf16.msra.mxu1 %v8429_v9  ;;  %v5253_v45 = vpop.f32.mrf.mxu0  ;;  %7258 = vmatprep.subr.bf16.mxu0 %v8430_v28  ;;  %v8459_v9 = vld [vmem:[%s11251_s1 + $0x9e8] ss:$20 sps:$4 sm:$0xff]   ;;  %v8463_v49 = vld [vmem:[%s11251_s1 + $0x9c0] ss:$20 sps:$4 sm:$0xff]  }
 0x245   :  { %v5294_v24 = vpop.f32.mrf.mxu1  ;;  %7280 = vmatprep.subr.bf16.mxu1 %v8431_v39  ;;  %v5254_v27 = vadd.f32 %v5253_v45, %v5213_v16  ;;  %v10632_v31 = vadd.f32 %v5292_v34, %v5252_v18  ;;  %5577 = vmatprep.mubr.bf16.mxu0 %v8848_v60  ;;  %v8438_v60 = vld [vmem:[%s11251_s1 + $0x1f0] ss:$20 sps:$4 sm:$0xff]   ;;  %v8460_v28 = vld [vmem:[%s11251_s1 + $0x628] ss:$20 sps:$4 sm:$0xff]   ;;  %v8464_v34 = vld [vmem:[%s11251_s1 + $0x600] ss:$20 sps:$4 sm:$0xff]  }
 0x246   :  { %5617 = vmatprep.mubr.bf16.mxu1 %v8861_v0  ;;  %v5255_v33 = vpop.f32.mrf.mxu0  ;;  %v8439_v0 = vld [vmem:[%s11251_s1 + $0x470] ss:$20 sps:$4 sm:$0xff]   ;;  %v8461_v39 = vld [vmem:[%s11251_s1 + $0x8a8] ss:$20 sps:$4 sm:$0xff]   ;;  %v8465_v16 = vld [vmem:[%s11251_s1 + $0x880] ss:$20 sps:$4 sm:$0xff]  }
 0x247   :  { %v5296_v52 = vpop.f32.mrf.mxu1  ;;  %v10636_v58 = vadd.f32 %v5294_v24, %v5254_v27  ;;  %7259 = vmatpush3.bf16.msra.mxu0 %v8432_v20  ;;  %v8466_v18 = vld [vmem:[%s11251_s1 + $0x718] ss:$20 sps:$4 sm:$0xff]   ;;  %v8473_v45 = vld [vmem:[%s11251_s1 + $0x830] ss:$20 sps:$4 sm:$0xff]   ;;  %v8474_v24 = vld [vmem:[%s11251_s1 + $0x6c8] ss:$20 sps:$4 sm:$0xff]  }
 0x248   :  { %7281 = vmatpush3.bf16.msra.mxu1 %v8433_v22  ;;  %v5256_v40 = vpop.f32.mrf.mxu0  ;;  %7260 = vmatprep.subr.bf16.mxu0 %v8434_v25  ;;  %v8469_v20 = vld [vmem:[%s11251_s1 + $0x858] ss:$20 sps:$4 sm:$0xff]   ;;  %v8470_v22 = vld [vmem:[%s11251_s1 + $0x6f0] ss:$20 sps:$4 sm:$0xff]   ;;  %v8475_v25 = vld [vmem:[%s11251_s1 + $0x948] ss:$20 sps:$4 sm:$0xff]  }
 0x249   :  { %7282 = vmatprep.subr.bf16.mxu1 %v8435_v36  ;;  %v5297_v44 = vpop.f32.mrf.mxu1  ;;  %v8476_v36 = vld [vmem:[%s11251_s1 + $0x588] ss:$20 sps:$4 sm:$0xff]   ;;  %v8478_v33 = vld [vmem:[%s11251_s1 + $0x6a0] ss:$20 sps:$4 sm:$0xff]   ;;  %v8482_v40 = vld [vmem:[%s11251_s1 + $0x678] ss:$20 sps:$4 sm:$0xff]  }
 0x24a   :  { %v8477_v27 = vld [vmem:[%s11251_s1 + $0x808] ss:$20 sps:$4 sm:$0xff]   ;;  %v8479_v52 = vld [vmem:[%s11251_s1 + $0x920] ss:$20 sps:$4 sm:$0xff]   ;;  %v8485_v44 = vld [vmem:[%s11251_s1 + $0x7b8] ss:$20 sps:$4 sm:$0xff]  }
 0x24b   :  { %7261 = vmatpush3.bf16.msra.mxu0 %v8436_v38  ;;  %v8480_v38 = vld [vmem:[%s11251_s1 + $0x560] ss:$20 sps:$4 sm:$0xff]  }
 0x24c   :  { %7283 = vmatpush3.bf16.msra.mxu1 %v8437_v32  ;;  %7262 = vmatprep.subr.bf16.mxu0 %v8438_v60  ;;  %v8481_v32 = vld [vmem:[%s11251_s1 + $0x7e0] ss:$20 sps:$4 sm:$0xff]   ;;  %v8483_v60 = vld [vmem:[%s11251_s1 + $0x8f8] ss:$20 sps:$4 sm:$0xff]  }
 0x24d   :  { %7284 = vmatprep.subr.bf16.mxu1 %v8439_v0  ;;  %v8484_v0 = vld [vmem:[%s11251_s1 + $0x538] ss:$20 sps:$4 sm:$0xff]  }
 0x24f   :  { %7263 = vmatpush3.bf16.msra.mxu0 %v8440_v1  ;;  %v8486_v1 = vld [vmem:[%s11251_s1 + $0x650] ss:$20 sps:$4 sm:$0xff]  }
 0x250   :  { %7285 = vmatpush3.bf16.msra.mxu1 %v8441_v46  ;;  %7264 = vmatprep.subr.bf16.mxu0 %v8442_v47  ;;  %v8487_v46 = vld [vmem:[%s11251_s1 + $0x8d0] ss:$20 sps:$4 sm:$0xff]  }
 0x251   :  { %7286 = vmatprep.subr.bf16.mxu1 %v8443_v48  ;;  %v8488_v47 = vld [vmem:[%s11251_s1 + $0x510] ss:$20 sps:$4 sm:$0xff]  }
 0x252   :  { %v8489_v48 = vld [vmem:[%s11251_s1 + $0x790] ss:$20 sps:$4 sm:$0xff]  }
 0x253   :  { %7265 = vmatpush3.bf16.msra.mxu0 %v8444_v51  ;;  %v8490_v51 = vld [vmem:[%s11251_s1 + $0xc68] ss:$20 sps:$4 sm:$0xff]  }
 0x254   :  { %7287 = vmatpush3.bf16.msra.mxu1 %v8445_v53  ;;  %7266 = vmatprep.subr.bf16.mxu0 %v8446_v35  ;;  %v8491_v53 = vld [vmem:[%s11251_s1 + $0xee8] ss:$20 sps:$4 sm:$0xff]  }
 0x255   :  { %7288 = vmatprep.subr.bf16.mxu1 %v8447_v56  ;;  %v8492_v35 = vld [vmem:[%s11251_s1 + $0xb28] ss:$20 sps:$4 sm:$0xff]  }
 0x256   :  { %v8493_v56 = vld [vmem:[%s11251_s1 + $0xda8] ss:$20 sps:$4 sm:$0xff]  }
 0x257   :  { %7267 = vmatpush3.bf16.msra.mxu0 %v8448_v57  ;;  %v8494_v57 = vld [vmem:[%s11251_s1 + $0xc40] ss:$20 sps:$4 sm:$0xff]  }
 0x258   :  { %7289 = vmatpush3.bf16.msra.mxu1 %v8449_v14  ;;  %7268 = vmatprep.subr.bf16.mxu0 %v8450_v61  ;;  %v8495_v14 = vld [vmem:[%s11251_s1 + $0xec0] ss:$20 sps:$4 sm:$0xff]  }
 0x259   :  { %7290 = vmatprep.subr.bf16.mxu1 %v8451_v62 }
 0x25b   :  { %7269 = vmatpush3.bf16.msra.mxu0 %v8452_v63 }
 0x25c   :  { %7291 = vmatpush3.bf16.msra.mxu1 %v8453_v11  ;;  %7270 = vmatprep.subr.bf16.mxu0 %v8454_v2  ;;  %v8496_v11 = vld [vmem:[%s11251_s1 + $0xb00] ss:$20 sps:$4 sm:$0xff]  }
 0x25d   :  { %7292 = vmatprep.subr.bf16.mxu1 %v8455_v3  ;;  %v8497_v2 = vld [vmem:[%s11251_s1 + $0xd80] ss:$20 sps:$4 sm:$0xff]  }
 0x25f   :  { %7271 = vmatpush3.bf16.msra.mxu0 %v8456_v5 }
 0x260   :  { %7293 = vmatpush3.bf16.msra.mxu1 %v8457_v7  ;;  %7300 = vmatprep.subr.bf16.mxu0 %v8458_v8 }
 0x261   :  { %7322 = vmatprep.subr.bf16.mxu1 %v8459_v9 }
 0x262   :  { %5578 = vmatmul.mubr.bf16.vlgmr.msra.gmra.mxu0 %v8898_v13  ;;  %v8467_v13 = vld [vmem:[%s11251_s1 + $0x998] ss:$20 sps:$4 sm:$0xff]  }
 0x263   :  { %5618 = vmatmul.mubr.bf16.vlgmr.msra.gmra.mxu1 %v8917_v19  ;;  %7301 = vmatpush3.bf16.msra.mxu0 %v8460_v28  ;;  %v8468_v19 = vld [vmem:[%s11251_s1 + $0x5d8] ss:$20 sps:$4 sm:$0xff]  }
 0x264   :  { %7323 = vmatpush3.bf16.msra.mxu1 %v8461_v39  ;;  %7302 = vmatprep.subr.bf16.mxu0 %v8462_v15  ;;  %v8500_v39 = vld [vmem:[%s11251_s1 + $0xad8] ss:$20 sps:$4 sm:$0xff]  }
 0x265   :  { %7324 = vmatprep.subr.bf16.mxu1 %v8463_v49  ;;  %5657 = vmatprep.mubr.bf16.mxu0 %v8910_v17  ;;  %v8471_v17 = vld [vmem:[%s11251_s1 + $0x970] ss:$20 sps:$4 sm:$0xff]  }
 0x266   :  { %5697 = vmatprep.mubr.bf16.mxu1 %v8930_v23  ;;  %v8472_v23 = vld [vmem:[%s11251_s1 + $0x5b0] ss:$20 sps:$4 sm:$0xff]  }
 0x267   :  { %7303 = vmatpush3.bf16.msra.mxu0 %v8464_v34  ;;  %v8504_v34 = vld [vmem:[%s11251_s1 + $0xab0] ss:$20 sps:$4 sm:$0xff]  }
 0x268   :  { %7325 = vmatpush3.bf16.msra.mxu1 %v8465_v16  ;;  %7304 = vmatprep.subr.bf16.mxu0 %v8466_v18  ;;  %v8505_v16 = vld [vmem:[%s11251_s1 + $0xd30] ss:$20 sps:$4 sm:$0xff]   ;;  %v8506_v18 = vld [vmem:[%s11251_s1 + $0xbc8] ss:$20 sps:$4 sm:$0xff]  }
 0x269   :  { %7326 = vmatprep.subr.bf16.mxu1 %v8467_v13  ;;  %v8507_v13 = vld [vmem:[%s11251_s1 + $0xe48] ss:$20 sps:$4 sm:$0xff]  }
 0x26b   :  { %7305 = vmatpush3.bf16.msra.mxu0 %v8468_v19  ;;  %v8508_v19 = vld [vmem:[%s11251_s1 + $0xa88] ss:$20 sps:$4 sm:$0xff]  }
 0x26c   :  { %7327 = vmatpush3.bf16.msra.mxu1 %v8469_v20  ;;  %7306 = vmatprep.subr.bf16.mxu0 %v8470_v22  ;;  %v8509_v20 = vld [vmem:[%s11251_s1 + $0xd08] ss:$20 sps:$4 sm:$0xff]   ;;  %v8510_v22 = vld [vmem:[%s11251_s1 + $0xba0] ss:$20 sps:$4 sm:$0xff]  }
 0x26d   :  { %7328 = vmatprep.subr.bf16.mxu1 %v8471_v17  ;;  %v8511_v17 = vld [vmem:[%s11251_s1 + $0xe20] ss:$20 sps:$4 sm:$0xff]  }
 0x26f   :  { %7307 = vmatpush3.bf16.msra.mxu0 %v8472_v23  ;;  %v8512_v23 = vld [vmem:[%s11251_s1 + $0xa60] ss:$20 sps:$4 sm:$0xff]  }
 0x270   :  { %7329 = vmatpush3.bf16.msra.mxu1 %v8473_v45  ;;  %7308 = vmatprep.subr.bf16.mxu0 %v8474_v24  ;;  %v8513_v45 = vld [vmem:[%s11251_s1 + $0xce0] ss:$20 sps:$4 sm:$0xff]   ;;  %v8514_v24 = vld [vmem:[%s11251_s1 + $0xb78] ss:$20 sps:$4 sm:$0xff]  }
 0x271   :  { %7330 = vmatprep.subr.bf16.mxu1 %v8475_v25  ;;  %v8515_v25 = vld [vmem:[%s11251_s1 + $0xdf8] ss:$20 sps:$4 sm:$0xff]  }
 0x273   :  { %7309 = vmatpush3.bf16.msra.mxu0 %v8476_v36  ;;  %v8516_v36 = vld [vmem:[%s11251_s1 + $0xa38] ss:$20 sps:$4 sm:$0xff]  }
 0x274   :  { %7331 = vmatpush3.bf16.msra.mxu1 %v8477_v27  ;;  %7310 = vmatprep.subr.bf16.mxu0 %v8478_v33  ;;  %v8517_v27 = vld [vmem:[%s11251_s1 + $0xcb8] ss:$20 sps:$4 sm:$0xff]   ;;  %v8518_v33 = vld [vmem:[%s11251_s1 + $0xb50] ss:$20 sps:$4 sm:$0xff]  }
 0x275   :  { %7332 = vmatprep.subr.bf16.mxu1 %v8479_v52  ;;  %v8519_v52 = vld [vmem:[%s11251_s1 + $0xdd0] ss:$20 sps:$4 sm:$0xff]  }
 0x277   :  { %7311 = vmatpush3.bf16.msra.mxu0 %v8480_v38  ;;  %v8520_v38 = vld [vmem:[%s11251_s1 + $0xa10] ss:$20 sps:$4 sm:$0xff]  }
 0x278   :  { %7333 = vmatpush3.bf16.msra.mxu1 %v8481_v32  ;;  %7312 = vmatprep.subr.bf16.mxu0 %v8482_v40  ;;  %v8521_v32 = vld [vmem:[%s11251_s1 + $0xc90] ss:$20 sps:$4 sm:$0xff]   ;;  %v8522_v40 = vld [vmem:[%s11251_s1 + $0x1168] ss:$20 sps:$4 sm:$0xff]  }
 0x279   :  { %7334 = vmatprep.subr.bf16.mxu1 %v8483_v60  ;;  %v8523_v60 = vld [vmem:[%s11251_s1 + $0x13e8] ss:$20 sps:$4 sm:$0xff]  }
 0x27b   :  { %7313 = vmatpush3.bf16.msra.mxu0 %v8484_v0  ;;  %v8524_v0 = vld [vmem:[%s11251_s1 + $0x1028] ss:$20 sps:$4 sm:$0xff]  }
 0x27c   :  { %7335 = vmatpush3.bf16.msra.mxu1 %v8485_v44  ;;  %7314 = vmatprep.subr.bf16.mxu0 %v8486_v1  ;;  %v8525_v44 = vld [vmem:[%s11251_s1 + $0x12a8] ss:$20 sps:$4 sm:$0xff]   ;;  %v8526_v1 = vld [vmem:[%s11251_s1 + $0x1140] ss:$20 sps:$4 sm:$0xff]  }
 0x27d   :  { %7336 = vmatprep.subr.bf16.mxu1 %v8487_v46  ;;  %v8527_v46 = vld [vmem:[%s11251_s1 + $0x13c0] ss:$20 sps:$4 sm:$0xff]  }
 0x27f   :  { %7315 = vmatpush3.bf16.msra.mxu0 %v8488_v47  ;;  %v8528_v47 = vld [vmem:[%s11251_s1 + $0x1000] ss:$20 sps:$4 sm:$0xff]  }
 0x280   :  { %7337 = vmatpush3.bf16.msra.mxu1 %v8489_v48  ;;  %7344 = vmatprep.subr.bf16.mxu0 %v8490_v51  ;;  %v8529_v48 = vld [vmem:[%s11251_s1 + $0x1280] ss:$20 sps:$4 sm:$0xff]   ;;  %v8530_v51 = vld [vmem:[%s11251_s1 + $0x1118] ss:$20 sps:$4 sm:$0xff]  }
 0x281   :  { %7366 = vmatprep.subr.bf16.mxu1 %v8491_v53  ;;  %v8533_v53 = vld [vmem:[%s11251_s1 + $0x1258] ss:$20 sps:$4 sm:$0xff]  }
 0x282   :  { %v5333_v61 = vpop.f32.mrf.mxu0  ;;  %5658 = vmatmul.mubr.bf16.vlgmr.msra.gmra.mxu0 %v9109_v26  ;;  %v8498_v26 = vld [vmem:[%s11251_s1 + $0xc18] ss:$20 sps:$4 sm:$0xff]  }
 0x283   :  { %5698 = vmatmul.mubr.bf16.vlgmr.msra.gmra.mxu1 %v9125_v30  ;;  %v5374_v62 = vpop.f32.mrf.mxu1  ;;  %v5334_v63 = vadd.f32 %v5333_v61, %v10632_v31  ;;  %7345 = vmatpush3.bf16.msra.mxu0 %v8492_v35  ;;  %v8499_v30 = vld [vmem:[%s11251_s1 + $0xe98] ss:$20 sps:$4 sm:$0xff]   ;;  %v8534_v35 = vld [vmem:[%s11251_s1 + $0x10f0] ss:$20 sps:$4 sm:$0xff]   ;;  %v8540_v61 = vld [vmem:[%s11251_s1 + $0xf88] ss:$20 sps:$4 sm:$0xff]  }
 0x284   :  { %7367 = vmatpush3.bf16.msra.mxu1 %v8493_v56  ;;  %v5335_v3 = vpop.f32.mrf.mxu0  ;;  %7346 = vmatprep.subr.bf16.mxu0 %v8494_v57  ;;  %v8537_v56 = vld [vmem:[%s11251_s1 + $0x1230] ss:$20 sps:$4 sm:$0xff]   ;;  %v8538_v57 = vld [vmem:[%s11251_s1 + $0x10c8] ss:$20 sps:$4 sm:$0xff]  }
 0x285   :  { %v5376_v5 = vpop.f32.mrf.mxu1  ;;  %7368 = vmatprep.subr.bf16.mxu1 %v8495_v14  ;;  %v5336_v31 = vadd.f32 %v5335_v3, %v10636_v58  ;;  %v10838_v7 = vadd.f32 %v5374_v62, %v5334_v63  ;;  %5737 = vmatprep.mubr.bf16.mxu0 %v9162_v41  ;;  %v8501_v58 = vld [vmem:[%s11251_s1 + $0xd58] ss:$20 sps:$4 sm:$0xff]   ;;  %v8502_v41 = vld [vmem:[%s11251_s1 + $0xbf0] ss:$20 sps:$4 sm:$0xff]   ;;  %v8539_v14 = vld [vmem:[%s11251_s1 + $0x1348] ss:$20 sps:$4 sm:$0xff]  }
 0x286   :  { %5777 = vmatprep.mubr.bf16.mxu1 %v9167_v43  ;;  %v5337_v8 = vpop.f32.mrf.mxu0  ;;  %v8503_v43 = vld [vmem:[%s11251_s1 + $0xe70] ss:$20 sps:$4 sm:$0xff]   ;;  %v8541_v62 = vld [vmem:[%s11251_s1 + $0x1208] ss:$20 sps:$4 sm:$0xff]   ;;  %v8542_v63 = vld [vmem:[%s11251_s1 + $0x10a0] ss:$20 sps:$4 sm:$0xff]  }
 0x287   :  { %v5378_v9 = vpop.f32.mrf.mxu1  ;;  %v10842_v28 = vadd.f32 %v5376_v5, %v5336_v31  ;;  %7347 = vmatpush3.bf16.msra.mxu0 %v8496_v11  ;;  %v8543_v11 = vld [vmem:[%s11251_s1 + $0x1320] ss:$20 sps:$4 sm:$0xff]   ;;  %v8546_v5 = vld [vmem:[%s11251_s1 + $0x1078] ss:$20 sps:$4 sm:$0xff]   ;;  %v8550_v8 = vld [vmem:[%s11251_s1 + $0x1050] ss:$20 sps:$4 sm:$0xff]  }
 0x288   :  { %7369 = vmatpush3.bf16.msra.mxu1 %v8497_v2  ;;  %v5338_v15 = vpop.f32.mrf.mxu0  ;;  %7348 = vmatprep.subr.bf16.mxu0 %v8498_v26  ;;  %v8544_v2 = vld [vmem:[%s11251_s1 + $0xf60] ss:$20 sps:$4 sm:$0xff]   ;;  %v8547_v26 = vld [vmem:[%s11251_s1 + $0x12f8] ss:$20 sps:$4 sm:$0xff]   ;;  %v8551_v9 = vld [vmem:[%s11251_s1 + $0x12d0] ss:$20 sps:$4 sm:$0xff]  }
 0x289   :  { %7370 = vmatprep.subr.bf16.mxu1 %v8499_v30  ;;  %v5379_v49 = vpop.f32.mrf.mxu1  ;;  %v8545_v3 = vld [vmem:[%s11251_s1 + $0x11e0] ss:$20 sps:$4 sm:$0xff]   ;;  %v8548_v30 = vld [vmem:[%s11251_s1 + $0xf38] ss:$20 sps:$4 sm:$0xff]   ;;  %v8554_v15 = vld [vmem:[%s11251_s1 + $0x1668] ss:$20 sps:$4 sm:$0xff]  }
 0x28a   :  { %v8549_v31 = vld [vmem:[%s11251_s1 + $0x11b8] ss:$20 sps:$4 sm:$0xff]  }
 0x28b   :  { %7349 = vmatpush3.bf16.msra.mxu0 %v8500_v39  ;;  %v8552_v39 = vld [vmem:[%s11251_s1 + $0xf10] ss:$20 sps:$4 sm:$0xff]   ;;  %v8557_v49 = vld [vmem:[%s11253_s3 + $0x38] sm:$0xff]  }
 0x28c   :  { %7371 = vmatpush3.bf16.msra.mxu1 %v8501_v58  ;;  %7350 = vmatprep.subr.bf16.mxu0 %v8502_v41  ;;  %v8553_v58 = vld [vmem:[%s11251_s1 + $0x1190] ss:$20 sps:$4 sm:$0xff]   ;;  %v8555_v41 = vld [vmem:[%s11253_s3 + $0x78] sm:$0xff]  }
 0x28d   :  { %7372 = vmatprep.subr.bf16.mxu1 %v8503_v43  ;;  %v8556_v43 = vld [vmem:[%s11251_s1 + $0x1528] ss:$20 sps:$4 sm:$0xff]  }
 0x28f   :  { %7351 = vmatpush3.bf16.msra.mxu0 %v8504_v34  ;;  %v8558_v34 = vld [vmem:[%s11251_s1 + $0x1640] ss:$20 sps:$4 sm:$0xff]  }
 0x290   :  { %7373 = vmatpush3.bf16.msra.mxu1 %v8505_v16  ;;  %7352 = vmatprep.subr.bf16.mxu0 %v8506_v18  ;;  %v8559_v16 = vld [vmem:[%s11253_s3 + $0x70] sm:$0xff]   ;;  %v5906_v18 = vpack.c.bf16 %v10423_v37, %v10423_v37 }
 0x291   :  { %7374 = vmatprep.subr.bf16.mxu1 %v8507_v13 }
 0x293   :  { %7353 = vmatpush3.bf16.msra.mxu0 %v8508_v19 }
 0x294   :  { %7375 = vmatpush3.bf16.msra.mxu1 %v8509_v20  ;;  %7354 = vmatprep.subr.bf16.mxu0 %v8510_v22  ;;  %v8560_v22 = vld [vmem:[%s11251_s1 + $0x1500] ss:$20 sps:$4 sm:$0xff]  }
 0x295   :  { %7376 = vmatprep.subr.bf16.mxu1 %v8511_v17  ;;  %v8561_v17 = vld [vmem:[%s11253_s3 + $0x30] sm:$0xff]  }
 0x297   :  { %7355 = vmatpush3.bf16.msra.mxu0 %v8512_v23 }
 0x298   :  { %7377 = vmatpush3.bf16.msra.mxu1 %v8513_v45  ;;  %7356 = vmatprep.subr.bf16.mxu0 %v8514_v24 }
 0x299   :  { %7378 = vmatprep.subr.bf16.mxu1 %v8515_v25  ;;  %v8564_v25 = vld [vmem:[%s11251_s1 + $0x14d8] ss:$20 sps:$4 sm:$0xff]  }
 0x29b   :  { %7357 = vmatpush3.bf16.msra.mxu0 %v8516_v36  ;;  %v8565_v36 = vld [vmem:[%s11253_s3 + $0x28] sm:$0xff]  }
 0x29c   :  { %7379 = vmatpush3.bf16.msra.mxu1 %v8517_v27  ;;  %7358 = vmatprep.subr.bf16.mxu0 %v8518_v33  ;;  %v8566_v33 = vld [vmem:[%s11251_s1 + $0x15f0] ss:$20 sps:$4 sm:$0xff]  }
 0x29d   :  { %7380 = vmatprep.subr.bf16.mxu1 %v8519_v52 }
 0x29f   :  { %7359 = vmatpush3.bf16.msra.mxu0 %v8520_v38  ;;  %v8568_v38 = vld [vmem:[%s11251_s1 + $0x14b0] ss:$20 sps:$4 sm:$0xff]  }
 0x2a0   :  { %7381 = vmatpush3.bf16.msra.mxu1 %v8521_v32  ;;  %7388 = vmatprep.subr.bf16.mxu0 %v8522_v40  ;;  %v8569_v32 = vld [vmem:[%s11253_s3 + $0x20] sm:$0xff]   ;;  %v8570_v40 = vld [vmem:[%s11251_s1 + $0x15c8] ss:$20 sps:$4 sm:$0xff]  }
 0x2a1   :  { %7410 = vmatprep.subr.bf16.mxu1 %v8523_v60  ;;  %v8571_v60 = vld [vmem:[%s11253_s3 + $0x58] sm:$0xff]  }
 0x2a2   :  { %5738 = vmatmul.mubr.bf16.vlgmr.msra.gmra.mxu0 %v9338_v50  ;;  %v8531_v50 = vld [vmem:[%s11251_s1 + $0x1398] ss:$20 sps:$4 sm:$0xff]  }
 0x2a3   :  { %5778 = vmatmul.mubr.bf16.vlgmr.msra.gmra.mxu1 %v9357_v55  ;;  %7389 = vmatpush3.bf16.msra.mxu0 %v8524_v0  ;;  %v8532_v55 = vld [vmem:[%s11251_s1 + $0xfd8] ss:$20 sps:$4 sm:$0xff]   ;;  %v8572_v0 = vld [vmem:[%s11251_s1 + $0x1488] ss:$20 sps:$4 sm:$0xff]  }
 0x2a4   :  { %7411 = vmatpush3.bf16.msra.mxu1 %v8525_v44  ;;  %7390 = vmatprep.subr.bf16.mxu0 %v8526_v1  ;;  %v8573_v44 = vld [vmem:[%s11253_s3 + $0x18] sm:$0xff]   ;;  %v8574_v1 = vld [vmem:[%s11251_s1 + $0x15a0] ss:$20 sps:$4 sm:$0xff]  }
 0x2a5   :  { %7412 = vmatprep.subr.bf16.mxu1 %v8527_v46  ;;  %5817 = vmatprep.mubr.bf16.mxu0 %v9350_v54  ;;  %v8535_v54 = vld [vmem:[%s11251_s1 + $0x1370] ss:$20 sps:$4 sm:$0xff]  }
 0x2a6   :  { %5857 = vmatprep.mubr.bf16.mxu1 %v9370_v59  ;;  %v8536_v59 = vld [vmem:[%s11251_s1 + $0xfb0] ss:$20 sps:$4 sm:$0xff]  }
 0x2a7   :  { %7391 = vmatpush3.bf16.msra.mxu0 %v8528_v47  ;;  %v8575_v46 = vld [vmem:[%s11253_s3 + $0x50] sm:$0xff]  }
 0x2a8   :  { %7413 = vmatpush3.bf16.msra.mxu1 %v8529_v48  ;;  %7392 = vmatprep.subr.bf16.mxu0 %v8530_v51  ;;  %v8576_v47 = vld [vmem:[%s11251_s1 + $0x1460] ss:$20 sps:$4 sm:$0xff]   ;;  %v8578_v51 = vld [vmem:[%s11251_s1 + $0x1578] ss:$20 sps:$4 sm:$0xff]  }
 0x2a9   :  { %7414 = vmatprep.subr.bf16.mxu1 %v8531_v50  ;;  %v8577_v48 = vld [vmem:[%s11253_s3 + $0x10] sm:$0xff]   ;;  %v8579_v50 = vld [vmem:[%s11253_s3 + $0x48] sm:$0xff]  }
 0x2ab   :  { %7393 = vmatpush3.bf16.msra.mxu0 %v8532_v55  ;;  %v8580_v55 = vld [vmem:[%s11251_s1 + $0x1438] ss:$20 sps:$4 sm:$0xff]  }
 0x2ac   :  { %7415 = vmatpush3.bf16.msra.mxu1 %v8533_v53  ;;  %7394 = vmatprep.subr.bf16.mxu0 %v8534_v35  ;;  %v8581_v53 = vld [vmem:[%s11253_s3 + $0x8] sm:$0xff]   ;;  %v8582_v35 = vld [vmem:[%s11251_s1 + $0x1550] ss:$20 sps:$4 sm:$0xff]  }
 0x2ad   :  { %7416 = vmatprep.subr.bf16.mxu1 %v8535_v54  ;;  %v8583_v54 = vld [vmem:[%s11253_s3 + $0x40] sm:$0xff]  }
 0x2af   :  { %7395 = vmatpush3.bf16.msra.mxu0 %v8536_v59  ;;  %v8584_v59 = vld [vmem:[%s11251_s1 + $0x1410] ss:$20 sps:$4 sm:$0xff]  }
 0x2b0   :  { %7417 = vmatpush3.bf16.msra.mxu1 %v8537_v56  ;;  %7396 = vmatprep.subr.bf16.mxu0 %v8538_v57  ;;  %v8585_v56 = vld [vmem:[%s11253_s3] sm:$0xff]   ;;  %v8586_v57 = vld [vmem:[%s11253_s3 + $0xf8] sm:$0xff]  }
 0x2b1   :  { %7418 = vmatprep.subr.bf16.mxu1 %v8539_v14  ;;  %v8587_v14 = vld [vmem:[%s11253_s3 + $0xb8] sm:$0xff]  }
 0x2b3   :  { %7397 = vmatpush3.bf16.msra.mxu0 %v8540_v61  ;;  %v5905_v61 = vpack.c.bf16 %v10412_v29, %v10412_v29  ;;  %v8591_v29 = vld [vmem:[%s11253_s3 + $0xa8] sm:$0xff]  }
 0x2b4   :  { %7419 = vmatpush3.bf16.msra.mxu1 %v8541_v62  ;;  %7398 = vmatprep.subr.bf16.mxu0 %v8542_v63  ;;  %v8588_v62 = vld [vmem:[%s11253_s3 + $0xf0] sm:$0xff]  }
 0x2b5   :  { %7420 = vmatprep.subr.bf16.mxu1 %v8543_v11  ;;  %v8589_v63 = vld [vmem:[%s11253_s3 + $0xb0] sm:$0xff]   ;;  %v8590_v11 = vld [vmem:[%s11253_s3 + $0xe8] sm:$0xff]  }
 0x2b7   :  { %7399 = vmatpush3.bf16.msra.mxu0 %v8544_v2  ;;  %v8593_v2 = vld [vmem:[%s11253_s3 + $0xa0] sm:$0xff]  }
 0x2b8   :  { %7421 = vmatpush3.bf16.msra.mxu1 %v8545_v3  ;;  %7400 = vmatprep.subr.bf16.mxu0 %v8546_v5  ;;  %v8594_v3 = vld [vmem:[%s11253_s3 + $0xd8] sm:$0xff]  }
 0x2b9   :  { %7422 = vmatprep.subr.bf16.mxu1 %v8547_v26  ;;  %v8595_v5 = vld [vmem:[%s11253_s3 + $0x98] sm:$0xff]   ;;  %v8596_v26 = vld [vmem:[%s11253_s3 + $0xd0] sm:$0xff]  }
 0x2bb   :  { %7401 = vmatpush3.bf16.msra.mxu0 %v8548_v30  ;;  %v8597_v30 = vld [vmem:[%s11253_s3 + $0x90] sm:$0xff]  }
 0x2bc   :  { %7423 = vmatpush3.bf16.msra.mxu1 %v8549_v31  ;;  %7402 = vmatprep.subr.bf16.mxu0 %v8550_v8  ;;  %v8598_v31 = vld [vmem:[%s11253_s3 + $0xc8] sm:$0xff]  }
 0x2bd   :  { %7424 = vmatprep.subr.bf16.mxu1 %v8551_v9  ;;  %v8599_v8 = vld [vmem:[%s11253_s3 + $0x88] sm:$0xff]   ;;  %v8600_v9 = vld [vmem:[%s11253_s3 + $0xc0] sm:$0xff]  }
 0x2bf   :  { %7403 = vmatpush3.bf16.msra.mxu0 %v8552_v39  ;;  %v8601_v39 = vld [vmem:[%s11253_s3 + $0x80] sm:$0xff]  }
 0x2c0   :  { %7425 = vmatpush3.bf16.msra.mxu1 %v8553_v58  ;;  %7432 = vmatprep.subr.bf16.mxu0 %v8554_v15 }
 0x2c1   :  { %7454 = vmatprep.subr.bf16.mxu1 %v8555_v41 }
 0x2c2   :  { %v5415_v13 = vpop.f32.mrf.mxu0  ;;  %5818 = vmatmul.mubr.bf16.vlgmr.msra.gmra.mxu0 %v9552_v10  ;;  %v8562_v10 = vld [vmem:[%s11251_s1 + $0x1618] ss:$20 sps:$4 sm:$0xff]  }
 0x2c3   :  { %5858 = vmatmul.mubr.bf16.vlgmr.msra.gmra.mxu1 %v9577_v21  ;;  %v5456_v19 = vpop.f32.mrf.mxu1  ;;  %v5416_v20 = vadd.f32 %v5415_v13, %v10838_v7  ;;  %7433 = vmatpush3.bf16.msra.mxu0 %v8556_v43  ;;  %v8563_v21 = vld [vmem:[%s11253_s3 + $0x68] sm:$0xff]  }
 0x2c4   :  { %7455 = vmatpush3.bf16.msra.mxu1 %v8557_v49  ;;  %6269 = vmatprep.mubr.bf16.mxu1 %v5906_v18  ;;  %v11039_v37 = vpop.f32.mrf.mxu0 }
 0x2c5   :  { %v11041_v23 = vpop.f32.mrf.mxu1  ;;  %7434 = vmatprep.subr.bf16.mxu0 %v8558_v34  ;;  %v11049_v7 = vadd.f32 %v5456_v19, %v5416_v20  ;;  %7456 = vmatprep.subr.bf16.mxu1 %v8559_v16  ;;  %v5418_v58 = vadd.f32 %v11039_v37, %v10842_v28  ;;  %v8602_v28 = vld [vmem:[%s11253_s3 + $0x138] sm:$0xff]  }
 0x2c6   :  { %5897 = vmatprep.mubr.bf16.mxu0 %v9592_v6  ;;  %v5419_v45 = vpop.f32.mrf.mxu0  ;;  %v8567_v6 = vld [vmem:[%s11253_s3 + $0x60] sm:$0xff]  }
 0x2c7   :  { %v5460_v24 = vpop.f32.mrf.mxu1  ;;  %7435 = vmatpush3.bf16.msra.mxu0 %v8560_v22  ;;  %v5459_v43 = vadd.f32 %v11041_v23, %v5418_v58  ;;  %v8642_v45 = vmov 0.0   ;;  %v8603_v23 = vld [vmem:[%s11253_s3 + $0x130] sm:$0xff]  }
 0x2c8   :  { %7457 = vmatpush3.bf16.msra.mxu1 %v8561_v17  ;;  %v5420_v27 = vpop.f32.mrf.mxu0  ;;  %7436 = vmatprep.subr.bf16.mxu0 %v8562_v10  ;;  %v8605_v24 = vld [vmem:[%s11253_s3 + $0x120] sm:$0xff]  }
 0x2c9   :  { %7458 = vmatprep.subr.bf16.mxu1 %v8563_v21  ;;  %v5461_v52 = vpop.f32.mrf.mxu1  ;;  %v915_v27 = vsub.s32 4, %v8802_v42 }
 0x2cb   :  { %7437 = vmatpush3.bf16.msra.mxu0 %v8564_v25  ;;  %v8606_v25 = vld [vmem:[%s11253_s3 + $0x118] sm:$0xff]   ;;  %v916_v52 = vrot.slane %v10600_v4, %v915_v27 }
 0x2cc   :  { %7459 = vmatpush3.bf16.msra.mxu1 %v8565_v36  ;;  %7438 = vmatprep.subr.bf16.mxu0 %v8566_v33  ;;  %v8607_v36 = vld [vmem:[%s11253_s3 + $0x110] sm:$0xff]  }
 0x2cd   :  { %7460 = vmatprep.subr.bf16.mxu1 %v8567_v6 }
 0x2cf   :  { %7439 = vmatpush3.bf16.msra.mxu0 %v8568_v38  ;;  %v8608_v38 = vld [vmem:[%s11253_s3 + $0x108] sm:$0xff]  }
 0x2d0   :  { %7461 = vmatpush3.bf16.msra.mxu1 %v8569_v32  ;;  %7440 = vmatprep.subr.bf16.mxu0 %v8570_v40 }
 0x2d1   :  { %7462 = vmatprep.subr.bf16.mxu1 %v8571_v60 }
 0x2d3   :  { %7441 = vmatpush3.bf16.msra.mxu0 %v8572_v0 }
 0x2d4   :  { %7463 = vmatpush3.bf16.msra.mxu1 %v8573_v44  ;;  %7442 = vmatprep.subr.bf16.mxu0 %v8574_v1 }
 0x2d5   :  { %7464 = vmatprep.subr.bf16.mxu1 %v8575_v46  ;;  %v8609_v46 = vld [vmem:[%s11253_s3 + $0x100] sm:$0xff]  }
 0x2d7   :  { %7443 = vmatpush3.bf16.msra.mxu0 %v8576_v47 }
 0x2d8   :  { %7465 = vmatpush3.bf16.msra.mxu1 %v8577_v48  ;;  %7444 = vmatprep.subr.bf16.mxu0 %v8578_v51 }
 0x2d9   :  { %7466 = vmatprep.subr.bf16.mxu1 %v8579_v50 }
 0x2db   :  { %7445 = vmatpush3.bf16.msra.mxu0 %v8580_v55 }
 0x2dc   :  { %7467 = vmatpush3.bf16.msra.mxu1 %v8581_v53  ;;  %7446 = vmatprep.subr.bf16.mxu0 %v8582_v35 }
 0x2dd   :  { %7468 = vmatprep.subr.bf16.mxu1 %v8583_v54 }
 0x2df   :  { %7447 = vmatpush3.bf16.msra.mxu0 %v8584_v59 }
 0x2e0   :  { %7469 = vmatpush3.bf16.msra.mxu1 %v8585_v56  ;;  %7476 = vmatprep.subr.bf16.mxu0 %v8586_v57 }
 0x2e1   :  { %7516 = vmatprep.subr.bf16.mxu1 %v8642_v45 }
 0x2e2   :  { %5898 = vmatmul.mubr.bf16.vlgmr.msra.gmra.mxu0 %v9787_v12  ;;  %v8592_v12 = vld [vmem:[%s11253_s3 + $0xe0] sm:$0xff]  }
 0x2e3   :  { %6270 = vmatmul.mubr.bf16.vlgmr.msra.gmra.mxu1 %v5905_v61  ;;  %7477 = vmatpush3.bf16.msra.mxu0 %v8587_v14 }
 0x2e4   :  { %7478 = vmatprep.subr.bf16.mxu0 %v8588_v62  ;;  %7517 = vmatpush3.bf16.msra.mxu1 %v8602_v28 }
 0x2e5   :  { %7518 = vmatprep.subr.bf16.mxu1 %v8642_v45  ;;  %7532 = vmatprep.mubr.msk.bf16.mxu1 %vm8643_vm0, %v8642_v45 }
 0x2e7   :  { %7479 = vmatpush3.bf16.msra.mxu0 %v8589_v63  ;;  %v8610_v63 = vld [vmem:[%s11255_s5 + $0x38] sm:$0xff]  }
 0x2e8   :  { %7480 = vmatprep.subr.bf16.mxu0 %v8590_v11  ;;  %7519 = vmatpush3.bf16.msra.mxu1 %v8603_v23  ;;  %v8611_v11 = vld [vmem:[%s11255_s5 + $0x30] sm:$0xff]  }
 0x2e9   :  { %7520 = vmatprep.subr.bf16.mxu1 %v8642_v45 }
 0x2eb   :  { %7481 = vmatpush3.bf16.msra.mxu0 %v8591_v29  ;;  %v8612_v29 = vld [vmem:[%s11255_s5 + $0x28] sm:$0xff]  }
 0x2ec   :  { %7482 = vmatprep.subr.bf16.mxu0 %v8592_v12  ;;  %v8613_v12 = vld [vmem:[%s11255_s5 + $0x20] sm:$0xff]  }
 0x2ef   :  { %7483 = vmatpush3.bf16.msra.mxu0 %v8593_v2  ;;  %v8614_v2 = vld [vmem:[%s11255_s5 + $0x18] sm:$0xff]  }
 0x2f0   :  { %7484 = vmatprep.subr.bf16.mxu0 %v8594_v3 }
 0x2f3   :  { %7485 = vmatpush3.bf16.msra.mxu0 %v8595_v5 }
 0x2f4   :  { %7486 = vmatprep.subr.bf16.mxu0 %v8596_v26 }
 0x2f7   :  { %7487 = vmatpush3.bf16.msra.mxu0 %v8597_v30 }
 0x2f8   :  { %7488 = vmatprep.subr.bf16.mxu0 %v8598_v31  ;;  %v8615_v31 = vld [vmem:[%s11255_s5 + $0x10] sm:$0xff]  }
 0x2fb   :  { %7489 = vmatpush3.bf16.msra.mxu0 %v8599_v8 }
 0x2fc   :  { %7490 = vmatprep.subr.bf16.mxu0 %v8600_v9 }
 0x2ff   :  { %7491 = vmatpush3.bf16.msra.mxu0 %v8601_v39 }
 0x300   :  { %7536 = vmatprep.subr.bf16.mxu0 %v8642_v45 }
 0x302   :  { %v5497_v15 = vpop.f32.mrf.mxu0 }
 0x303   :  { %v5538_v41 = vpop.f32.mrf.mxu1  ;;  %v5498_v49 = vadd.f32 %v5497_v15, %v11049_v7  ;;  %v8604_v7 = vld [vmem:[%s11253_s3 + $0x128] sm:$0xff]  }
 0x304   :  { %v5499_v34 = vpop.f32.mrf.mxu0  ;;  %7521 = vmatpush3.bf16.msra.mxu1 %v8604_v7  ;;  %v8616_v15 = vld [vmem:[%s11255_s5 + $0x8] sm:$0xff]  }
 0x305   :  { %v5540_v16 = vpop.f32.mrf.mxu1  ;;  %v5500_v18 = vadd.f32 %v5499_v34, %v5459_v43  ;;  %v5539_v13 = vadd.f32 %v5538_v41, %v5498_v49  ;;  %7522 = vmatprep.subr.bf16.mxu1 %v8642_v45 }
 0x306   :  { %v5501_v19 = vpop.f32.mrf.mxu0 }
 0x307   :  { %v5542_v20 = vpop.f32.mrf.mxu1  ;;  %v5541_v22 = vadd.f32 %v5540_v16, %v5500_v18  ;;  %v5907_v37 = vpack.c.bf16 %v5539_v13, %v5539_v13 }
 0x308   :  { %v5502_v17 = vpop.f32.mrf.mxu0  ;;  %7523 = vmatpush3.bf16.msra.mxu1 %v8605_v24 }
 0x309   :  { %v5543_v10 = vpop.f32.mrf.mxu1  ;;  %v5908_v21 = vpack.c.bf16 %v5541_v22, %v5541_v22  ;;  %7524 = vmatprep.subr.bf16.mxu1 %v8642_v45 }
 0x30b   :  { %6309 = vmatprep.mubr.bf16.mxu0 %v5908_v21 }
 0x30c   :  { %6310 = vmatmul.mubr.bf16.vlgmr.msra.gmra.mxu0 %v5907_v37  ;;  %7525 = vmatpush3.bf16.msra.mxu1 %v8606_v25 }
 0x30d   :  { %7526 = vmatprep.subr.bf16.mxu1 %v8642_v45  ;;  %7552 = vmatprep.mubr.msk.bf16.mxu0 %vm8643_vm0, %v8642_v45 }
 0x30e   :  { %7537 = vmatpush3.bf16.msra.mxu0 %v8610_v63 }
 0x30f   :  { %7538 = vmatprep.subr.bf16.mxu0 %v8642_v45 }
 0x310   :  { %7527 = vmatpush3.bf16.msra.mxu1 %v8607_v36 }
 0x311   :  { %7528 = vmatprep.subr.bf16.mxu1 %v8642_v45 }
 0x312   :  { %7539 = vmatpush3.bf16.msra.mxu0 %v8611_v11 }
 0x313   :  { %7540 = vmatprep.subr.bf16.mxu0 %v8642_v45 }
 0x314   :  { %7529 = vmatpush3.bf16.msra.mxu1 %v8608_v38 }
 0x315   :  { %7530 = vmatprep.subr.bf16.mxu1 %v8642_v45 }
 0x316   :  { %7541 = vmatpush3.bf16.msra.mxu0 %v8612_v29 }
 0x317   :  { %7542 = vmatprep.subr.bf16.mxu0 %v8642_v45 }
 0x318   :  { %7531 = vmatpush3.bf16.msra.mxu1 %v8609_v46 }
 0x31a   :  { %7543 = vmatpush3.bf16.msra.mxu0 %v8613_v12 }
 0x31b   :  { %7544 = vmatprep.subr.bf16.mxu0 %v8642_v45 }
 0x31e   :  { %7545 = vmatpush3.bf16.msra.mxu0 %v8614_v2 }
 0x31f   :  { %7546 = vmatprep.subr.bf16.mxu0 %v8642_v45 }
 0x322   :  { %v7272_v33 = vpop.f32.mrf.mxu0  ;;  %7547 = vmatpush3.bf16.msra.mxu0 %v8615_v31 }
 0x323   :  { %v7294_v6 = vpop.f32.mrf.mxu1  ;;  %7548 = vmatprep.subr.bf16.mxu0 %v8642_v45 }
 0x324   :  { %v7273_v32 = vpop.f32.mrf.mxu0 }
 0x325   :  { %v7295_v40 = vpop.f32.mrf.mxu1  ;;  %v7274_v60 = vadd.f32 %v7273_v32, %v7272_v33 }
 0x326   :  { %v7296_v0 = vadd.f32 %v7295_v40, %v7294_v6  ;;  %v7275_v44 = vpop.f32.mrf.mxu0  ;;  %7549 = vmatpush3.bf16.msra.mxu0 %v8616_v15 }
 0x327   :  { %v7297_v1 = vpop.f32.mrf.mxu1  ;;  %v5580_v42 = vadd.f32 %v7274_v60, %v916_v52  ;;  %7550 = vmatprep.subr.bf16.mxu0 %v8642_v45  ;;  %v7206_v60 = vld [vmem:[%s11254_s4] ss:$0 sm:$0xff] }
 0x328   :  { %v7276_v47 = vpop.f32.mrf.mxu0 }
 0x329   :  { %v7298_v4 = vpop.f32.mrf.mxu1  ;;  %v5620_v48 = vadd.f32 %v7296_v0, %v5580_v42 }
 0x342   :  { %v7316_v51 = vpop.f32.mrf.mxu0 }
 0x343   :  { %v7338_v50 = vpop.f32.mrf.mxu1 }
 0x344   :  { %v7317_v55 = vpop.f32.mrf.mxu0 }
 0x345   :  { %v7339_v53 = vpop.f32.mrf.mxu1  ;;  %v7318_v35 = vadd.f32 %v7317_v55, %v7316_v51 }
 0x346   :  { %v7340_v54 = vadd.f32 %v7339_v53, %v7338_v50  ;;  %v7319_v59 = vpop.f32.mrf.mxu0 }
 0x347   :  { %v7341_v56 = vpop.f32.mrf.mxu1  ;;  %v5660_v57 = vadd.f32 %v7318_v35, %v5620_v48  ;;  %v8617_v48 = vld [vmem:[%s11255_s5] sm:$0xff]   ;;  %s8619_s5 = scalar_lea.vmem %s6478_s18, 32 }
 0x348   :  { %v7320_v14 = vpop.f32.mrf.mxu0  ;;  %7551 = vmatpush3.bf16.msra.mxu0 %v8617_v48  ;;  %v7247_v59 = vld [vmem:[%s11256_s6] ss:$0 sm:$0xff]  ;;  %p8620_p0 = scmp.ne.s32.totalorder %s6478_s18, %s8619_s5  ;;  %p8625_p2 = scmp.lt.s32.totalorder %s8619_s5, %s8619_s5 }
 0x349   :  { %v7342_v61 = vpop.f32.mrf.mxu1  ;;  %v5700_v62 = vadd.f32 %v7340_v54, %v5660_v57 }
 0x34a   :  { %p8626_p3 = por %p8625_p2, %p8624_p1 }
 0x34c   :  { %p8627_p4 = pnand %p8626_p3, %p8620_p0 }
 0x362   :  { %v7360_v3 = vpop.f32.mrf.mxu0 }
 0x363   :  { %v7382_v5 = vpop.f32.mrf.mxu1 }
 0x364   :  { %v7361_v26 = vpop.f32.mrf.mxu0 }
 0x365   :  { %v7383_v30 = vpop.f32.mrf.mxu1  ;;  %v7362_v20 = vadd.f32 %v7361_v26, %v7360_v3 }
 0x366   :  { %v7363_v8 = vpop.f32.mrf.mxu0  ;;  %v7384_v17 = vadd.f32 %v7383_v30, %v7382_v5 }
 0x367   :  { %v7385_v9 = vpop.f32.mrf.mxu1  ;;  %v5740_v22 = vadd.f32 %v7362_v20, %v5700_v62 }
 0x368   :  { %v7364_v39 = vpop.f32.mrf.mxu0 }
 0x369   :  { %v7386_v58 = vpop.f32.mrf.mxu1  ;;  %v5780_v21 = vadd.f32 %v7384_v17, %v5740_v22 }
 0x382   :  { %v7404_v41 = vpop.f32.mrf.mxu0 }
 0x383   :  { %v7426_v43 = vpop.f32.mrf.mxu1 }
 0x384   :  { %v7405_v49 = vpop.f32.mrf.mxu0 }
 0x385   :  { %v7427_v34 = vpop.f32.mrf.mxu1  ;;  %v7406_v10 = vadd.f32 %v7405_v49, %v7404_v41 }
 0x386   :  { %v7407_v16 = vpop.f32.mrf.mxu0  ;;  %v7428_v37 = vadd.f32 %v7427_v34, %v7426_v43 }
 0x387   :  { %v7429_v18 = vpop.f32.mrf.mxu1  ;;  %v5820_v28 = vadd.f32 %v7406_v10, %v5780_v21 }
 0x388   :  { %v7408_v13 = vpop.f32.mrf.mxu0 }
 0x389   :  { %v7430_v19 = vpop.f32.mrf.mxu1  ;;  %v5860_v45 = vadd.f32 %v7428_v37, %v5820_v28 }
 0x3a2   :  { %v7448_v23 = vpop.f32.mrf.mxu0 }
 0x3a3   :  { %v7470_v7 = vpop.f32.mrf.mxu1 }
 0x3a4   :  { %v7449_v24 = vpop.f32.mrf.mxu0 }
 0x3a5   :  { %v7471_v25 = vpop.f32.mrf.mxu1  ;;  %v7450_v36 = vadd.f32 %v7449_v24, %v7448_v23 }
 0x3a6   :  { %v7472_v27 = vadd.f32 %v7471_v25, %v7470_v7  ;;  %v7451_v33 = vpop.f32.mrf.mxu0 }
 0x3a7   :  { %v7473_v6 = vpop.f32.mrf.mxu1  ;;  %v5900_v52 = vadd.f32 %v7450_v36, %v5860_v45 }
 0x3a8   :  { %v7452_v38 = vpop.f32.mrf.mxu0  ;;  %v6272_v1 = vadd.f32 %v7472_v27, %v7206_v60 }
 0x3a9   :  { %v7474_v32 = vpop.f32.mrf.mxu1  ;;  %v5909_v40 = vpack.c.bf16 %v5900_v52, %v5900_v52 }
 0x3ab   :  { %7533 = vmatmul.mubr.bf16.vlgmr.msra.gmra.mxu1 %v5909_v40 }
 0x3cc   :  { %v7492_v0 = vpop.f32.mrf.mxu0 }
 0x3ce   :  { %v7493_v44 = vpop.f32.mrf.mxu0 }
 0x3cf   :  { %v7494_v42 = vadd.f32 %v7493_v44, %v7492_v0 }
 0x3d0   :  { %v7495_v46 = vpop.f32.mrf.mxu0 }
 0x3d1   :  { %v6312_v47 = vadd.f32 %v7494_v42, %v6272_v1 }
 0x3d2   :  { %v7496_v4 = vpop.f32.mrf.mxu0 }
 0x46b   :  { %v6351_v51 = vpop.f32.mrf.mxu1 }
 0x46c   :  { %v6352_v50 = vadd.f32 %v6351_v51, %v6312_v47 }
 0x46d   :  { %v7534_v55 = vpop.f32.mrf.mxu1 }
 0x46e   :  { %v6357_v53 = vpack.c.bf16 %v6352_v50, %v6352_v50 }
 0x46f   :  { %v6354_v35 = vpop.f32.mrf.mxu1 }
 0x470   :  { %7553 = vmatmul.mubr.bf16.vlgmr.msra.gmra.mxu0 %v6357_v53 }
 0x471   :  { %v7535_v54 = vpop.f32.mrf.mxu1 }
 0x530   :  { %v6463_v56 = vpop.f32.mrf.mxu0 }
 0x531   :  { %v6464_v57 = vadd.f32 %v7247_v59, %v6463_v56 }
 0x532   :  { %v7554_v14 = vpop.f32.mrf.mxu0 }
 0x533   :  { %6470 = vst.msk [vmem:[#allocation2] sm:$0x3] %vm6469_vm1, %v6464_v57 }
 0x534   :  { %v6466_v61 = vpop.f32.mrf.mxu0 }
 0x535   :  { %8630 = shalt.err (!%p8627_p4)
}
 0x536   :  { %6480 = dma.vmem_to_hbm [thread:$0]  %s6478_s18, 32, %s11257_s7, [#allocation3]   ;;  %v7555_v62 = vpop.f32.mrf.mxu0 }
 0x537   :  { %8639 = dma.done.wait [#allocation3], 32  }
 0x538   :  { %8640 = vsyncadd [#allocation3], 4294967264 }
 0x539   :  { %6484 = vsyncpa [#allocation3], 1 }

</bundles_post_ra>
